<compile_context>
chip_gen: v7x
topology: tpu7x:2x2x1
jax: 0.10.0
libtpu: 0.0.40
codegen_flags: <defaults>
</compile_context>

<pallas_src>
import functools
import math

import jax
import jax.numpy as jnp
from jax.experimental import pallas as pl
from jax.experimental.pallas import tpu as pltpu


def _nelf_kernel(alpha,
                 o_ref, d_ref, pts_ref, emb_ref,
                 w1_ref, b1_ref, w2_ref, b2_ref, w3_ref, b3_ref,
                 out_ref,
                 m_sc, l_sc, acc_sc):
    j = pl.program_id(1)

    # ---- init online-softmax state on the first P tile -------------------
    @pl.when(j == 0)
    def _():
        m_sc[...] = jnp.full_like(m_sc, -jnp.inf)
        l_sc[...] = jnp.zeros_like(l_sc)
        acc_sc[...] = jnp.zeros_like(acc_sc)

    # Ray origins / directions for this batch tile: (tb, 3) -> (tb, 1) comps.
    ox, oy, oz = o_ref[:, 0:1], o_ref[:, 1:2], o_ref[:, 2:3]
    dx, dy, dz = d_ref[:, 0:1], d_ref[:, 1:2], d_ref[:, 2:3]

    # Points are passed transposed as (3, tp): per-component (1, tp).
    px, py, pz = pts_ref[0:1, :], pts_ref[1:2, :], pts_ref[2:3, :]

    # v = points - ray_origin, broadcast -> (tb, tp) per component (all f32).
    vx = px - ox
    vy = py - oy
    vz = pz - oz

    # || cross(v, d) ||
    cx = vy * dz - vz * dy
    cy = vz * dx - vx * dz
    cz = vx * dy - vy * dx
    len_perp = jnp.sqrt(cx * cx + cy * cy + cz * cz)                 # (tb, tp)

    # <v, d> / ||v||  (rsqrt on the EUP instead of sqrt + divide)
    dot_vd = vx * dx + vy * dy + vz * dz
    inv_norm_v = jax.lax.rsqrt(vx * vx + vy * vy + vz * vz)
    ray_alignment = dot_vd * inv_norm_v                              # (tb, tp)

    # blended score for this P tile
    s = alpha * len_perp + (1.0 - alpha) * ray_alignment             # (tb, tp)

    # ---- online softmax + streamed blend with the embedding tile ---------
    m_prev = m_sc[...]
    m_new = jnp.maximum(m_prev, jnp.max(s, axis=-1, keepdims=True))
    corr = jnp.exp(m_prev - m_new)                                   # (tb, 1)
    p = jnp.exp(s - m_new)                                           # (tb, tp)
    l_sc[...] = corr * l_sc[...] + jnp.sum(p, axis=-1, keepdims=True)
    acc_sc[...] = corr * acc_sc[...] + jnp.dot(
        p.astype(emb_ref.dtype), emb_ref[...],
        preferred_element_type=jnp.float32)                          # (tb, E)
    m_sc[...] = m_new

    # ---- finalize softmax + MLP head on the last P tile -------------------
    @pl.when(j == pl.num_programs(1) - 1)
    def _():
        inv_l = pl.reciprocal(l_sc[...], approx=True)                # (tb, 1)
        emb = acc_sc[...] * inv_l                                    # (tb, E) f32

        h = jnp.dot(emb.astype(w1_ref.dtype), w1_ref[...],
                    preferred_element_type=jnp.float32) + b1_ref[...]
        h = jnp.maximum(h, 0.0)
        h = jnp.dot(h.astype(w2_ref.dtype), w2_ref[...],
                    preferred_element_type=jnp.float32) + b2_ref[...]
        h = jnp.maximum(h, 0.0)
        out = jnp.dot(h.astype(w3_ref.dtype), w3_ref[...],
                      preferred_element_type=jnp.float32) + b3_ref[...]
        out_ref[...] = out.astype(out_ref.dtype)                     # lane-dense


def point_based_blend_nelf(ray_origin, ray_dir, points, embedded_parameters,
                           w1, b1, w2, b2, w3, b3, *,
                           alpha=0.5, tb=128, tp=128,
                           param_dtype=jnp.bfloat16):
    """Pallas wrapper.

    ray_origin / ray_dir: (B, 3) f32; points: (P, 3) f32;
    embedded_parameters: (P, E); Linear weights stored as (in, out),
    biases as (1, out).  param_dtype is the MXU-operand dtype for the
    embedding table and MLP weights (f32 accumulation is always used).
    """
    B = ray_origin.shape[0]
    P, E = embedded_parameters.shape
    H1 = w1.shape[1]
    H2 = w2.shape[1]
    OUT = w3.shape[1]

    tb = min(tb, B)
    tp = min(tp, P)
    assert B % tb == 0, (B, tb)
    assert P % tp == 0, (P, tp)

    # Lane-dense output: pad the 4-wide head to a multiple of 128 lanes.
    OUT_PAD = -(-OUT // 128) * 128

    pts_t = points.astype(jnp.float32).T                     # (3, P), P on lanes
    emb_c = embedded_parameters.astype(param_dtype)           # (P, E)
    w1_c = w1.astype(param_dtype)
    w2_c = w2.astype(param_dtype)
    w3_p = jnp.pad(w3, ((0, 0), (0, OUT_PAD - OUT))).astype(param_dtype)
    b1_c = b1.astype(jnp.float32)
    b2_c = b2.astype(jnp.float32)
    b3_p = jnp.pad(b3.astype(jnp.float32), ((0, 0), (0, OUT_PAD - OUT)))

    kernel = functools.partial(_nelf_kernel, float(alpha))

    full = lambda shape: pl.BlockSpec(shape, lambda i, j: (0, 0))

    # Explicit, tile-derived VMEM budget (double-buffered inputs/outputs +
    # scratch), clamped so it is safe on every generation (<= 48 MiB << v7x's
    # 64 MiB physical VMEM).
    psz = jnp.dtype(param_dtype).itemsize
    est = (
        2 * (2 * tb * 3 * 4)                                   # ray tiles
        + 2 * (3 * tp * 4)                                     # points tile
        + 2 * (tp * E * psz)                                   # embedding tile
        + 2 * (E * H1 + H1 * H2 + H2 * OUT_PAD) * psz          # MLP weights
        + 2 * (H1 + H2 + OUT_PAD) * 4                          # biases
        + 2 * (tb * OUT_PAD * 4)                               # output tile
        + (2 * tb + tb * E) * 4                                # scratch
    )
    vmem_limit = int(min(max(4 * est, 32 << 20), 48 << 20))

    out_padded = pl.pallas_call(
        kernel,
        out_shape=jax.ShapeDtypeStruct((B, OUT_PAD), jnp.float32),
        grid_spec=pltpu.PrefetchScalarGridSpec(
            num_scalar_prefetch=0,
            grid=(B // tb, P // tp),
            in_specs=[
                pl.BlockSpec((tb, 3), lambda i, j: (i, 0)),    # ray_origin tile
                pl.BlockSpec((tb, 3), lambda i, j: (i, 0)),    # ray_dir tile
                pl.BlockSpec((3, tp), lambda i, j: (0, j)),    # points (3, tp)
                pl.BlockSpec((tp, E), lambda i, j: (j, 0)),    # embedding tile
                full((E, H1)), full((1, H1)),                  # layer 1
                full((H1, H2)), full((1, H2)),                 # layer 2
                full((H2, OUT_PAD)), full((1, OUT_PAD)),       # output layer
            ],
            out_specs=pl.BlockSpec((tb, OUT_PAD), lambda i, j: (i, 0)),
            scratch_shapes=[
                pltpu.VMEM((tb, 1), jnp.float32),              # running max m
                pltpu.VMEM((tb, 1), jnp.float32),              # running sum l
                pltpu.VMEM((tb, E), jnp.float32),              # blend accumulator
            ],
        ),
        compiler_params=pltpu.CompilerParams(
            dimension_semantics=("parallel", "arbitrary"),
            vmem_limit_bytes=vmem_limit),
    )(ray_origin.astype(jnp.float32), ray_dir.astype(jnp.float32),
      pts_t, emb_c, w1_c, b1_c, w2_c, b2_c, w3_p, b3_p)

    return out_padded[:, :OUT]


def _reference(ray_origin, ray_dir, points, emb, w1, b1, w2, b2, w3, b3, alpha):
    """Pure-JAX f32 reference mirroring the PyTorch forward."""
    v = points[None, :, :] - ray_origin[:, None, :]                     # (B,P,3)
    d = ray_dir[:, None, :]                                             # (B,1,3)
    cross = jnp.cross(v, d)
    len_perp = jnp.linalg.norm(cross, axis=-1)
    align = jnp.sum(v * d, axis=-1) / jnp.linalg.norm(v, axis=-1)
    w = alpha * len_perp + (1.0 - alpha) * align
    w = jax.nn.softmax(w, axis=-1)
    x = w @ emb
    x = jnp.maximum(x @ w1 + b1, 0.0)
    x = jnp.maximum(x @ w2 + b2, 0.0)
    return x @ w3 + b3


if __name__ == "__main__":
    # Small but MXU-friendly shapes: 2 batch tiles of 128 rays (parallel axis,
    # shards across v7x's 2 TCs), 2 point tiles of 128 (streamed softmax axis).
    B, P, E = 256, 256, 64
    hidden_dims = [128, 128]
    OUT = 4
    alpha = 0.5

    key = jax.random.PRNGKey(0)
    keys = jax.random.split(key, 12)

    # Rays
    ray_origin = jax.random.normal(keys[0], (B, 3), dtype=jnp.float32)
    ray_dir = jax.random.normal(keys[1], (B, 3), dtype=jnp.float32)
    ray_dir = ray_dir / jnp.linalg.norm(ray_dir, axis=-1, keepdims=True)

    # Parameters (deterministic synthetic init matching module shapes)
    points = jax.random.normal(keys[2], (P, 3), dtype=jnp.float32)        # initial_points
    emb_params = jax.random.normal(keys[3], (P, E), dtype=jnp.float32)     # embedded_parameters
    w1 = jax.random.normal(keys[4], (E, hidden_dims[0]), jnp.float32) / math.sqrt(E)
    b1 = jax.random.normal(keys[5], (1, hidden_dims[0]), jnp.float32) * 0.1
    w2 = jax.random.normal(keys[6], (hidden_dims[0], hidden_dims[1]), jnp.float32) / math.sqrt(hidden_dims[0])
    b2 = jax.random.normal(keys[7], (1, hidden_dims[1]), jnp.float32) * 0.1
    w3 = jax.random.normal(keys[8], (hidden_dims[1], OUT), jnp.float32) / math.sqrt(hidden_dims[1])
    b3 = jax.random.normal(keys[9], (1, OUT), jnp.float32) * 0.1

    ref = _reference(ray_origin, ray_dir, points, emb_params,
                     w1, b1, w2, b2, w3, b3, alpha)

    # 1) f32 MXU-operand path: only approximations are rsqrt + approx recip.
    out_f32 = point_based_blend_nelf(ray_origin, ray_dir, points, emb_params,
                                     w1, b1, w2, b2, w3, b3, alpha=alpha,
                                     tb=128, tp=128, param_dtype=jnp.float32)
    out_f32 = jax.block_until_ready(out_f32)
    assert out_f32.shape == (B, OUT), out_f32.shape
    assert jnp.allclose(out_f32, ref, rtol=5e-3, atol=5e-3), \
        float(jnp.max(jnp.abs(out_f32 - ref)))

    # 2) bf16 MXU-operand path (default): looser tolerance for bf16 rounding.
    out_bf16 = point_based_blend_nelf(ray_origin, ray_dir, points, emb_params,
                                      w1, b1, w2, b2, w3, b3, alpha=alpha,
                                      tb=128, tp=128, param_dtype=jnp.bfloat16)
    out_bf16 = jax.block_until_ready(out_bf16)
    assert out_bf16.shape == (B, OUT), out_bf16.shape
    assert jnp.allclose(out_bf16, ref, rtol=5e-2, atol=5e-2), \
        float(jnp.max(jnp.abs(out_bf16 - ref)))

    print("KERNEL_OK")
</pallas_src>

<mosaic_0001>
module attributes {stable_mosaic.version = 11 : i64} {
  func.func @_nelf_kernel(%arg0: i32, %arg1: i32, %arg2: memref<128x3xf32, #tpu.memory_space<vmem>>, %arg3: memref<128x3xf32, #tpu.memory_space<vmem>>, %arg4: memref<3x128xf32, #tpu.memory_space<vmem>>, %arg5: memref<128x64xf32, #tpu.memory_space<vmem>>, %arg6: memref<64x128xf32, #tpu.memory_space<vmem>>, %arg7: memref<1x128xf32, #tpu.memory_space<vmem>>, %arg8: memref<128x128xf32, #tpu.memory_space<vmem>>, %arg9: memref<1x128xf32, #tpu.memory_space<vmem>>, %arg10: memref<128x128xf32, #tpu.memory_space<vmem>>, %arg11: memref<1x128xf32, #tpu.memory_space<vmem>>, %arg12: memref<128x128xf32, #tpu.memory_space<vmem>>, %arg13: memref<128x1xf32, #tpu.memory_space<vmem>>, %arg14: memref<128x1xf32, #tpu.memory_space<vmem>>, %arg15: memref<128x64xf32, #tpu.memory_space<vmem>>) attributes {dimension_semantics = [#tpu.dimension_semantics<parallel>, #tpu.dimension_semantics<arbitrary>], iteration_bounds = array<i64: 2, 2>, scalar_prefetch = 0 : i64, scratch_operands = 3 : i64, tpu.core_type = #tpu.core_type<tc>, window_params = [{transform_indices = @transform_0, window_bounds = array<i64: 128, 3>}, {transform_indices = @transform_1, window_bounds = array<i64: 128, 3>}, {transform_indices = @transform_2, window_bounds = array<i64: 3, 128>}, {transform_indices = @transform_3, window_bounds = array<i64: 128, 64>}, {pipeline_mode = #tpu.pipeline_mode<synchronous>, transform_indices = @transform_4, window_bounds = array<i64: 64, 128>}, {pipeline_mode = #tpu.pipeline_mode<synchronous>, transform_indices = @transform_5, window_bounds = array<i64: 1, 128>}, {pipeline_mode = #tpu.pipeline_mode<synchronous>, transform_indices = @transform_6, window_bounds = array<i64: 128, 128>}, {pipeline_mode = #tpu.pipeline_mode<synchronous>, transform_indices = @transform_7, window_bounds = array<i64: 1, 128>}, {pipeline_mode = #tpu.pipeline_mode<synchronous>, transform_indices = @transform_8, window_bounds = array<i64: 128, 128>}, {pipeline_mode = #tpu.pipeline_mode<synchronous>, transform_indices = @transform_9, window_bounds = array<i64: 1, 128>}, {transform_indices = @transform_10, window_bounds = array<i64: 128, 128>}]} {
    %c0_i32 = arith.constant 0 : i32
    %0 = arith.cmpi eq, %arg1, %c0_i32 : i32
    %1 = arith.extui %0 : i1 to i32
    %c0_i32_0 = arith.constant 0 : i32
    %2 = arith.cmpi ne, %1, %c0_i32_0 : i32
    scf.if %2 {
      %cst_35 = arith.constant 0xFF800000 : f32
      %88 = vector.broadcast %cst_35 : f32 to vector<128x1xf32>
      %c0_36 = arith.constant 0 : index
      %c0_37 = arith.constant 0 : index
      %89 = vector.load %arg13[%c0_36, %c0_37] : memref<128x1xf32, #tpu.memory_space<vmem>>, vector<128x1xf32>
      tpu.vector_store %arg13[%c0_36, %c0_37], %88 {strides = array<i32>} : memref<128x1xf32, #tpu.memory_space<vmem>>, vector<128x1xf32>,
      %cst_38 = arith.constant 0.000000e+00 : f32
      %90 = vector.broadcast %cst_38 : f32 to vector<128x1xf32>
      %c0_39 = arith.constant 0 : index
      %c0_40 = arith.constant 0 : index
      %91 = vector.load %arg14[%c0_39, %c0_40] : memref<128x1xf32, #tpu.memory_space<vmem>>, vector<128x1xf32>
      tpu.vector_store %arg14[%c0_39, %c0_40], %90 {strides = array<i32>} : memref<128x1xf32, #tpu.memory_space<vmem>>, vector<128x1xf32>,
      %cst_41 = arith.constant 0.000000e+00 : f32
      %92 = vector.broadcast %cst_41 : f32 to vector<128x64xf32>
      %c0_42 = arith.constant 0 : index
      %c0_43 = arith.constant 0 : index
      %93 = vector.load %arg15[%c0_42, %c0_43] : memref<128x64xf32, #tpu.memory_space<vmem>>, vector<128x64xf32>
      tpu.vector_store %arg15[%c0_42, %c0_43], %92 {strides = array<i32>} : memref<128x64xf32, #tpu.memory_space<vmem>>, vector<128x64xf32>,
    } else {
    }
    %c0 = arith.constant 0 : index
    %c0_1 = arith.constant 0 : index
    %3 = vector.load %arg2[%c0, %c0_1] : memref<128x3xf32, #tpu.memory_space<vmem>>, vector<128x1xf32>
    %c0_2 = arith.constant 0 : index
    %c1 = arith.constant 1 : index
    %4 = vector.load %arg2[%c0_2, %c1] : memref<128x3xf32, #tpu.memory_space<vmem>>, vector<128x1xf32>
    %c0_3 = arith.constant 0 : index
    %c2 = arith.constant 2 : index
    %5 = vector.load %arg2[%c0_3, %c2] : memref<128x3xf32, #tpu.memory_space<vmem>>, vector<128x1xf32>
    %c0_4 = arith.constant 0 : index
    %c0_5 = arith.constant 0 : index
    %6 = vector.load %arg3[%c0_4, %c0_5] : memref<128x3xf32, #tpu.memory_space<vmem>>, vector<128x1xf32>
    %c0_6 = arith.constant 0 : index
    %c1_7 = arith.constant 1 : index
    %7 = vector.load %arg3[%c0_6, %c1_7] : memref<128x3xf32, #tpu.memory_space<vmem>>, vector<128x1xf32>
    %c0_8 = arith.constant 0 : index
    %c2_9 = arith.constant 2 : index
    %8 = vector.load %arg3[%c0_8, %c2_9] : memref<128x3xf32, #tpu.memory_space<vmem>>, vector<128x1xf32>
    %c0_10 = arith.constant 0 : index
    %c0_11 = arith.constant 0 : index
    %9 = vector.load %arg4[%c0_10, %c0_11] : memref<3x128xf32, #tpu.memory_space<vmem>>, vector<1x128xf32>
    %c1_12 = arith.constant 1 : index
    %c0_13 = arith.constant 0 : index
    %10 = vector.load %arg4[%c1_12, %c0_13] : memref<3x128xf32, #tpu.memory_space<vmem>>, vector<1x128xf32>
    %c2_14 = arith.constant 2 : index
    %c0_15 = arith.constant 0 : index
    %11 = vector.load %arg4[%c2_14, %c0_15] : memref<3x128xf32, #tpu.memory_space<vmem>>, vector<1x128xf32>
    %12 = vector.broadcast %9 : vector<1x128xf32> to vector<128x128xf32>
    %13 = vector.broadcast %3 : vector<128x1xf32> to vector<128x128xf32>
    %14 = arith.subf %12, %13 : vector<128x128xf32>
    %15 = vector.broadcast %10 : vector<1x128xf32> to vector<128x128xf32>
    %16 = vector.broadcast %4 : vector<128x1xf32> to vector<128x128xf32>
    %17 = arith.subf %15, %16 : vector<128x128xf32>
    %18 = vector.broadcast %11 : vector<1x128xf32> to vector<128x128xf32>
    %19 = vector.broadcast %5 : vector<128x1xf32> to vector<128x128xf32>
    %20 = arith.subf %18, %19 : vector<128x128xf32>
    %21 = vector.broadcast %8 : vector<128x1xf32> to vector<128x128xf32>
    %22 = arith.mulf %17, %21 : vector<128x128xf32>
    %23 = vector.broadcast %7 : vector<128x1xf32> to vector<128x128xf32>
    %24 = arith.mulf %20, %23 : vector<128x128xf32>
    %25 = arith.subf %22, %24 : vector<128x128xf32>
    %26 = vector.broadcast %6 : vector<128x1xf32> to vector<128x128xf32>
    %27 = arith.mulf %20, %26 : vector<128x128xf32>
    %28 = vector.broadcast %8 : vector<128x1xf32> to vector<128x128xf32>
    %29 = arith.mulf %14, %28 : vector<128x128xf32>
    %30 = arith.subf %27, %29 : vector<128x128xf32>
    %31 = vector.broadcast %7 : vector<128x1xf32> to vector<128x128xf32>
    %32 = arith.mulf %14, %31 : vector<128x128xf32>
    %33 = vector.broadcast %6 : vector<128x1xf32> to vector<128x128xf32>
    %34 = arith.mulf %17, %33 : vector<128x128xf32>
    %35 = arith.subf %32, %34 : vector<128x128xf32>
    %36 = arith.mulf %25, %25 : vector<128x128xf32>
    %37 = arith.mulf %30, %30 : vector<128x128xf32>
    %38 = arith.addf %36, %37 : vector<128x128xf32>
    %39 = arith.mulf %35, %35 : vector<128x128xf32>
    %40 = arith.addf %38, %39 : vector<128x128xf32>
    %41 = math.sqrt %40 : vector<128x128xf32>
    %42 = vector.broadcast %6 : vector<128x1xf32> to vector<128x128xf32>
    %43 = arith.mulf %14, %42 : vector<128x128xf32>
    %44 = vector.broadcast %7 : vector<128x1xf32> to vector<128x128xf32>
    %45 = arith.mulf %17, %44 : vector<128x128xf32>
    %46 = arith.addf %43, %45 : vector<128x128xf32>
    %47 = vector.broadcast %8 : vector<128x1xf32> to vector<128x128xf32>
    %48 = arith.mulf %20, %47 : vector<128x128xf32>
    %49 = arith.addf %46, %48 : vector<128x128xf32>
    %50 = arith.mulf %14, %14 : vector<128x128xf32>
    %51 = arith.mulf %17, %17 : vector<128x128xf32>
    %52 = arith.addf %50, %51 : vector<128x128xf32>
    %53 = arith.mulf %20, %20 : vector<128x128xf32>
    %54 = arith.addf %52, %53 : vector<128x128xf32>
    %55 = math.rsqrt %54 : vector<128x128xf32>
    %56 = arith.mulf %49, %55 : vector<128x128xf32>
    %cst = arith.constant 5.000000e-01 : f32
    %57 = vector.broadcast %cst : f32 to vector<128x128xf32>
    %58 = arith.mulf %57, %41 : vector<128x128xf32>
    %cst_16 = arith.constant 5.000000e-01 : f32
    %59 = vector.broadcast %cst_16 : f32 to vector<128x128xf32>
    %60 = arith.mulf %59, %56 : vector<128x128xf32>
    %61 = arith.addf %58, %60 : vector<128x128xf32>
    %c0_17 = arith.constant 0 : index
    %c0_18 = arith.constant 0 : index
    %62 = vector.load %arg13[%c0_17, %c0_18] : memref<128x1xf32, #tpu.memory_space<vmem>>, vector<128x1xf32>
    %cst_19 = arith.constant dense<0xFF800000> : vector<128xf32>
    %63 = vector.multi_reduction <maximumf>, %61, %cst_19 [1] : vector<128x128xf32> to vector<128xf32>
    %64 = vector.shape_cast %63 : vector<128xf32> to vector<128x1xf32>
    %65 = arith.maximumf %62, %64 : vector<128x1xf32>
    %66 = arith.subf %62, %65 : vector<128x1xf32>
    %67 = math.exp %66 : vector<128x1xf32>
    %68 = vector.broadcast %65 : vector<128x1xf32> to vector<128x128xf32>
    %69 = arith.subf %61, %68 : vector<128x128xf32>
    %70 = math.exp %69 : vector<128x128xf32>
    %c0_20 = arith.constant 0 : index
    %c0_21 = arith.constant 0 : index
    %71 = vector.load %arg14[%c0_20, %c0_21] : memref<128x1xf32, #tpu.memory_space<vmem>>, vector<128x1xf32>
    %72 = arith.mulf %67, %71 : vector<128x1xf32>
    %cst_22 = arith.constant dense<0.000000e+00> : vector<128xf32>
    %73 = vector.multi_reduction <add>, %70, %cst_22 [1] : vector<128x128xf32> to vector<128xf32>
    %74 = vector.shape_cast %73 : vector<128xf32> to vector<128x1xf32>
    %75 = arith.addf %72, %74 : vector<128x1xf32>
    %c0_23 = arith.constant 0 : index
    %c0_24 = arith.constant 0 : index
    %76 = vector.load %arg14[%c0_23, %c0_24] : memref<128x1xf32, #tpu.memory_space<vmem>>, vector<128x1xf32>
    tpu.vector_store %arg14[%c0_23, %c0_24], %75 {strides = array<i32>} : memref<128x1xf32, #tpu.memory_space<vmem>>, vector<128x1xf32>,
    %c0_25 = arith.constant 0 : index
    %c0_26 = arith.constant 0 : index
    %77 = vector.load %arg15[%c0_25, %c0_26] : memref<128x64xf32, #tpu.memory_space<vmem>>, vector<128x64xf32>
    %78 = vector.broadcast %67 : vector<128x1xf32> to vector<128x64xf32>
    %79 = arith.mulf %78, %77 : vector<128x64xf32>
    %c0_27 = arith.constant 0 : index
    %c0_28 = arith.constant 0 : index
    %80 = vector.load %arg5[%c0_27, %c0_28] : memref<128x64xf32, #tpu.memory_space<vmem>>, vector<128x64xf32>
    %cst_29 = arith.constant dense<0.000000e+00> : vector<128x64xf32>
    %81 = tpu.matmul %70, %80, %cst_29 {dimension_numbers = #tpu.dot_dimension_numbers<[1], [0], [0], [1], [0, 0, 1, 1], [], []>} : vector<128x128xf32>, vector<128x64xf32>, vector<128x64xf32> -> vector<128x64xf32>
    %82 = arith.addf %79, %81 : vector<128x64xf32>
    %c0_30 = arith.constant 0 : index
    %c0_31 = arith.constant 0 : index
    %83 = vector.load %arg15[%c0_30, %c0_31] : memref<128x64xf32, #tpu.memory_space<vmem>>, vector<128x64xf32>
    tpu.vector_store %arg15[%c0_30, %c0_31], %82 {strides = array<i32>} : memref<128x64xf32, #tpu.memory_space<vmem>>, vector<128x64xf32>,
    %c0_32 = arith.constant 0 : index
    %c0_33 = arith.constant 0 : index
    %84 = vector.load %arg13[%c0_32, %c0_33] : memref<128x1xf32, #tpu.memory_space<vmem>>, vector<128x1xf32>
    tpu.vector_store %arg13[%c0_32, %c0_33], %65 {strides = array<i32>} : memref<128x1xf32, #tpu.memory_space<vmem>>, vector<128x1xf32>,
    %c1_i32 = arith.constant 1 : i32
    %85 = arith.cmpi eq, %arg1, %c1_i32 : i32
    %86 = arith.extui %85 : i1 to i32
    %c0_i32_34 = arith.constant 0 : i32
    %87 = arith.cmpi ne, %86, %c0_i32_34 : i32
    scf.if %87 {
      %c0_35 = arith.constant 0 : index
      %c0_36 = arith.constant 0 : index
      %88 = vector.load %arg14[%c0_35, %c0_36] : memref<128x1xf32, #tpu.memory_space<vmem>>, vector<128x1xf32>
      %89 = tpu.reciprocal %88 {approx = true} : vector<128x1xf32> -> vector<128x1xf32>
      %c0_37 = arith.constant 0 : index
      %c0_38 = arith.constant 0 : index
      %90 = vector.load %arg15[%c0_37, %c0_38] : memref<128x64xf32, #tpu.memory_space<vmem>>, vector<128x64xf32>
      %91 = vector.broadcast %89 : vector<128x1xf32> to vector<128x64xf32>
      %92 = arith.mulf %90, %91 : vector<128x64xf32>
      %c0_39 = arith.constant 0 : index
      %c0_40 = arith.constant 0 : index
      %93 = vector.load %arg6[%c0_39, %c0_40] : memref<64x128xf32, #tpu.memory_space<vmem>>, vector<64x128xf32>
      %cst_41 = arith.constant dense<0.000000e+00> : vector<128x128xf32>
      %94 = tpu.matmul %92, %93, %cst_41 {dimension_numbers = #tpu.dot_dimension_numbers<[1], [0], [0], [1], [0, 0, 1, 1], [], []>} : vector<128x64xf32>, vector<64x128xf32>, vector<128x128xf32> -> vector<128x128xf32>
      %c0_42 = arith.constant 0 : index
      %c0_43 = arith.constant 0 : index
      %95 = vector.load %arg7[%c0_42, %c0_43] : memref<1x128xf32, #tpu.memory_space<vmem>>, vector<1x128xf32>
      %96 = vector.broadcast %95 : vector<1x128xf32> to vector<128x128xf32>
      %97 = arith.addf %94, %96 : vector<128x128xf32>
      %cst_44 = arith.constant 0.000000e+00 : f32
      %98 = vector.broadcast %cst_44 : f32 to vector<128x128xf32>
      %99 = arith.maximumf %97, %98 : vector<128x128xf32>
      %c0_45 = arith.constant 0 : index
      %c0_46 = arith.constant 0 : index
      %100 = vector.load %arg8[%c0_45, %c0_46] : memref<128x128xf32, #tpu.memory_space<vmem>>, vector<128x128xf32>
      %cst_47 = arith.constant dense<0.000000e+00> : vector<128x128xf32>
      %101 = tpu.matmul %99, %100, %cst_47 {dimension_numbers = #tpu.dot_dimension_numbers<[1], [0], [0], [1], [0, 0, 1, 1], [], []>} : vector<128x128xf32>, vector<128x128xf32>, vector<128x128xf32> -> vector<128x128xf32>
      %c0_48 = arith.constant 0 : index
      %c0_49 = arith.constant 0 : index
      %102 = vector.load %arg9[%c0_48, %c0_49] : memref<1x128xf32, #tpu.memory_space<vmem>>, vector<1x128xf32>
      %103 = vector.broadcast %102 : vector<1x128xf32> to vector<128x128xf32>
      %104 = arith.addf %101, %103 : vector<128x128xf32>
      %cst_50 = arith.constant 0.000000e+00 : f32
      %105 = vector.broadcast %cst_50 : f32 to vector<128x128xf32>
      %106 = arith.maximumf %104, %105 : vector<128x128xf32>
      %c0_51 = arith.constant 0 : index
      %c0_52 = arith.constant 0 : index
      %107 = vector.load %arg10[%c0_51, %c0_52] : memref<128x128xf32, #tpu.memory_space<vmem>>, vector<128x128xf32>
      %cst_53 = arith.constant dense<0.000000e+00> : vector<128x128xf32>
      %108 = tpu.matmul %106, %107, %cst_53 {dimension_numbers = #tpu.dot_dimension_numbers<[1], [0], [0], [1], [0, 0, 1, 1], [], []>} : vector<128x128xf32>, vector<128x128xf32>, vector<128x128xf32> -> vector<128x128xf32>
      %c0_54 = arith.constant 0 : index
      %c0_55 = arith.constant 0 : index
      %109 = vector.load %arg11[%c0_54, %c0_55] : memref<1x128xf32, #tpu.memory_space<vmem>>, vector<1x128xf32>
      %110 = vector.broadcast %109 : vector<1x128xf32> to vector<128x128xf32>
      %111 = arith.addf %108, %110 : vector<128x128xf32>
      %c0_56 = arith.constant 0 : index
      %c0_57 = arith.constant 0 : index
      %112 = vector.load %arg12[%c0_56, %c0_57] : memref<128x128xf32, #tpu.memory_space<vmem>>, vector<128x128xf32>
      tpu.vector_store %arg12[%c0_56, %c0_57], %111 {strides = array<i32>} : memref<128x128xf32, #tpu.memory_space<vmem>>, vector<128x128xf32>,
    } else {
    }
    return
  }
  func.func @transform_0(%arg0: i32, %arg1: i32) -> (i32, i32) {
    %c0_i32 = arith.constant 0 : i32
    %c0_i32_0 = arith.constant 0 : i32
    return %arg0, %c0_i32 : i32, i32
  }
  func.func @transform_1(%arg0: i32, %arg1: i32) -> (i32, i32) {
    %c0_i32 = arith.constant 0 : i32
    %c0_i32_0 = arith.constant 0 : i32
    return %arg0, %c0_i32 : i32, i32
  }
  func.func @transform_2(%arg0: i32, %arg1: i32) -> (i32, i32) {
    %c0_i32 = arith.constant 0 : i32
    %c0_i32_0 = arith.constant 0 : i32
    return %c0_i32, %arg1 : i32, i32
  }
  func.func @transform_3(%arg0: i32, %arg1: i32) -> (i32, i32) {
    %c0_i32 = arith.constant 0 : i32
    %c0_i32_0 = arith.constant 0 : i32
    return %arg1, %c0_i32 : i32, i32
  }
  func.func @transform_4(%arg0: i32, %arg1: i32) -> (i32, i32) {
    %c0_i32 = arith.constant 0 : i32
    %c0_i32_0 = arith.constant 0 : i32
    %c0_i32_1 = arith.constant 0 : i32
    return %c0_i32, %c0_i32_0 : i32, i32
  }
  func.func @transform_5(%arg0: i32, %arg1: i32) -> (i32, i32) {
    %c0_i32 = arith.constant 0 : i32
    %c0_i32_0 = arith.constant 0 : i32
    %c0_i32_1 = arith.constant 0 : i32
    return %c0_i32, %c0_i32_0 : i32, i32
  }
  func.func @transform_6(%arg0: i32, %arg1: i32) -> (i32, i32) {
    %c0_i32 = arith.constant 0 : i32
    %c0_i32_0 = arith.constant 0 : i32
    %c0_i32_1 = arith.constant 0 : i32
    return %c0_i32, %c0_i32_0 : i32, i32
  }
  func.func @transform_7(%arg0: i32, %arg1: i32) -> (i32, i32) {
    %c0_i32 = arith.constant 0 : i32
    %c0_i32_0 = arith.constant 0 : i32
    %c0_i32_1 = arith.constant 0 : i32
    return %c0_i32, %c0_i32_0 : i32, i32
  }
  func.func @transform_8(%arg0: i32, %arg1: i32) -> (i32, i32) {
    %c0_i32 = arith.constant 0 : i32
    %c0_i32_0 = arith.constant 0 : i32
    %c0_i32_1 = arith.constant 0 : i32
    return %c0_i32, %c0_i32_0 : i32, i32
  }
  func.func @transform_9(%arg0: i32, %arg1: i32) -> (i32, i32) {
    %c0_i32 = arith.constant 0 : i32
    %c0_i32_0 = arith.constant 0 : i32
    %c0_i32_1 = arith.constant 0 : i32
    return %c0_i32, %c0_i32_0 : i32, i32
  }
  func.func @transform_10(%arg0: i32, %arg1: i32) -> (i32, i32) {
    %c0_i32 = arith.constant 0 : i32
    %c0_i32_0 = arith.constant 0 : i32
    return %arg0, %c0_i32 : i32, i32
  }
}

</mosaic_0001>

<bundles_post_ra>
// kernel: tpu_custom_call.1
= control target key start
LH: loop header
LB: loop body
LE: loop exit
PB: predicated region body
PF: predicated region fallthrough
CT: control target
= control target key end

     0   :  { %s5841_s0 = inlined_call_operand.vmem [shape: f32[256,3], index: 0, kind: input, shape index: {}]   ;;  %s5842_s1 = inlined_call_operand.vmem [shape: f32[256,3], index: 1, kind: input, shape index: {}]   ;;  %s5843_s2 = inlined_call_operand.vmem [shape: f32[3,256], index: 2, kind: input, shape index: {}]   ;;  %s5844_s3 = inlined_call_operand.vmem [shape: f32[256,64], index: 3, kind: input, shape index: {}]   ;;  %s5845_s4 = inlined_call_operand.vmem [shape: f32[64,128], index: 4, kind: input, shape index: {}]   ;;  %s5846_s5 = inlined_call_operand.vmem [shape: f32[1,128], index: 5, kind: input, shape index: {}]   ;;  %s5847_s6 = inlined_call_operand.vmem [shape: f32[128,128], index: 6, kind: input, shape index: {}]   ;;  %s5848_s7 = inlined_call_operand.vmem [shape: f32[1,128], index: 7, kind: input, shape index: {}]   ;;  %s5849_s8 = inlined_call_operand.vmem [shape: f32[128,128], index: 8, kind: input, shape index: {}]   ;;  %s5850_s9 = inlined_call_operand.vmem [shape: f32[1,128], index: 9, kind: input, shape index: {}]   ;;  %s5851_s10 = inlined_call_operand.hbm [shape: f32[256,128], index: 10, kind: output, shape index: {}]  }
   0x1   :  { %5915 = sst [smem:[#allocation69_spill]] %s5851_s10 }
   0x2   :  { %15 = vsyncpa [#allocation6], 0 }
   0x3   :  { %17 = vsyncpa [#allocation6 + $0x1], 0  ;;  %s4044_s13 = smov 0   ;;  %s4046_s14 = smov 0  }
   0x4   :  { %s4048_s15 = smov 0   ;;  %s4050_s16 = smov 0  }
   0x5   :  { %s4052_s17 = smov 0   ;;  %s4054_s18 = smov 0  }
   0x6   :  { %s4056_s19 = smov 0   ;;  %s4058_s20 = smov 0  }
   0x7 LB: > { %5916 = sst [smem:[#allocation8_spill]] %s3950_s13  ;;  %s3097_s21 = sadd.s32 4294967295, %s3978_s20   ;;  %s3978_s20 = sphi %s4058_s20, %s23_s20   ;;  %s3974_s19 = sphi %s4056_s19, %s6045_s19   ;;  %s3970_s18 = sphi %s4054_s18, %s6044_s18   ;;  %s3966_s17 = sphi %s4052_s17, %s6043_s17   ;;  %s3962_s16 = sphi %s4050_s16, %s6042_s16   ;;  %s3958_s15 = sphi %s4048_s15, %s6041_s15   ;;  %s3954_s14 = sphi %s4046_s14, %s6047_s14   ;;  %s3950_s13 = sphi %s4044_s13, %s6046_s13  }
   0x8   : > { %5917 = sst [smem:[#allocation9_spill]] %s3958_s15  ;;  %s3098_s22 = sadd.s32 4294967294, %s3978_s20  }
   0x9   : > { %5918 = sst [smem:[#allocation10_spill]] %s3970_s18  ;;  %s32_s23 = sadd.s32 1, %s3970_s18 }
   0xa   : > { %5919 = sst [smem:[#allocation11_spill]] %s3974_s19  ;;  %p33_p0 = scmp.ge.s32.totalorder %s32_s23, 2 }
   0xb   : > { %5920 = sst [smem:[#allocation12_spill]] %s3978_s20  ;;  %s35_s24 = sadd.s32 1, %s3974_s19 }
   0xc   : > { %p282_p1 = scmp.ne.s32.totalorder %s3958_s15, %s3954_s14  ;;  %p283_p2 = scmp.eq.s32.totalorder %s3097_s21, 3 }
   0xd   : > { %s6049_s23 = smov (%p33_p0, %s32_s23), 0  ;;  %s6051_s24 = smov (!%p33_p0, %s35_s24), %s3974_s19 }
   0xe   : > { %5921 = sst [smem:[#allocation13_spill]] %s6049_s23  ;;  %p4093_p3 = por %p283_p2, %p282_p1 }
   0xf   : > { %p288_p4 = scmp.ne.s32.totalorder %s3954_s14, %s3950_s13  ;;  %p37_p5 = scmp.ge.s32.totalorder %s6051_s24, 2 }
  0x10   : > { %p289_p6 = scmp.eq.s32.totalorder %s3098_s22, 3  ;;  %p3101_p7 = scmp.ge.s32.totalorder %s3978_s20, 1 }
  0x11   : > { %p359_p8 = scmp.lt.s32.totalorder %s3978_s20, 5  ;;  %s6053_s24 = smov (%p37_p5, %s6051_s24), 0 }
  0x12   : > { %5923 = sst [smem:[#allocation14_spill]] %s6053_s24  ;;  %p4103_p9 = por %p289_p6, %p288_p4 }
  0x13   : > { %p360_p10 = pnand %p3101_p7, %p359_p8  ;;  %s269_s27 = ssub.s32 %s3974_s19, %s6053_s24 }
  0x14   : > { %s5924_s26 = scalar_select %p4103_p9, 1, 0 }
  0x15   : > { %s272_s28 = sadd.s32 1, %s3958_s15  ;;  %p270_p11 = scmp.eq.s32.totalorder %s269_s27, 0 }
  0x16   : > { %5925 = sst [smem:[#allocation15_spill]] %s5924_s26  ;;  %363 = sbr.rel (%p360_p10) target bundleno = 1756 (0x6dc), region = 60 }
  0x17   : > { %s4111_s29 = scalar_select %p270_p11, %s3958_s15, %s272_s28  }
  0x19   : > { %5926 = sst [smem:[#allocation16_spill]] %s4111_s29 }
  0x1d   : > { %s5857_s30 = sand.u32 1, %s3954_s14   ;;  %s3103_s11 = sshll.u32 %s3966_s17, 4 }
  0x1e   : > { %s3102_s12 = sshll.u32 %s5857_s30, 7  ;;  %p412_p12 = scmp.lt.s32.totalorder %s3103_s11, 31 }
  0x1f   : > { %p423_p13 = scmp.lt.s32.totalorder %s3962_s16, 1  ;;  %s3108_s24 = sshll.u32 %s3962_s16, 4 }
  0x20   : > { %s6055_s11 = smov (!%p412_p12, %s3103_s11), 31  ;;  %p428_p0 = scmp.lt.s32.totalorder %s3108_s24, 31 }
  0x21   : > { %s424_s21 = scalar_select %p423_p13, %s3962_s16, 1 }
  0x22   : > { %s3104_s22 = sshll.u32 %s6055_s11, 3  ;;  %s6057_s24 = smov (!%p428_p0, %s3108_s24), 31 }
  0x23   : > { %s4123_s23 = scalar_lea.vmem %s5841_s0, %s3104_s22  ;;  %s4128_s29 = scalar_lea.vmem %s5842_s1, %s3104_s22 }
  0x24   : > { %s3107_s15 = sshll.u32 %s424_s21, 2  ;;  %s3109_s11 = sshll.u32 %s6057_s24, 3 }
  0x25   : > { %s4133_s13 = scalar_lea.vmem %s5843_s2, %s3107_s15  ;;  %s4138_s27 = scalar_lea.vmem %s5844_s3, %s3109_s11 }
  0x26   : > { %s4140_s28 = scalar_lea.vmem [#allocation5], %s3102_s12  ;;  %p3110_p1 = scmp.ne.s32.totalorder %s3962_s16, 0 }
  0x27   : > { %vm438_vm0 = vcmask (!%p3110_p1), 7168   ;;  %vm471_vm1 = vcmask (!%p3110_p1), 523264   ;;  %v3980_v0 = vmov (!%p3110_p1), -inf   ;;  %v3981_v1 = vmov (!%p3110_p1), 0.0  }
  0x28   : > { %437 = sbr.rel (%p3110_p1) target bundleno = 64 (0x40), region = 64  ;;  %439 = vst.msk [vmem:[#allocation2] sm:$0xff] (!%p3110_p1), %vm438_vm0, %v3980_v0  ;;  %440 = vst.msk [vmem:[#allocation2 + $0x8] sm:$0xff] (!%p3110_p1), %vm438_vm0, %v3980_v0 }
  0x29   : > { %441 = vst.msk [vmem:[#allocation2 + $0x10] sm:$0xff] (!%p3110_p1), %vm438_vm0, %v3980_v0  ;;  %442 = vst.msk [vmem:[#allocation2 + $0x18] sm:$0xff] (!%p3110_p1), %vm438_vm0, %v3980_v0 }
  0x2a   : > { %443 = vst.msk [vmem:[#allocation2 + $0x20] sm:$0xff] (!%p3110_p1), %vm438_vm0, %v3980_v0  ;;  %444 = vst.msk [vmem:[#allocation2 + $0x28] sm:$0xff] (!%p3110_p1), %vm438_vm0, %v3980_v0 }
  0x2b   : > { %445 = vst.msk [vmem:[#allocation2 + $0x30] sm:$0xff] (!%p3110_p1), %vm438_vm0, %v3980_v0  ;;  %446 = vst.msk [vmem:[#allocation2 + $0x38] sm:$0xff] (!%p3110_p1), %vm438_vm0, %v3980_v0 }
  0x2c   : > { %447 = vst.msk [vmem:[#allocation2 + $0x40] sm:$0xff] (!%p3110_p1), %vm438_vm0, %v3980_v0  ;;  %448 = vst.msk [vmem:[#allocation2 + $0x48] sm:$0xff] (!%p3110_p1), %vm438_vm0, %v3980_v0 }
  0x2d   : > { %449 = vst.msk [vmem:[#allocation2 + $0x50] sm:$0xff] (!%p3110_p1), %vm438_vm0, %v3980_v0  ;;  %450 = vst.msk [vmem:[#allocation2 + $0x58] sm:$0xff] (!%p3110_p1), %vm438_vm0, %v3980_v0 }
  0x2e   : > { %451 = vst.msk [vmem:[#allocation2 + $0x60] sm:$0xff] (!%p3110_p1), %vm438_vm0, %v3980_v0  ;;  %452 = vst.msk [vmem:[#allocation2 + $0x68] sm:$0xff] (!%p3110_p1), %vm438_vm0, %v3980_v0 }
  0x2f   : > { %453 = vst.msk [vmem:[#allocation2 + $0x70] sm:$0xff] %vm438_vm0, %v3980_v0  ;;  %454 = vst.msk [vmem:[#allocation2 + $0x78] sm:$0xff] %vm438_vm0, %v3980_v0 }
  0x30   : > { %455 = vst.msk [vmem:[#allocation3] sm:$0xff] %vm438_vm0, %v3981_v1  ;;  %456 = vst.msk [vmem:[#allocation3 + $0x8] sm:$0xff] %vm438_vm0, %v3981_v1 }
  0x31   : > { %457 = vst.msk [vmem:[#allocation3 + $0x10] sm:$0xff] %vm438_vm0, %v3981_v1  ;;  %458 = vst.msk [vmem:[#allocation3 + $0x18] sm:$0xff] %vm438_vm0, %v3981_v1 }
  0x32   : > { %459 = vst.msk [vmem:[#allocation3 + $0x20] sm:$0xff] %vm438_vm0, %v3981_v1  ;;  %460 = vst.msk [vmem:[#allocation3 + $0x28] sm:$0xff] %vm438_vm0, %v3981_v1 }
  0x33   : > { %461 = vst.msk [vmem:[#allocation3 + $0x30] sm:$0xff] %vm438_vm0, %v3981_v1  ;;  %462 = vst.msk [vmem:[#allocation3 + $0x38] sm:$0xff] %vm438_vm0, %v3981_v1 }
  0x34   : > { %463 = vst.msk [vmem:[#allocation3 + $0x40] sm:$0xff] %vm438_vm0, %v3981_v1  ;;  %464 = vst.msk [vmem:[#allocation3 + $0x48] sm:$0xff] %vm438_vm0, %v3981_v1 }
  0x35   : > { %465 = vst.msk [vmem:[#allocation3 + $0x50] sm:$0xff] %vm438_vm0, %v3981_v1  ;;  %466 = vst.msk [vmem:[#allocation3 + $0x58] sm:$0xff] %vm438_vm0, %v3981_v1 }
  0x36   : > { %467 = vst.msk [vmem:[#allocation3 + $0x60] sm:$0xff] %vm438_vm0, %v3981_v1  ;;  %468 = vst.msk [vmem:[#allocation3 + $0x68] sm:$0xff] %vm438_vm0, %v3981_v1 }
  0x37   : > { %469 = vst.msk [vmem:[#allocation3 + $0x70] sm:$0xff] %vm438_vm0, %v3981_v1  ;;  %470 = vst.msk [vmem:[#allocation3 + $0x78] sm:$0xff] %vm438_vm0, %v3981_v1 }
  0x38   : > { %472 = vst.msk [vmem:[#allocation4] sm:$0xff] %vm471_vm1, %v3981_v1  ;;  %473 = vst.msk [vmem:[#allocation4 + $0x8] sm:$0xff] %vm471_vm1, %v3981_v1 }
  0x39   : > { %474 = vst.msk [vmem:[#allocation4 + $0x10] sm:$0xff] %vm471_vm1, %v3981_v1  ;;  %475 = vst.msk [vmem:[#allocation4 + $0x18] sm:$0xff] %vm471_vm1, %v3981_v1 }
  0x3a   : > { %476 = vst.msk [vmem:[#allocation4 + $0x20] sm:$0xff] %vm471_vm1, %v3981_v1  ;;  %477 = vst.msk [vmem:[#allocation4 + $0x28] sm:$0xff] %vm471_vm1, %v3981_v1 }
  0x3b   : > { %478 = vst.msk [vmem:[#allocation4 + $0x30] sm:$0xff] %vm471_vm1, %v3981_v1  ;;  %479 = vst.msk [vmem:[#allocation4 + $0x38] sm:$0xff] %vm471_vm1, %v3981_v1 }
  0x3c   : > { %480 = vst.msk [vmem:[#allocation4 + $0x40] sm:$0xff] %vm471_vm1, %v3981_v1  ;;  %481 = vst.msk [vmem:[#allocation4 + $0x48] sm:$0xff] %vm471_vm1, %v3981_v1 }
  0x3d   : > { %482 = vst.msk [vmem:[#allocation4 + $0x50] sm:$0xff] %vm471_vm1, %v3981_v1  ;;  %483 = vst.msk [vmem:[#allocation4 + $0x58] sm:$0xff] %vm471_vm1, %v3981_v1 }
  0x3e   : > { %484 = vst.msk [vmem:[#allocation4 + $0x60] sm:$0xff] %vm471_vm1, %v3981_v1  ;;  %485 = vst.msk [vmem:[#allocation4 + $0x68] sm:$0xff] %vm471_vm1, %v3981_v1 }
  0x3f   : > { %486 = vst.msk [vmem:[#allocation4 + $0x70] sm:$0xff] %vm471_vm1, %v3981_v1  ;;  %487 = vst.msk [vmem:[#allocation4 + $0x78] sm:$0xff] %vm471_vm1, %v3981_v1 }
  0x40 PF: > { %v4192_v2 = vld [vmem:[%s4123_s23 + $0x10] sm:$0xff]  ;;  %v4195_v3 = vld [vmem:[%s4123_s23] sm:$0xff]  ;;  %v5863_v4 = vmov 0   ;;  %v4202_v5 = vld [vmem:[%s4123_s23 + $0x18] sm:$0xff]  ;;  %v5865_v20 = vmov 1   ;;  %v5862_v22 = vmov 2  }
  0x41   : > { %3692 = vset.pattern.permute.xlu1 %v5863_v4  ;;  %3691 = vset.pattern.permute.xlu0 %v5863_v4  ;;  %v489_v6 = vld [vmem:[%s4123_s23 + $0x8] sm:$0xff]  ;;  %v492_v8 = vld [vmem:[%s4123_s23 + $0x20] sm:$0xff]  ;;  %v4212_v9 = vld [vmem:[%s4123_s23 + $0x38] sm:$0xff]  ;;  %p3114_p2 = scmp.ne.s32.totalorder %s3962_s16, 1 }
  0x42   : > { %539 = vperm.xlu1 %3692, %v4192_v2   ;;  %529 = vperm.xlu0 %3691, %v4195_v3   ;;  %v4207_v7 = vld [vmem:[%s4123_s23 + $0x28] sm:$0xff]  ;;  %v494_v10 = vld [vmem:[%s4123_s23 + $0x30] sm:$0xff]  ;;  %v496_v12 = vld [vmem:[%s4123_s23 + $0x40] sm:$0xff] }
  0x43   : > { %v4217_v11 = vld [vmem:[%s4123_s23 + $0x48] sm:$0xff]  ;;  %v4222_v13 = vld [vmem:[%s4123_s23 + $0x58] sm:$0xff]  ;;  %v4225_v14 = vld [vmem:[%s4123_s23 + $0x50] sm:$0xff] }
  0x44   : > { %v4230_v15 = vld [vmem:[%s4123_s23 + $0x68] sm:$0xff]  ;;  %v500_v16 = vld [vmem:[%s4123_s23 + $0x60] sm:$0xff]  ;;  %v4235_v17 = vld [vmem:[%s4123_s23 + $0x78] sm:$0xff] }
  0x45   : > { %v502_v18 = vld [vmem:[%s4123_s23 + $0x70] sm:$0xff]  ;;  %v512_v19 = vld [vmem:[%s4128_s29 + $0x40] sm:$0xff]  ;;  %v513_v21 = vld [vmem:[%s4128_s29 + $0x48] sm:$0xff] }
  0x46   : > { %544 = vperm.xlu1 %3692, %v4202_v5   ;;  %534 = vperm.xlu0 %3691, %v489_v6   ;;  %v504_v23 = vld [vmem:[%s4128_s29] sm:$0xff]  ;;  %v4247_v24 = vld [vmem:[%s4128_s29 + $0x10] sm:$0xff]  ;;  %v4251_v25 = vld [vmem:[%s4128_s29 + $0x18] sm:$0xff] }
  0x47   : > { %v4258_v26 = vld [vmem:[%s4128_s29 + $0x60] sm:$0xff]  ;;  %v4263_v27 = vld [vmem:[%s4128_s29 + $0x28] sm:$0xff]  ;;  %v4269_v28 = vld [vmem:[%s4128_s29 + $0x70] sm:$0xff] }
  0x48   : > { %v4274_v29 = vld [vmem:[%s4128_s29 + $0x38] sm:$0xff]  ;;  %v505_v30 = vld [vmem:[%s4128_s29 + $0x8] sm:$0xff]  ;;  %v514_v33 = vld [vmem:[%s4128_s29 + $0x50] sm:$0xff] }
  0x49   : > { %v515_v38 = vld [vmem:[%s4128_s29 + $0x58] sm:$0xff]  ;;  %v4323_v43 = vld [vmem:[%s4128_s29 + $0x68] sm:$0xff]  ;;  %v508_v57 = vld [vmem:[%s4128_s29 + $0x20] sm:$0xff] }
  0x4a   : > { %554 = vperm.xlu1 %3692, %v4207_v7   ;;  %549 = vperm.xlu0 %3691, %v492_v8   ;;  %v4337_v48 = vld [vmem:[%s4128_s29 + $0x78] sm:$0xff] }
  0x4e   : > { %564 = vperm.xlu1 %3692, %v4212_v9   ;;  %559 = vperm.xlu0 %3691, %v494_v10  }
  0x52   : > { %574 = vperm.xlu1 %3692, %v4217_v11   ;;  %569 = vperm.xlu0 %3691, %v496_v12  }
  0x56   : > { %584 = vperm.xlu1 %3692, %v4222_v13   ;;  %579 = vperm.xlu0 %3691, %v4225_v14  }
  0x5a   : > { %594 = vperm.xlu1 %3692, %v4230_v15   ;;  %589 = vperm.xlu0 %3691, %v500_v16  }
  0x5e   : > { %604 = vperm.xlu1 %3692, %v4235_v17   ;;  %599 = vperm.xlu0 %3691, %v502_v18  }
  0x62   : > { %3693 = vset.pattern.permute.xlu1 %v5865_v20  ;;  %1016 = vperm.xlu0 %3691, %v512_v19  }
  0x63   : > { %632 = vperm.xlu1 %3693, %v489_v6  }
  0x66   : > { %1020 = vperm.xlu0 %3691, %v513_v21  }
  0x67   : > { %636 = vperm.xlu1 %3693, %v4192_v2  }
  0x6a   : > { %3700 = vset.pattern.permute.xlu0 %v5862_v22 }
  0x6b   : > { %644 = vperm.xlu1 %3693, %v492_v8   ;;  %716 = vperm.xlu0 %3700, %v489_v6  }
  0x6f   : > { %652 = vperm.xlu1 %3693, %v494_v10   ;;  %728 = vperm.xlu0 %3700, %v492_v8  }
  0x73   : > { %660 = vperm.xlu1 %3693, %v496_v12   ;;  %736 = vperm.xlu0 %3700, %v494_v10  }
  0x77   : > { %668 = vperm.xlu1 %3693, %v4225_v14   ;;  %744 = vperm.xlu0 %3700, %v496_v12   ;;  %v4401_v12 = vld [vmem:[%s4133_s13 + $0x1] ss:$0 sm:$0xff] }
  0x7b   : > { %676 = vperm.xlu1 %3693, %v500_v16   ;;  %793 = vperm.xlu0 %3700, %v504_v23  }
  0x7f   : > { %684 = vperm.xlu1 %3693, %v502_v18   ;;  %803 = vperm.xlu0 %3700, %v4247_v24  }
  0x83   : > { %3694 = vset.pattern.permute.xlu1 %v5862_v22  ;;  %808 = vperm.xlu0 %3700, %v4251_v25  }
  0x84   : > { %712 = vperm.xlu1 %3694, %v4195_v3  }
  0x87   : > { %760 = vperm.xlu0 %3700, %v500_v16  }
  0x88   : > { %720 = vperm.xlu1 %3694, %v4192_v2  }
  0x8b   : > { %853 = vperm.xlu0 %3700, %v4258_v26  }
  0x8c   : > { %724 = vperm.xlu1 %3694, %v4202_v5  }
  0x8f   : > { %818 = vperm.xlu0 %3700, %v4263_v27  }
  0x90   : > { %732 = vperm.xlu1 %3694, %v4207_v7  }
  0x93   : > { %768 = vperm.xlu0 %3700, %v502_v18  }
  0x94   : > { %740 = vperm.xlu1 %3694, %v4212_v9  }
  0x97   : > { %863 = vperm.xlu0 %3700, %v4269_v28  }
  0x98   : > { %748 = vperm.xlu1 %3694, %v4217_v11  }
  0x9b   : > { %828 = vperm.xlu0 %3700, %v4274_v29  }
  0x9c   : > { %833 = vperm.xlu1 %3694, %v512_v19  }
  0x9f   : > { %3716 = vset.pattern.permute.xlu0 %v5865_v20 }
  0xa0   : > { %3695 = vset.pattern.permute.xlu1 %v5865_v20  ;;  %628 = vperm.xlu0 %3716, %v4195_v3  }
  0xa1   : > { %920 = vperm.xlu1 %3695, %v512_v19  }
  0xa4   : > { %640 = vperm.xlu0 %3716, %v4202_v5  }
  0xa5   : > { %3696 = vset.pattern.permute.xlu1 %v5863_v4 }
  0xa6   : > { %984 = vperm.xlu1 %3696, %v504_v23  }
  0xa8   : > { %648 = vperm.xlu0 %3716, %v4207_v7  }
  0xaa   : > { %3697 = vset.pattern.permute.xlu1 %v5862_v22 }
  0xab   : > { %798 = vperm.xlu1 %3697, %v505_v30  }
  0xac   : > { %656 = vperm.xlu0 %3716, %v4212_v9  }
  0xaf   : > { %838 = vperm.xlu1 %3697, %v513_v21  }
  0xb0   : > { %664 = vperm.xlu0 %3716, %v4217_v11   ;;  %v4398_v11 = vld [vmem:[%s4133_s13] ss:$0 sm:$0xff] }
  0xb1   : > { %5933 = vst [vmem:[#allocation23_spill] sm:$0xff] %v4398_v11 }
  0xb3   : > { %3698 = vset.pattern.permute.xlu1 %v5865_v20 }
  0xb4   : > { %924 = vperm.xlu1 %3698, %v513_v21   ;;  %672 = vperm.xlu0 %3716, %v4222_v13  }
  0xb8   : > { %3699 = vset.pattern.permute.xlu1 %v5863_v4  ;;  %680 = vperm.xlu0 %3716, %v4230_v15  }
  0xb9   : > { %988 = vperm.xlu1 %3699, %v505_v30  }
  0xbc   : > { %688 = vperm.xlu0 %3716, %v4235_v17  }
  0xbd   : > { %3701 = vset.pattern.permute.xlu1 %v5862_v22 }
  0xbe   : > { %752 = vperm.xlu1 %3701, %v4225_v14  }
  0xc0   : > { %888 = vperm.xlu0 %3716, %v504_v23  }
  0xc1   : > { %v4294_v31 = vpop.permute.xlu1 %539  ;;  %v4296_v32 = vpop.permute.xlu0 %529 }
  0xc2   : > { %756 = vperm.xlu1 %3701, %v4222_v13  }
  0xc4   : > { %892 = vperm.xlu0 %3716, %v505_v30  }
  0xc5   : > { %v4300_v34 = vpop.permute.xlu1 %544  ;;  %v4302_v35 = vpop.permute.xlu0 %534 }
  0xc6   : > { %843 = vperm.xlu1 %3701, %v514_v33  }
  0xc8   : > { %928 = vperm.xlu0 %3716, %v514_v33  }
  0xc9   : > { %v4304_v36 = vpop.permute.xlu1 %554  ;;  %v4306_v37 = vpop.permute.xlu0 %549 }
  0xca   : > { %3702 = vset.pattern.permute.xlu1 %v5865_v20  ;;  %v4406_v13 = vsub.f32 %v4398_v11, %v4304_v36 }
  0xcb   : > { %896 = vperm.xlu1 %3702, %v4247_v24  }
  0xcc   : > { %932 = vperm.xlu0 %3716, %v515_v38   ;;  %5934 = vst [vmem:[#allocation24_spill] sm:$0xff] %v4406_v13 }
  0xcd   : > { %v4311_v39 = vpop.permute.xlu1 %564  ;;  %v4313_v40 = vpop.permute.xlu0 %559 }
  0xce   : > { %5927 = vst [vmem:[#allocation17_spill] sm:$0xff] %v4313_v40 }
  0xcf   : > { %3703 = vset.pattern.permute.xlu1 %v5863_v4 }
  0xd0   : > { %992 = vperm.xlu1 %3703, %v4247_v24   ;;  %936 = vperm.xlu0 %3716, %v4258_v26   ;;  %v4429_v24 = vld [vmem:[%s4133_s13 + $0x2] ss:$0 sm:$0xff] }
  0xd1   : > { %v4318_v41 = vpop.permute.xlu1 %574  ;;  %v4320_v42 = vpop.permute.xlu0 %569 }
  0xd4   : > { %1024 = vperm.xlu1 %3703, %v514_v33   ;;  %940 = vperm.xlu0 %3716, %v4323_v43  }
  0xd5   : > { %v4326_v44 = vpop.permute.xlu1 %584  ;;  %v4328_v45 = vpop.permute.xlu0 %579 }
  0xd8   : > { %3704 = vset.pattern.permute.xlu1 %v5862_v22  ;;  %944 = vperm.xlu0 %3716, %v4269_v28  }
  0xd9   : > { %v4332_v46 = vpop.permute.xlu1 %594  ;;  %848 = vperm.xlu1 %3704, %v515_v38   ;;  %v4334_v47 = vpop.permute.xlu0 %589 }
  0xdc   : > { %948 = vperm.xlu0 %3716, %v4337_v48  }
  0xdd   : > { %v4340_v49 = vpop.permute.xlu1 %604  ;;  %3705 = vset.pattern.permute.xlu1 %v5865_v20  ;;  %v600_v50 = vpop.permute.xlu0 %599 }
  0xde   : > { %900 = vperm.xlu1 %3705, %v4251_v25   ;;  %v4409_v14 = vsub.f32 %v4398_v11, %v600_v50 }
  0xe0   : > { %3720 = vset.pattern.permute.xlu0 %v5863_v4  ;;  %5935 = vst [vmem:[#allocation25_spill] sm:$0xff] %v4409_v14  ;;  %v1429_v21 = vmul.f32 %v4409_v14, %v4409_v14 }
  0xe1   : > { %v4345_v51 = vpop.permute.xlu0 %1016 }
  0xe2   : > { %v4347_v52 = vpop.permute.xlu1 %632  ;;  %3706 = vset.pattern.permute.xlu1 %v5863_v4 }
  0xe3   : > { %996 = vperm.xlu1 %3706, %v4251_v25  }
  0xe5   : > { %v4351_v53 = vpop.permute.xlu0 %1020 }
  0xe6   : > { %v4353_v54 = vpop.permute.xlu1 %636 }
  0xe7   : > { %1028 = vperm.xlu1 %3706, %v515_v38  }
  0xea   : > { %v4355_v55 = vpop.permute.xlu1 %644  ;;  %v4357_v56 = vpop.permute.xlu0 %716 }
  0xeb   : > { %3707 = vset.pattern.permute.xlu1 %v5862_v22 }
  0xec   : > { %764 = vperm.xlu1 %3707, %v4230_v15  }
  0xee   : > { %v4362_v58 = vpop.permute.xlu1 %652  ;;  %v4364_v59 = vpop.permute.xlu0 %728 }
  0xef   : > { %5928 = vst [vmem:[#allocation18_spill] sm:$0xff] %v4362_v58  ;;  %v1420_v58 = vmul.f32 %v4406_v13, %v4406_v13 }
  0xf0   : > { %813 = vperm.xlu1 %3707, %v508_v57  }
  0xf2   : > { %v4366_v60 = vpop.permute.xlu1 %660  ;;  %v4368_v61 = vpop.permute.xlu0 %736 }
  0xf3   : > { %5929 = vst [vmem:[#allocation19_spill] sm:$0xff] %v4368_v61 }
  0xf4   : > { %3708 = vset.pattern.permute.xlu1 %v5865_v20 }
  0xf5   : > { %904 = vperm.xlu1 %3708, %v508_v57  }
  0xf6   : > { %v4371_v62 = vpop.permute.xlu1 %668  ;;  %v745_v63 = vpop.permute.xlu0 %744 }
  0xf9   : > { %3709 = vset.pattern.permute.xlu1 %v5863_v4 }
  0xfa   : > { %v4374_v0 = vpop.permute.xlu1 %676  ;;  %1000 = vperm.xlu1 %3709, %v508_v57   ;;  %v4376_v1 = vpop.permute.xlu0 %793 }
  0xfe   : > { %v685_v2 = vpop.permute.xlu1 %684  ;;  %1032 = vperm.xlu1 %3709, %v4258_v26   ;;  %v4379_v3 = vpop.permute.xlu0 %803 }
  0xff   : > { %v4412_v15 = vsub.f32 %v4401_v12, %v685_v2  ;;  %v510_v2 = vld [vmem:[%s4128_s29 + $0x30] sm:$0xff] }
 0x101   : > { %5936 = vst [vmem:[#allocation26_spill] sm:$0xff] %v4412_v15  ;;  %v1445_v23 = vmul.f32 %v4412_v15, %v4412_v15 }
 0x102   : > { %3710 = vset.pattern.permute.xlu1 %v5862_v22  ;;  %v4382_v5 = vpop.permute.xlu0 %808 }
 0x103   : > { %5930 = vst [vmem:[#allocation20_spill] sm:$0xff] %v4382_v5  ;;  %858 = vperm.xlu1 %3710, %v4323_v43   ;;  %v4385_v6 = vpop.permute.xlu1 %712  ;;  %v1461_v30 = vadd.f32 %v1445_v23, %v1429_v21  ;;  %v4457_v21 = vsub.f32 %v4398_v11, %v4311_v39  ;;  %v4477_v39 = vsub.f32 %v4398_v11, %v4294_v31 }
 0x104   : > { %v4497_v31 = vsub.f32 %v4401_v12, %v4366_v60 }
 0x105   : > { %5945 = vst [vmem:[#allocation35_spill] sm:$0xff] %v4457_v21  ;;  %v1422_v40 = vmul.f32 %v4457_v21, %v4457_v21 }
 0x106   : > { %v4387_v7 = vpop.permute.xlu0 %760 }
 0x107   : > { %5931 = vst [vmem:[#allocation21_spill] sm:$0xff] %v4387_v7  ;;  %3711 = vset.pattern.permute.xlu1 %v5865_v20  ;;  %v4390_v8 = vpop.permute.xlu1 %720 }
 0x108   : > { %908 = vperm.xlu1 %3711, %v4263_v27  }
 0x10a   : > { %v4393_v9 = vpop.permute.xlu0 %853 }
 0x10b   : > { %5932 = vst [vmem:[#allocation22_spill] sm:$0xff] %v4393_v9  ;;  %v4395_v10 = vpop.permute.xlu1 %724 }
 0x10c   : > { %3712 = vset.pattern.permute.xlu1 %v5863_v4  ;;  %v4481_v4 = vsub.f32 %v4398_v11, %v4296_v32 }
 0x10d   : > { %1004 = vperm.xlu1 %3712, %v4263_v27  }
 0x10e   : > { %v4415_v16 = vpop.permute.xlu0 %818 }
 0x10f   : > { %5937 = vst [vmem:[#allocation27_spill] sm:$0xff] %v4415_v16  ;;  %v4419_v18 = vmul.f32 %v4415_v16, %v4406_v13  ;;  %v4421_v19 = vpop.permute.xlu1 %732 }
 0x110   : > { %5939 = vst [vmem:[#allocation29_spill] sm:$0xff] %v4421_v19  ;;  %v4548_v19 = vsub.f32 %v4429_v24, %v4357_v56  ;;  %v4564_v56 = vsub.f32 %v4398_v11, %v4326_v44 }
 0x111   : > { %5938 = vst [vmem:[#allocation28_spill] sm:$0xff] %v4419_v18  ;;  %1036 = vperm.xlu1 %3712, %v4323_v43  }
 0x112   : > { %v769_v25 = vpop.permute.xlu0 %768  ;;  %5955 = vst [vmem:[#allocation44_spill] sm:$0xff] %v4548_v19  ;;  %5957 = vst [vmem:[#allocation46_spill] sm:$0xff] %v4564_v56 }
 0x113   : > { %v4432_v26 = vsub.f32 %v4429_v24, %v769_v25  ;;  %v4434_v27 = vpop.permute.xlu1 %740 }
 0x114   : > { %5941 = vst [vmem:[#allocation31_spill] sm:$0xff] %v4434_v27  ;;  %v4526_v27 = vsub.f32 %v4401_v12, %v4347_v52 }
 0x115   : > { %5940 = vst [vmem:[#allocation30_spill] sm:$0xff] %v4432_v26  ;;  %v1477_v33 = vmul.f32 %v4432_v26, %v4432_v26  ;;  %3713 = vset.pattern.permute.xlu1 %v5862_v22 }
 0x116   : > { %772 = vperm.xlu1 %3713, %v4235_v17   ;;  %v4440_v36 = vpop.permute.xlu0 %863  ;;  %5953 = vst [vmem:[#allocation42_spill] sm:$0xff] %v4526_v27 }
 0x117   : > { %v4442_v38 = vadd.f32 %v1477_v33, %v1461_v30  ;;  %v4446_v43 = vmul.f32 %v4440_v36, %v4409_v14  ;;  %v4450_v50 = vmul.f32 %v4440_v36, %v4432_v26  ;;  %v4452_v57 = vpop.permute.xlu1 %748  ;;  %v4471_v33 = vsub.f32 %v4429_v24, %v745_v63 }
 0x118   : > { %v4493_v63 = vsub.f32 %v4398_v11, %v4320_v42  ;;  %v4518_v14 = vmul.f32 %v4477_v39, %v4477_v39 }
 0x119   : > { %5942 = vst [vmem:[#allocation32_spill] sm:$0xff] %v4442_v38  ;;  %5943 = vst [vmem:[#allocation33_spill] sm:$0xff] %v4446_v43  ;;  %v1055_v18 = vmul.f32 %v4345_v51, %v4471_v33 }
 0x11a   : > { %5944 = vst [vmem:[#allocation34_spill] sm:$0xff] %v4450_v50  ;;  %823 = vperm.xlu1 %3713, %v510_v2   ;;  %v4459_v17 = vpop.permute.xlu0 %828  ;;  %v4503_v50 = vsub.f32 %v4398_v11, %v4306_v37  ;;  %v4522_v37 = vmul.f32 %v4481_v4, %v4481_v4 }
 0x11b   : > { %5946 = vst [vmem:[#allocation36_spill] sm:$0xff] %v4459_v17  ;;  %v4463_v23 = vmul.f32 %v4459_v17, %v4457_v21  ;;  %v4465_v25 = vpop.permute.xlu1 %833  ;;  %v1423_v21 = vmul.f32 %v4493_v63, %v4493_v63 }
 0x11c   : > { %5950 = vst [vmem:[#allocation40_spill] sm:$0xff] %v4503_v50  ;;  %v879_v42 = vmul.f32 %v4465_v25, %v4497_v31  ;;  %v1071_v60 = vmul.f32 %v4465_v25, %v4493_v63  ;;  %v4542_v52 = vmul.f32 %v4503_v50, %v4503_v50  ;;  %v4568_v50 = vsub.f32 %v4398_v11, %v4328_v45 }
 0x11d   : > { %5947 = vst [vmem:[#allocation37_spill] sm:$0xff] %v4463_v23  ;;  %v4485_v23 = vsub.f32 %v4398_v11, %v4300_v34  ;;  %v5951_v34 = vmov 0   ;;  %v4584_v45 = vsub.f32 %v4398_v11, %v4332_v46  ;;  %v5964_v46 = vmov 2  }
 0x11e   : > { %3714 = vset.pattern.permute.xlu1 %v5865_v20  ;;  %v4489_v20 = vsub.f32 %v4398_v11, %v4302_v35  ;;  %v4510_v35 = vsub.f32 %v4398_v11, %v4318_v41 }
 0x11f   : > { %912 = vperm.xlu1 %3714, %v510_v2   ;;  %v4468_v30 = vpop.permute.xlu0 %628  ;;  %5948 = vst [vmem:[#allocation38_spill] sm:$0xff] %v4485_v23  ;;  %v4532_v38 = vmul.f32 %v4485_v23, %v4485_v23  ;;  %5960 = vst [vmem:[#allocation49_spill] sm:$0xff] %v4584_v45 }
 0x120   : > { %v4473_v22 = vpop.permute.xlu1 %920  ;;  %5949 = vst [vmem:[#allocation39_spill] sm:$0xff] %v4489_v20  ;;  %v4552_v7 = vmul.f32 %v4510_v35, %v4510_v35 }
 0x121   : > { %v959_v32 = vmul.f32 %v4473_v22, %v4471_v33  ;;  %5954 = vst [vmem:[#allocation43_spill] sm:$0xff] %v4532_v38  ;;  %v4588_v38 = vsub.f32 %v4401_v12, %v4353_v54  ;;  %v4604_v54 = vsub.f32 %v4398_v11, %v4340_v49 }
 0x123   : > { %3715 = vset.pattern.permute.xlu1 %v5951_v34  ;;  %v4506_v43 = vpop.permute.xlu0 %640  ;;  %v975_v61 = vsub.f32 %v879_v42, %v959_v32  ;;  %v1087_v32 = vsub.f32 %v1055_v18, %v1071_v60  ;;  %v1103_v42 = vmul.f32 %v4473_v22, %v4493_v63  ;;  %v1432_v18 = vmul.f32 %v4526_v27, %v4526_v27 }
 0x124   : > { %5952 = vst [vmem:[#allocation41_spill] sm:$0xff] %v4506_v43  ;;  %1008 = vperm.xlu1 %3715, %v510_v2   ;;  %v1416_v2 = vmul.f32 %v4489_v20, %v4489_v20  ;;  %v1464_v27 = vmul.f32 %v4548_v19, %v4548_v19  ;;  %5965 = vst [vmem:[#allocation53_spill] sm:$0xff] %v4604_v54  ;;  %v4610_v19 = vsub.f32 %v4401_v12, %v4371_v62 }
 0x125   : > { %v4528_v41 = vpop.permute.xlu1 %984  ;;  %v1151_v60 = vmul.f32 %v975_v61, %v975_v61  ;;  %v4592_v61 = vsub.f32 %v4401_v12, %v4355_v55  ;;  %v1167_v20 = vmul.f32 %v1087_v32, %v1087_v32  ;;  %v1439_v55 = vmul.f32 %v4497_v31, %v4497_v31 }
 0x126   : > { %v4627_v62 = vmul.f32 %v4564_v56, %v4564_v56 }
 0x127   : > { %v649_v9 = vpop.permute.xlu0 %648  ;;  %5961 = vst [vmem:[#allocation50_spill] sm:$0xff] %v4592_v61 }
 0x128   : > { %v4557_v13 = vsub.f32 %v4401_v12, %v649_v9  ;;  %1040 = vperm.xlu1 %3715, %v4269_v28   ;;  %v1119_v9 = vmul.f32 %v4345_v51, %v4497_v31  ;;  %5967 = vst [vmem:[#allocation55_spill] sm:$0xff] %v4627_v62 }
 0x12a   : > { %5956 = vst [vmem:[#allocation45_spill] sm:$0xff] %v4557_v13  ;;  %v1436_v28 = vmul.f32 %v4557_v13, %v4557_v13  ;;  %v4576_v26 = vpop.permute.xlu1 %798  ;;  %v4580_v44 = vmul.f32 %v4415_v16, %v4557_v13  ;;  %v1135_v43 = vsub.f32 %v1103_v42, %v1119_v9  ;;  %v1448_v16 = vadd.f32 %v1432_v18, %v1416_v2 }
 0x12b   : > { %5958 = vst [vmem:[#allocation47_spill] sm:$0xff] %v4576_v26  ;;  %v657_v26 = vpop.permute.xlu0 %656  ;;  %v1433_v42 = vmul.f32 %v4588_v38, %v4588_v38 }
 0x12c   : > { %5959 = vst [vmem:[#allocation48_spill] sm:$0xff] %v4580_v44  ;;  %v4596_v13 = vadd.f32 %v1436_v28, %v1420_v58  ;;  %v4599_v44 = vsub.f32 %v4401_v12, %v657_v26  ;;  %3717 = vset.pattern.permute.xlu1 %v5964_v46  ;;  %v4615_v58 = vsub.f32 %v4429_v24, %v4390_v8 }
 0x12d   : > { %868 = vperm.xlu1 %3717, %v4337_v48   ;;  %v1183_v26 = vadd.f32 %v1167_v20, %v1151_v60  ;;  %v1435_v8 = vmul.f32 %v4592_v61, %v4592_v61  ;;  %v1471_v20 = vmul.f32 %v4471_v33, %v4471_v33  ;;  %v1480_v9 = vadd.f32 %v1464_v27, %v1448_v16 }
 0x12e   : > { %5962 = vst [vmem:[#allocation51_spill] sm:$0xff] %v4596_v13  ;;  %5963 = vst [vmem:[#allocation52_spill] sm:$0xff] %v4599_v44  ;;  %v1438_v32 = vmul.f32 %v4599_v44, %v4599_v44  ;;  %v4619_v49 = vpop.permute.xlu1 %838  ;;  %v4623_v2 = vmul.f32 %v4459_v17, %v4599_v44  ;;  %v4637_v60 = vsub.f32 %v4429_v24, %v4364_v59  ;;  %v5971_v61 = vmov 1  }
 0x12f   : > { %v665_v18 = vpop.permute.xlu0 %664  ;;  %v1199_v28 = vmul.f32 %v1135_v43, %v1135_v43  ;;  %v4645_v44 = vsub.f32 %v4398_v11, %v4334_v47  ;;  %v1455_v17 = vadd.f32 %v1439_v55, %v1423_v21  ;;  %v1441_v13 = vmul.f32 %v4610_v19, %v4610_v19 }
 0x130   : > { %5966 = vst [vmem:[#allocation54_spill] sm:$0xff] %v4623_v2  ;;  %5968 = vst [vmem:[#allocation56_spill] sm:$0xff] %v4637_v60  ;;  %v4639_v46 = vadd.f32 %v1438_v32, %v1422_v40  ;;  %v1425_v2 = vmul.f32 %v4568_v50, %v4568_v50  ;;  %v1428_v59 = vmul.f32 %v4584_v45, %v4584_v45  ;;  %3721 = vrsqrt.f32 %v1480_v9 }
 0x131   : > { %5970 = vst [vmem:[#allocation58_spill] sm:$0xff] %v4645_v44  ;;  %3718 = vset.pattern.permute.xlu1 %v5971_v61  ;;  %v4654_v40 = vmul.f32 %v4604_v54, %v4604_v54  ;;  %v1465_v16 = vmul.f32 %v4615_v58, %v4615_v58  ;;  %v4658_v27 = vadd.f32 %v1199_v28, %v1183_v26 }
 0x132   : > { %5969 = vst [vmem:[#allocation57_spill] sm:$0xff] %v4639_v46  ;;  %916 = vperm.xlu1 %3718, %v4274_v29   ;;  %v1343_v47 = vmul.f32 %v4345_v51, %v4493_v63  ;;  %v4665_v43 = vmul.f32 %v4351_v53, %v4510_v35  ;;  %v1449_v21 = vadd.f32 %v1433_v42, %v4518_v14 }
 0x133   : > { %v1487_v61 = vadd.f32 %v1471_v20, %v1455_v17  ;;  %v4668_v55 = vpop.permute.xlu1 %924  ;;  %v4670_v32 = vpop.permute.xlu0 %672  ;;  %v4673_v54 = vadd.f32 %v1435_v8, %v4542_v52  ;;  %v4677_v26 = vmul.f32 %v4637_v60, %v4637_v60  ;;  %v775_v51 = vsub.f32 %v4429_v24, %v4385_v6 }
 0x134   : > { %v4681_v63 = vadd.f32 %v1441_v13, %v1425_v2  ;;  %v4685_v14 = vsub.f32 %v4401_v12, %v4374_v0  ;;  %v4689_v17 = vsub.f32 %v4429_v24, %v4452_v57  ;;  %v4692_v52 = vsub.f32 %v4401_v12, %v665_v18 }
 0x135   : > { %5972 = vst [vmem:[#allocation59_spill] sm:$0xff] %v4673_v54  ;;  %5973 = vst [vmem:[#allocation60_spill] sm:$0xff] %v4677_v26  ;;  %v1063_v42 = vmul.f32 %v4376_v1, %v4481_v4  ;;  %v1481_v8 = vadd.f32 %v1465_v16, %v1449_v21  ;;  %v4698_v6 = vsub.f32 %v4401_v12, %v4468_v30  ;;  %3723 = vrsqrt.f32 %v4658_v27 }
 0x136   : > { %5974 = vst [vmem:[#allocation61_spill] sm:$0xff] %v4685_v14  ;;  %3719 = vset.pattern.permute.xlu1 %v5951_v34  ;;  %3725 = vrsqrt.f32 %v1487_v61  ;;  %v4704_v0 = vmul.f32 %v4379_v3, %v4588_v38  ;;  %v4708_v13 = vmul.f32 %v4379_v3, %v4477_v39  ;;  %v960_v57 = vmul.f32 %v4668_v55, %v4689_v17 }
 0x137   : > { %1012 = vperm.xlu1 %3719, %v4274_v29   ;;  %v681_v30 = vpop.permute.xlu0 %680  ;;  %v4715_v34 = vmul.f32 %v4382_v5, %v4485_v23  ;;  %v1463_v2 = vmul.f32 %v775_v51, %v775_v51  ;;  %v4719_v20 = vsub.f32 %v4429_v24, %v4395_v10  ;;  %v4728_v28 = vmul.f32 %v4379_v3, %v4615_v58 }
 0x138   : > { %v4722_v18 = vsub.f32 %v4401_v12, %v681_v30  ;;  %v4724_v9 = vpop.permute.xlu1 %988  ;;  %v1072_v29 = vmul.f32 %v4619_v49, %v4510_v35  ;;  %v880_v16 = vmul.f32 %v4619_v49, %v4692_v52  ;;  %v4735_v21 = vmul.f32 %v4376_v1, %v775_v51 }
 0x139   : > { %5975 = vst [vmem:[#allocation62_spill] sm:$0xff] %v4715_v34  ;;  %5976 = vst [vmem:[#allocation63_spill] sm:$0xff] %v4719_v20  ;;  %3727 = vrsqrt.f32 %v1481_v8  ;;  %v1431_v10 = vmul.f32 %v4698_v6, %v4698_v6  ;;  %v1359_v61 = vmul.f32 %v4473_v22, %v4497_v31  ;;  %v1047_v30 = vmul.f32 %v4528_v41, %v775_v51 }
 0x13a   : > { %5977 = vst [vmem:[#allocation64_spill] sm:$0xff] %v4722_v18  ;;  %5978 = vst [vmem:[#allocation65_spill] sm:$0xff] %v4728_v28  ;;  %v1444_v3 = vmul.f32 %v4722_v18, %v4722_v18  ;;  %v1056_v46 = vmul.f32 %v4351_v53, %v4689_v17  ;;  %v1440_v45 = vmul.f32 %v4692_v52, %v4692_v52  ;;  %v4768_v54 = vpop.eup %3721  ;;  %vm1281_vm2 = vcmp.eq.f32.partialorder %v4658_v27, inf }
 0x13b   : > { %v976_v11 = vsub.f32 %v880_v16, %v960_v57  ;;  %1044 = vperm.xlu1 %3719, %v4337_v48   ;;  %v689_v8 = vpop.permute.xlu0 %688  ;;  %v4751_v60 = vmul.f32 %v4719_v20, %v4719_v20  ;;  %v1104_v22 = vmul.f32 %v4668_v55, %v4510_v35  ;;  %v4762_v14 = vmul.f32 %v4440_v36, %v4412_v15 }
 0x13c   : > { %v4755_v31 = vadd.f32 %v1444_v3, %v1428_v59  ;;  %v4758_v18 = vsub.f32 %v4401_v12, %v689_v8  ;;  %v1391_v48 = vmul.f32 %v4465_v25, %v4471_v33  ;;  %v1088_v57 = vsub.f32 %v1056_v46, %v1072_v29 }
 0x13d   : > { %v753_v16 = vpop.permute.xlu1 %752  ;;  %v871_v26 = vmul.f32 %v4376_v1, %v4698_v6  ;;  %v1447_v35 = vadd.f32 %v1431_v10, %v4522_v37  ;;  %v1375_v59 = vadd.f32 %v1359_v61, %v1343_v47  ;;  %v1120_v3 = vmul.f32 %v4351_v53, %v4692_v52 }
 0x13e   : > { %5979 = vst [vmem:[#allocation66_spill] sm:$0xff] %v4755_v31  ;;  %5980 = vst [vmem:[#allocation67_spill] sm:$0xff] %v4758_v18  ;;  %v1446_v36 = vmul.f32 %v4758_v18, %v4758_v18  ;;  %v1079_v8 = vsub.f32 %v1047_v30, %v1063_v42  ;;  %v1111_v25 = vmul.f32 %v4528_v41, %v4698_v6  ;;  %v5982_v42 = vld [vmem:[#allocation41_spill] sm:$0xff]  ;;  %v5984_v18 = vld [vmem:[#allocation39_spill] sm:$0xff]  ;;  %vm1283_vm3 = vcmp.eq.f32.partialorder %v4658_v27, 0.0 }
 0x13f   : > { %v1456_v33 = vadd.f32 %v1440_v45, %v4552_v7  ;;  %v1152_v46 = vmul.f32 %v976_v11, %v976_v11  ;;  %v889_v29 = vpop.permute.xlu0 %888  ;;  %v3724_v1 = vpop.eup %3723  ;;  %v1136_v15 = vsub.f32 %v1104_v22, %v1120_v3  ;;  %v1472_v10 = vmul.f32 %v4689_v17, %v4689_v17  ;;  %v5983_v7 = vld [vmem:[#allocation44_spill] sm:$0xff] }
 0x140   : > { %v4779_v31 = vadd.f32 %v1446_v36, %v4654_v40  ;;  %v951_v37 = vmul.f32 %v889_v29, %v775_v51  ;;  %v1095_v47 = vmul.f32 %v889_v29, %v4481_v4  ;;  %v3726_v53 = vpop.eup %3725  ;;  %v4786_v61 = vsub.f32 %v4401_v12, %v5982_v42 }
 0x141   : > { %v1168_v30 = vmul.f32 %v1088_v57, %v1088_v57  ;;  %v1048_v11 = vmul.f32 %v4724_v9, %v5983_v7  ;;  %v4790_v45 = vpop.permute.xlu1 %756  ;;  %v1479_v22 = vadd.f32 %v1463_v2, %v1447_v35  ;;  %v1407_v51 = vadd.f32 %v1391_v48, %v1375_v59  ;;  %v5986_v57 = vld [vmem:[#allocation42_spill] sm:$0xff] }
 0x142   : > { %5981 = vst [vmem:[#allocation68_spill] sm:$0xff] %v4779_v31  ;;  %v967_v40 = vsub.f32 %v871_v26, %v951_v37  ;;  %v1127_v3 = vsub.f32 %v1095_v47, %v1111_v25  ;;  %v1159_v36 = vmul.f32 %v1079_v8, %v1079_v8  ;;  %v5985_v31 = vld [vmem:[#allocation47_spill] sm:$0xff]  ;;  %v1280_v28 = vmul.f32 %v3724_v1, %v4658_v27 }
 0x143   : > { %v1064_v44 = vmul.f32 %v5985_v31, %v5984_v18  ;;  %v1184_v34 = vadd.f32 %v1168_v30, %v1152_v46  ;;  %v893_v56 = vpop.permute.xlu0 %892  ;;  %v4795_v42 = vpop.eup %3727  ;;  %v872_v23 = vmul.f32 %v5985_v31, %v5986_v57  ;;  %v1488_v62 = vadd.f32 %v1472_v10, %v1456_v33 }
 0x144   : > { %v1200_v5 = vmul.f32 %v1136_v15, %v1136_v15  ;;  %v1143_v20 = vmul.f32 %v967_v40, %v967_v40  ;;  %v1112_v26 = vmul.f32 %v4724_v9, %v5986_v57  ;;  %v952_v48 = vmul.f32 %v893_v56, %v5983_v7 }
 0x145   : > { %v1080_v2 = vsub.f32 %v1048_v11, %v1064_v44  ;;  %v1096_v35 = vmul.f32 %v893_v56, %v5984_v18  ;;  %v4803_v59 = vpop.permute.xlu1 %843  ;;  %v1434_v8 = vmul.f32 %v4786_v61, %v4786_v61  ;;  %v1191_v46 = vmul.f32 %v1127_v3, %v1127_v3 }
 0x146   : > { %v1175_v25 = vadd.f32 %v1159_v36, %v1143_v20  ;;  %v4808_v33 = vadd.f32 %v1200_v5, %v1184_v34  ;;  %v968_v15 = vsub.f32 %v872_v23, %v952_v48  ;;  %v1282_v37 = vsel %vm1281_vm2, %v4658_v27, %v1280_v28  ;;  %v5987_v34 = vld [vmem:[#allocation43_spill] sm:$0xff] }
 0x147   : > { %v1128_v44 = vsub.f32 %v1096_v35, %v1112_v26  ;;  %v4810_v1 = vpop.permute.xlu0 %928  ;;  %v1284_v10 = vand.u32 2147483648, %v4658_v27  ;;  %v1519_v30 = vmul.f32 %v3726_v53, %v1407_v51  ;;  %3729 = vrsqrt.f32 %v1488_v62 }
 0x148   : > { %v4813_v47 = vadd.f32 %v1191_v46, %v1175_v25  ;;  %v1360_v20 = vmul.f32 %v4668_v55, %v4692_v52  ;;  %v1160_v11 = vmul.f32 %v1080_v2, %v1080_v2  ;;  %v1144_v5 = vmul.f32 %v968_v15, %v968_v15 }
 0x149   : > { %v1450_v23 = vadd.f32 %v1434_v8, %v5987_v34  ;;  %v4821_v40 = vsub.f32 %v4429_v24, %v753_v16  ;;  %v1285_v28 = vsel %vm1283_vm3, %v1284_v10, %v1282_v37  ;;  %v1351_v36 = vmul.f32 %v889_v29, %v4698_v6 }
 0x14a   : > { %v4823_v3 = vpop.permute.xlu1 %896  ;;  %3731 = vrsqrt.f32 %v4813_v47  ;;  %v1176_v27 = vadd.f32 %v1160_v11, %v1144_v5  ;;  %v1192_v53 = vmul.f32 %v1128_v44, %v1128_v44  ;;  %v1335_v55 = vmul.f32 %v4528_v41, %v4481_v4 }
 0x14b   : > { %v4827_v62 = vpop.permute.xlu0 %932  ;;  %3733 = vrsqrt.f32 %v4808_v33  ;;  %v953_v52 = vmul.f32 %v4823_v3, %v4615_v58  ;;  %v1551_v16 = vmul.f32 0.5, %v1519_v30  ;;  %v1376_v51 = vadd.f32 %v1360_v20, %v4665_v43 }
 0x14c   : > { %3735 = vrsqrt.f32 %v1479_v22  ;;  %v4837_v2 = vsub.f32 %v4401_v12, %v4670_v32  ;;  %v4839_v6 = vadd.f32 %v1192_v53, %v1176_v27  ;;  %v1352_v29 = vmul.f32 %v893_v56, %v5986_v57 }
 0x14d   : > { %v4843_v26 = vadd.f32 %v4751_v60, %v1450_v23  ;;  %v1384_v4 = vmul.f32 %v5985_v31, %v5983_v7  ;;  %v1392_v41 = vmul.f32 %v4619_v49, %v4689_v17  ;;  %v1535_v22 = vmul.f32 0.5, %v1285_v28 }
 0x14e   : > { %v1336_v43 = vmul.f32 %v4724_v9, %v5984_v18  ;;  %v1473_v32 = vmul.f32 %v4821_v40, %v4821_v40  ;;  %v1367_v48 = vadd.f32 %v1351_v36, %v1335_v55  ;;  %3737 = vrsqrt.f32 %v4839_v6 }
 0x14f   : > { %v993_v35 = vpop.permute.xlu1 %992  ;;  %v4853_v8 = vpop.permute.xlu0 %936  ;;  %v961_v56 = vmul.f32 %v4810_v1, %v4821_v40  ;;  %v969_v60 = vsub.f32 %v4704_v0, %v953_v52  ;;  %v4863_v18 = vmul.f32 %v4837_v2, %v4837_v2  ;;  %v1097_v31 = vmul.f32 %v4823_v3, %v4477_v39 }
 0x150   : > { %v1049_v49 = vmul.f32 %v993_v35, %v4615_v58  ;;  %v1113_v17 = vmul.f32 %v993_v35, %v4588_v38  ;;  %v1368_v9 = vadd.f32 %v1352_v29, %v1336_v43  ;;  %v1408_v7 = vadd.f32 %v1392_v41, %v1376_v51 }
 0x151   : > { %v881_v57 = vmul.f32 %v4803_v59, %v4610_v19  ;;  %v4870_v46 = vadd.f32 %v1551_v16, %v1535_v22  ;;  %v1291_v58 = vand.u32 2147483648, %v4808_v33  ;;  %v3730_v0 = vpop.eup %3729  ;;  %v4874_v15 = vadd.f32 %v1473_v32, %v4681_v63 }
 0x152   : > { %v1081_v25 = vsub.f32 %v1049_v49, %v4708_v13  ;;  %v1073_v44 = vmul.f32 %v4803_v59, %v4568_v50  ;;  %v1129_v37 = vsub.f32 %v1097_v31, %v1113_v17  ;;  %v1399_v20 = vadd.f32 %v4735_v21, %v1367_v48  ;;  %v5988_v48 = vld [vmem:[#allocation30_spill] sm:$0xff] }
 0x153   : > { %v4878_v10 = vpop.permute.xlu1 %1024  ;;  %v4880_v30 = vpop.permute.xlu0 %940  ;;  %vm1288_vm4 = vcmp.eq.f32.partialorder %v4808_v33, inf  ;;  %v977_v11 = vsub.f32 %v881_v57, %v961_v56  ;;  %v1145_v5 = vmul.f32 %v969_v60, %v969_v60  ;;  %v4888_v28 = vsub.f32 %v4429_v24, %v4790_v45 }
 0x154   : > { %v3732_v13 = vpop.eup %3731  ;;  %v1161_v34 = vmul.f32 %v1081_v25, %v1081_v25  ;;  %v1057_v63 = vmul.f32 %v4878_v10, %v4821_v40  ;;  %v1105_v36 = vmul.f32 %v4810_v1, %v4568_v50  ;;  %v1121_v21 = vmul.f32 %v4878_v10, %v4610_v19 }
 0x155   : > { %v3734_v23 = vpop.eup %3733  ;;  %v1400_v27 = vadd.f32 %v1384_v4, %v1368_v9  ;;  %v1224_v16 = vmul.f32 %v3732_v13, %v4813_v47  ;;  %vm1290_vm5 = vcmp.eq.f32.partialorder %v4808_v33, 0.0  ;;  %v1520_v51 = vmul.f32 %v3730_v0, %v1408_v7 }
 0x156   : > { %v3736_v53 = vpop.eup %3735  ;;  %v1177_v55 = vadd.f32 %v1161_v34, %v1145_v5  ;;  %v1089_v52 = vsub.f32 %v1057_v63, %v1073_v44  ;;  %v1193_v29 = vmul.f32 %v1129_v37, %v1129_v37  ;;  %v1137_v41 = vsub.f32 %v1105_v36, %v1121_v21  ;;  %v5989_v36 = vld [vmem:[#allocation63_spill] sm:$0xff] }
 0x157   : > { %v4896_v22 = vpop.permute.xlu0 %944  ;;  %vm1225_vm6 = vcmp.eq.f32.partialorder %v4813_v47, inf  ;;  %v1511_v45 = vmul.f32 %v3736_v53, %v1399_v20  ;;  %v1153_v43 = vmul.f32 %v977_v11, %v977_v11  ;;  %v1287_v60 = vmul.f32 %v3734_v23, %v4808_v33 }
 0x158   : > { %v1169_v32 = vmul.f32 %v1089_v52, %v1089_v52  ;;  %v965_v4 = vmul.f32 %v4896_v22, %v5988_v48  ;;  %v4901_v56 = vpop.permute.xlu1 %848  ;;  %v3738_v49 = vpop.eup %3737  ;;  %v4904_v17 = vadd.f32 %v1193_v29, %v1177_v55  ;;  %vm1227_vm7 = vcmp.eq.f32.partialorder %v4813_v47, 0.0  ;;  %v5990_v52 = vld [vmem:[#allocation20_spill] sm:$0xff]  ;;  %v5991_v29 = vld [vmem:[#allocation55_spill] sm:$0xff] }
 0x159   : > { %v1228_v9 = vand.u32 2147483648, %v4813_v47  ;;  %v1512_v31 = vmul.f32 %v4768_v54, %v1400_v27  ;;  %v1201_v57 = vmul.f32 %v1137_v41, %v1137_v41  ;;  %v1226_v0 = vsel %vm1225_vm6, %v4813_v47, %v1224_v16 }
 0x15a   : > { %v1185_v7 = vadd.f32 %v1169_v32, %v1153_v43  ;;  %v4910_v25 = vsub.f32 %v4762_v14, %v965_v4  ;;  %v1543_v37 = vmul.f32 0.5, %v1511_v45  ;;  %v1231_v20 = vmul.f32 %v3738_v49, %v4839_v6  ;;  %v5992_v32 = vld [vmem:[#allocation38_spill] sm:$0xff] }
 0x15b   : > { %v1229_v44 = vsel %vm1227_vm7, %v1228_v9, %v1226_v0  ;;  %vm1232_vm8 = vcmp.eq.f32.partialorder %v4839_v6, inf  ;;  %v1337_v13 = vmul.f32 %v993_v35, %v4477_v39  ;;  %v1235_v5 = vand.u32 2147483648, %v4839_v6 }
 0x15c   : > { %v4916_v11 = vadd.f32 %v1201_v57, %v1185_v7  ;;  %v1289_v54 = vsel %vm1288_vm4, %v4808_v33, %v1287_v60  ;;  %v1527_v34 = vmul.f32 0.5, %v1229_v44  ;;  %v1233_v47 = vsel %vm1232_vm8, %v4839_v6, %v1231_v20  ;;  %v5995_v57 = vld [vmem:[#allocation62_spill] sm:$0xff] }
 0x15d   : > { %v901_v14 = vpop.permute.xlu1 %900  ;;  %vm1234_vm9 = vcmp.eq.f32.partialorder %v4839_v6, 0.0  ;;  %3739 = vrsqrt.f32 %v4904_v17  ;;  %v1353_v63 = vmul.f32 %v4823_v3, %v4588_v38  ;;  %v882_v39 = vmul.f32 %v4901_v56, %v4837_v2 }
 0x15e   : > { %v1236_v35 = vsel %vm1234_vm9, %v1235_v5, %v1233_v47  ;;  %v1544_v23 = vmul.f32 0.5, %v1512_v31  ;;  %v954_v21 = vmul.f32 %v901_v14, %v5989_v36  ;;  %v4930_v27 = vadd.f32 %v1543_v37, %v1527_v34  ;;  %v5993_v31 = vld [vmem:[#allocation65_spill] sm:$0xff] }
 0x15f   : > { %1607 = vmax.xlane.f32.xlu1 %v4870_v46  ;;  %v1528_v53 = vmul.f32 0.5, %v1236_v35  ;;  %v1292_v6 = vsel %vm1290_vm5, %v1291_v58, %v1289_v54  ;;  %v962_v38 = vmul.f32 %v4827_v62, %v4888_v28  ;;  %v1369_v3 = vadd.f32 %v1353_v63, %v1337_v13 }
 0x160   : > { %v1345_v55 = vmul.f32 %v4878_v10, %v4568_v50  ;;  %3741 = vrsqrt.f32 %v4916_v11  ;;  %v874_v16 = vmul.f32 %v5990_v52, %v4786_v61  ;;  %v1458_v41 = vadd.f32 %v4863_v18, %v5991_v29  ;;  %1591 = vmax.xlane.f32.xlu0 %v4930_v27 }
 0x161   : > { %3743 = vrsqrt.f32 %v4843_v26  ;;  %v4948_v33 = vadd.f32 %v1544_v23, %v1528_v53  ;;  %v1361_v58 = vmul.f32 %v4810_v1, %v4610_v19  ;;  %v978_v50 = vsub.f32 %v882_v39, %v962_v38  ;;  %v5994_v1 = vld [vmem:[#allocation46_spill] sm:$0xff] }
 0x162   : > { %3745 = vrsqrt.f32 %v4874_v15  ;;  %v997_v10 = vpop.permute.xlu1 %996  ;;  %v1536_v45 = vmul.f32 0.5, %v1292_v6  ;;  %v970_v43 = vsub.f32 %v874_v16, %v954_v21  ;;  %v1098_v4 = vmul.f32 %v901_v14, %v5992_v32 }
 0x163   : > { %v1050_v26 = vmul.f32 %v997_v10, %v5989_v36  ;;  %v1114_v60 = vmul.f32 %v997_v10, %v4786_v61  ;;  %v1474_v18 = vmul.f32 %v4888_v28, %v4888_v28  ;;  %v1377_v49 = vadd.f32 %v1361_v58, %v1345_v55 }
 0x164   : > { %v1552_v9 = vmul.f32 0.5, %v1520_v51  ;;  %v1401_v15 = vadd.f32 %v5993_v31, %v1369_v3  ;;  %v1393_v19 = vmul.f32 %v4803_v59, %v4821_v40  ;;  %v1106_v7 = vmul.f32 %v4827_v62, %v5994_v1  ;;  %1593 = vmax.xlane.f32.xlu0 %v4948_v33 }
 0x165   : > { %v1082_v0 = vsub.f32 %v1050_v26, %v5995_v57  ;;  %v1130_v44 = vsub.f32 %v1098_v4, %v1114_v60  ;;  %v1074_v37 = vmul.f32 %v4901_v56, %v5994_v1  ;;  %v1154_v20 = vmul.f32 %v978_v50, %v978_v50 }
 0x166   : > { %v4967_v13 = vadd.f32 %v1552_v9, %v1536_v45  ;;  %v1029_v51 = vpop.permute.xlu1 %1028  ;;  %vm1239_vm10 = vcmp.eq.f32.partialorder %v4904_v17, inf  ;;  %v1146_v54 = vmul.f32 %v970_v43, %v970_v43  ;;  %v1242_v63 = vand.u32 2147483648, %v4904_v17 }
 0x167   : > { %v3740_v5 = vpop.eup %3739  ;;  %v1162_v59 = vmul.f32 %v1082_v0, %v1082_v0  ;;  %v1058_v40 = vmul.f32 %v1029_v51, %v4888_v28  ;;  %v1122_v34 = vmul.f32 %v1029_v51, %v4837_v2  ;;  %v1513_v39 = vmul.f32 %v4795_v42, %v1401_v15 }
 0x168   : > { %v1238_v47 = vmul.f32 %v3740_v5, %v4904_v17  ;;  %v1409_v35 = vadd.f32 %v1393_v19, %v1377_v49  ;;  %v1194_v21 = vmul.f32 %v1130_v44, %v1130_v44  ;;  %1609 = vmax.xlane.f32.xlu0 %v4967_v13  ;;  %v1354_v3 = vmul.f32 %v901_v14, %v4786_v61  ;;  %v5997_v44 = vld [vmem:[#allocation59_spill] sm:$0xff] }
 0x169   : > { %v1178_v23 = vadd.f32 %v1162_v59, %v1146_v54  ;;  %v1090_v53 = vsub.f32 %v1058_v40, %v1074_v37  ;;  %v1138_v6 = vsub.f32 %v1106_v7, %v1122_v34  ;;  %vm1241_vm11 = vcmp.eq.f32.partialorder %v4904_v17, 0.0  ;;  %v5998_v37 = vld [vmem:[#allocation60_spill] sm:$0xff]  ;;  %v6000_v34 = vld [vmem:[#allocation21_spill] sm:$0xff] }
 0x16a   : > { %v3742_v38 = vpop.eup %3741  ;;  %v1240_v55 = vsel %vm1239_vm10, %v4904_v17, %v1238_v47  ;;  %vm1295_vm12 = vcmp.eq.f32.partialorder %v4916_v11, inf  ;;  %v1338_v29 = vmul.f32 %v997_v10, %v5992_v32  ;;  %v1545_v61 = vmul.f32 0.5, %v1513_v39  ;;  %v5996_v32 = vld [vmem:[#allocation58_spill] sm:$0xff] }
 0x16b   : > { %v3744_v16 = vpop.eup %3743  ;;  %v4982_v42 = vadd.f32 %v1194_v21, %v1178_v23  ;;  %v1170_v58 = vmul.f32 %v1090_v53, %v1090_v53  ;;  %v4985_v50 = vpop.permute.xlu1 %764  ;;  %v1243_v45 = vsel %vm1241_vm11, %v1242_v63, %v1240_v55  ;;  %v1294_v14 = vmul.f32 %v3742_v38, %v4916_v11  ;;  %v6002_v23 = vld [vmem:[#allocation22_spill] sm:$0xff] }
 0x16c   : > { %v3746_v43 = vpop.eup %3745  ;;  %v1529_v4 = vmul.f32 0.5, %v1243_v45  ;;  %v1298_v26 = vand.u32 2147483648, %v4916_v11  ;;  %v1202_v17 = vmul.f32 %v1138_v6, %v1138_v6  ;;  %v1490_v9 = vadd.f32 %v1474_v18, %v1458_v41  ;;  %v5999_v18 = vld [vmem:[#allocation61_spill] sm:$0xff] }
 0x16d   : > { %v1186_v60 = vadd.f32 %v1170_v58, %v1154_v20  ;;  %v1521_v49 = vmul.f32 %v3746_v43, %v1409_v35  ;;  %3747 = vrsqrt.f32 %v4982_v42  ;;  %v1296_v10 = vsel %vm1295_vm12, %v4916_v11, %v1294_v14  ;;  %v6003_v6 = vld [vmem:[#allocation29_spill] sm:$0xff]  ;;  %v6004_v58 = vld [vmem:[#allocation50_spill] sm:$0xff]  ;;  %v6005_v14 = vld [vmem:[#allocation40_spill] sm:$0xff] }
 0x16e   : > { %v4990_v31 = vadd.f32 %v1545_v61, %v1529_v4  ;;  %vm1297_vm13 = vcmp.eq.f32.partialorder %v4916_v11, 0.0  ;;  %v1427_v15 = vmul.f32 %v5996_v32, %v5996_v32  ;;  %v1370_v19 = vadd.f32 %v1354_v3, %v1338_v29 }
 0x16f   : > { %v4998_v7 = vadd.f32 %v1202_v17, %v1186_v60  ;;  %v5000_v57 = vpop.permute.xlu1 %813  ;;  %v1299_v0 = vsel %vm1297_vm13, %v1298_v26, %v1296_v10  ;;  %v1483_v41 = vadd.f32 %v5998_v37, %v5997_v44  ;;  %v1443_v20 = vmul.f32 %v5999_v18, %v5999_v18 }
 0x170   : > { %v1386_v5 = vmul.f32 %v5990_v52, %v5989_v36  ;;  %v1362_v11 = vmul.f32 %v4827_v62, %v4837_v2  ;;  %1595 = vmax.xlane.f32.xlu1 %v4990_v31  ;;  %v1346_v54 = vmul.f32 %v1029_v51, %v5994_v1  ;;  %v1537_v59 = vmul.f32 0.5, %v1299_v0  ;;  %v6001_v1 = vld [vmem:[#allocation56_spill] sm:$0xff] }
 0x171   : > { %v1553_v40 = vmul.f32 0.5, %v1521_v49  ;;  %3749 = vrsqrt.f32 %v4998_v7  ;;  %v5015_v47 = vsub.f32 %v4429_v24, %v6000_v34  ;;  %v1459_v2 = vadd.f32 %v1443_v20, %v1427_v15 }
 0x172   : > { %3751 = vrsqrt.f32 %v1490_v9  ;;  %v1402_v39 = vadd.f32 %v1386_v5, %v1370_v19  ;;  %v1378_v52 = vadd.f32 %v1362_v11, %v1346_v54  ;;  %v883_v21 = vmul.f32 %v6002_v23, %v5999_v18 }
 0x173   : > { %v5017_v63 = vadd.f32 %v1553_v40, %v1537_v59  ;;  %v963_v36 = vmul.f32 %v4853_v8, %v5015_v47  ;;  %3753 = vrsqrt.f32 %v1483_v41  ;;  %v1475_v35 = vmul.f32 %v5015_v47, %v5015_v47 }
 0x174   : > { %v905_v62 = vpop.permute.xlu1 %904  ;;  %v1075_v53 = vmul.f32 %v6002_v23, %v5996_v32  ;;  %v5031_v38 = vsub.f32 %v4429_v24, %v6003_v6  ;;  %v1107_v55 = vmul.f32 %v4853_v8, %v5996_v32  ;;  %v1394_v29 = vmul.f32 %v4901_v56, %v4888_v28 }
 0x175   : > { %1611 = vmax.xlane.f32.xlu0 %v5017_v63  ;;  %v955_v51 = vmul.f32 %v905_v62, %v6001_v1  ;;  %v875_v45 = vmul.f32 %v5000_v57, %v6004_v58  ;;  %v1514_v43 = vmul.f32 %v3744_v16, %v1402_v39  ;;  %v979_v4 = vsub.f32 %v883_v21, %v963_v36 }
 0x176   : > { %vm1246_vm14 = vcmp.eq.f32.partialorder %v4982_v42, inf  ;;  %vm1248_vm15 = vcmp.eq.f32.partialorder %v4982_v42, 0.0  ;;  %v1067_v26 = vmul.f32 %v5000_v57, %v6005_v14  ;;  %v1249_v49 = vand.u32 2147483648, %v4982_v42 }
 0x177   : > { %v3748_v3 = vpop.eup %3747  ;;  %v971_v60 = vsub.f32 %v875_v45, %v955_v51  ;;  %v1410_v9 = vadd.f32 %v1394_v29, %v1378_v52  ;;  %v1099_v28 = vmul.f32 %v905_v62, %v6005_v14  ;;  %v5051_v19 = vsub.f32 %v4429_v24, %v4985_v50 }
 0x178   : > { %v1245_v61 = vmul.f32 %v3748_v3, %v4982_v42  ;;  %v1546_v44 = vmul.f32 0.5, %v1514_v43  ;;  %vm1302_vm0 = vcmp.eq.f32.partialorder %v4998_v7, inf  ;;  %vm1304_vm1 = vcmp.eq.f32.partialorder %v4998_v7, 0.0 }
 0x179   : > { %v1001_v17 = vpop.permute.xlu1 %1000  ;;  %v1147_v11 = vmul.f32 %v971_v60, %v971_v60  ;;  %v1355_v51 = vmul.f32 %v905_v62, %v6004_v58 }
 0x17a   : > { %v1051_v56 = vmul.f32 %v1001_v17, %v6001_v1  ;;  %v1115_v16 = vmul.f32 %v1001_v17, %v6004_v58  ;;  %v1247_v10 = vsel %vm1246_vm14, %v4982_v42, %v1245_v61  ;;  %v1305_v42 = vand.u32 2147483648, %v4998_v7 }
 0x17b   : > { %v3750_v15 = vpop.eup %3749  ;;  %v1250_v0 = vsel %vm1248_vm15, %v1249_v49, %v1247_v10  ;;  %v1339_v50 = vmul.f32 %v1001_v17, %v6005_v14  ;;  %v6006_v14 = vld [vmem:[#allocation17_spill] sm:$0xff]  ;;  %v1491_v17 = vadd.f32 %v1475_v35, %v1459_v2  ;;  %v1155_v49 = vmul.f32 %v979_v4, %v979_v4 }
 0x17c   : > { %v3752_v37 = vpop.eup %3751  ;;  %v1083_v41 = vsub.f32 %v1051_v56, %v1067_v26  ;;  %v1131_v20 = vsub.f32 %v1099_v28, %v1115_v16  ;;  %v1530_v5 = vmul.f32 0.5, %v1250_v0  ;;  %v1301_v59 = vmul.f32 %v3750_v15, %v4998_v7  ;;  %v6007_v26 = vld [vmem:[#allocation23_spill] sm:$0xff]  ;;  %v6008_v15 = vld [vmem:[#allocation18_spill] sm:$0xff] }
 0x17d   : > { %v1033_v54 = vpop.permute.xlu1 %1032  ;;  %v1522_v40 = vmul.f32 %v3752_v37, %v1410_v9  ;;  %v3754_v52 = vpop.eup %3753  ;;  %v5070_v60 = vsub.f32 %v6007_v26, %v6006_v14  ;;  %v1371_v28 = vadd.f32 %v1355_v51, %v1339_v50  ;;  %v1387_v2 = vmul.f32 %v5000_v57, %v6001_v1 }
 0x17e   : > { %v1163_v34 = vmul.f32 %v1083_v41, %v1083_v41  ;;  %v1059_v39 = vmul.f32 %v1033_v54, %v5015_v47  ;;  %v1123_v36 = vmul.f32 %v1033_v54, %v5999_v18  ;;  %v1195_v21 = vmul.f32 %v1131_v20, %v1131_v20  ;;  %v6010_v20 = vld [vmem:[#allocation66_spill] sm:$0xff] }
 0x17f   : > { %v5061_v6 = vadd.f32 %v1546_v44, %v1530_v5  ;;  %v1303_v3 = vsel %vm1302_vm0, %v4998_v7, %v1301_v59  ;;  %v1554_v58 = vmul.f32 0.5, %v1522_v40  ;;  %v1468_v7 = vmul.f32 %v5031_v38, %v5031_v38  ;;  %v6009_v44 = vld [vmem:[#allocation51_spill] sm:$0xff] }
 0x180   : > { %v1179_v29 = vadd.f32 %v1163_v34, %v1147_v11  ;;  %v1091_v45 = vsub.f32 %v1059_v39, %v1075_v53  ;;  %v1139_v43 = vsub.f32 %v1107_v55, %v1123_v36  ;;  %v1306_v61 = vsel %vm1304_vm1, %v1305_v42, %v1303_v3  ;;  %v6013_v39 = vld [vmem:[#allocation27_spill] sm:$0xff] }
 0x181   : > { %1597 = vmax.xlane.f32.xlu1 %v5061_v6  ;;  %v1538_v62 = vmul.f32 0.5, %v1306_v61  ;;  %v1476_v53 = vmul.f32 %v5051_v19, %v5051_v19  ;;  %v1347_v4 = vmul.f32 %v1033_v54, %v5996_v32  ;;  %v5089_v0 = vsub.f32 %v4401_v12, %v6008_v15  ;;  %v6011_v54 = vld [vmem:[#allocation64_spill] sm:$0xff] }
 0x182   : > { %v5073_v9 = vadd.f32 %v1195_v21, %v1179_v29  ;;  %v1171_v56 = vmul.f32 %v1091_v45, %v1091_v45  ;;  %v5075_v16 = vpop.permute.xlu1 %858  ;;  %v1203_v10 = vmul.f32 %v1139_v43, %v1139_v43  ;;  %v1484_v37 = vadd.f32 %v1468_v7, %v6009_v44  ;;  %v6014_v21 = vld [vmem:[#allocation49_spill] sm:$0xff]  ;;  %v6015_v43 = vld [vmem:[#allocation24_spill] sm:$0xff] }
 0x183   : > { %v5083_v35 = vadd.f32 %v1554_v58, %v1538_v62  ;;  %v1363_v57 = vmul.f32 %v4853_v8, %v5999_v18  ;;  %v1403_v41 = vadd.f32 %v1387_v2, %v1371_v28  ;;  %v1492_v5 = vadd.f32 %v1476_v53, %v6010_v20  ;;  %v6012_v8 = vld [vmem:[#allocation19_spill] sm:$0xff]  ;;  %v6018_v53 = vld [vmem:[#allocation28_spill] sm:$0xff] }
 0x184   : > { %v1187_v55 = vadd.f32 %v1171_v56, %v1155_v49  ;;  %3755 = vrsqrt.f32 %v5073_v9  ;;  %v5100_v11 = vmul.f32 %v5070_v60, %v5070_v60  ;;  %v884_v59 = vmul.f32 %v5075_v16, %v6011_v54 }
 0x185   : > { %3757 = vrsqrt.f32 %v1491_v17  ;;  %1613 = vmax.xlane.f32.xlu0 %v5083_v35  ;;  %v1379_v12 = vadd.f32 %v1363_v57, %v1347_v4  ;;  %v5107_v42 = vmul.f32 %v5089_v0, %v5089_v0  ;;  %v5111_v18 = vsub.f32 %v4429_v24, %v6012_v8  ;;  %v6017_v17 = vld [vmem:[#allocation48_spill] sm:$0xff] }
 0x186   : > { %v5095_v1 = vadd.f32 %v1203_v10, %v1187_v55  ;;  %v1395_v34 = vmul.f32 %v6002_v23, %v5015_v47  ;;  %v964_v50 = vmul.f32 %v4880_v30, %v5051_v19  ;;  %v1388_v36 = vmul.f32 %v6013_v39, %v5031_v38  ;;  %v6016_v23 = vld [vmem:[#allocation45_spill] sm:$0xff] }
 0x187   : > { %v909_v32 = vpop.permute.xlu1 %908  ;;  %v1515_v51 = vmul.f32 %v3754_v52, %v1403_v41  ;;  %v1108_v3 = vmul.f32 %v4880_v30, %v6014_v21  ;;  %v1364_v24 = vmul.f32 %v4880_v30, %v6011_v54  ;;  %v1076_v29 = vmul.f32 %v5075_v16, %v6014_v21 }
 0x188   : > { %3759 = vrsqrt.f32 %v5095_v1  ;;  %v956_v40 = vmul.f32 %v909_v32, %v5031_v38  ;;  %v980_v45 = vsub.f32 %v884_v59, %v964_v50  ;;  %v1100_v47 = vmul.f32 %v909_v32, %v6015_v43 }
 0x189   : > { %3761 = vrsqrt.f32 %v1484_v37  ;;  %v1356_v61 = vmul.f32 %v909_v32, %v6016_v23  ;;  %v1411_v26 = vadd.f32 %v1395_v34, %v1379_v12  ;;  %vm1253_vm2 = vcmp.eq.f32.partialorder %v5073_v9, inf }
 0x18a   : > { %3763 = vrsqrt.f32 %v1492_v5  ;;  %v972_v62 = vsub.f32 %v6017_v17, %v956_v40  ;;  %vm1255_vm3 = vcmp.eq.f32.partialorder %v5073_v9, 0.0  ;;  %v1256_v28 = vand.u32 2147483648, %v5073_v9 }
 0x18b   : > { %v1547_v56 = vmul.f32 0.5, %v1515_v51  ;;  %vm1309_vm4 = vcmp.eq.f32.partialorder %v5095_v1, inf  ;;  %v1312_v44 = vand.u32 2147483648, %v5095_v1  ;;  %vm1311_vm5 = vcmp.eq.f32.partialorder %v5095_v1, 0.0 }
 0x18c   : > { %v1005_v14 = vpop.permute.xlu1 %1004  ;;  %v1148_v57 = vmul.f32 %v972_v62, %v972_v62 }
 0x18d   : > { %v1052_v52 = vmul.f32 %v1005_v14, %v5031_v38  ;;  %v1116_v58 = vmul.f32 %v1005_v14, %v6016_v23  ;;  %v1340_v49 = vmul.f32 %v1005_v14, %v6015_v43  ;;  %v1156_v38 = vmul.f32 %v980_v45, %v980_v45 }
 0x18e   : > { %v3756_v30 = vpop.eup %3755 }
 0x18f   : > { %v3758_v7 = vpop.eup %3757  ;;  %v1084_v2 = vsub.f32 %v1052_v52, %v6018_v53  ;;  %v1132_v55 = vsub.f32 %v1100_v47, %v1116_v58  ;;  %v1372_v10 = vadd.f32 %v1356_v61, %v1340_v49  ;;  %v1252_v4 = vmul.f32 %v3756_v30, %v5073_v9 }
 0x190   : > { %v1037_v15 = vpop.permute.xlu1 %1036  ;;  %v1523_v37 = vmul.f32 %v3758_v7, %v1411_v26  ;;  %v1469_v58 = vmul.f32 %v5111_v18, %v5111_v18 }
 0x191   : > { %v1164_v41 = vmul.f32 %v1084_v2, %v1084_v2  ;;  %v1404_v20 = vadd.f32 %v1388_v36, %v1372_v10  ;;  %v1060_v5 = vmul.f32 %v1037_v15, %v5051_v19  ;;  %v1196_v12 = vmul.f32 %v1132_v55, %v1132_v55  ;;  %v6019_v55 = vld [vmem:[#allocation32_spill] sm:$0xff]  ;;  %v3849_v10 = vld [vmem:[%s4133_s13 + $0x2] ss:$0 sm:$0xff] }
 0x192   : > { %v3760_v32 = vpop.eup %3759  ;;  %v1124_v59 = vmul.f32 %v1037_v15, %v6011_v54  ;;  %v1348_v8 = vmul.f32 %v1037_v15, %v6014_v21  ;;  %v1254_v40 = vsel %vm1253_vm2, %v5073_v9, %v1252_v4  ;;  %v1396_v9 = vmul.f32 %v5075_v16, %v5051_v19  ;;  %v6020_v4 = vld [vmem:[#allocation31_spill] sm:$0xff]  ;;  %v6021_v15 = vld [vmem:[#allocation25_spill] sm:$0xff] }
 0x193   : > { %v3762_v34 = vpop.eup %3761  ;;  %v1180_v50 = vadd.f32 %v1164_v41, %v1148_v57  ;;  %v1092_v39 = vsub.f32 %v1060_v5, %v1076_v29  ;;  %v1257_v51 = vsel %vm1255_vm3, %v1256_v28, %v1254_v40  ;;  %v1308_v36 = vmul.f32 %v3760_v32, %v5095_v1  ;;  %v6022_v40 = vld [vmem:[#allocation26_spill] sm:$0xff] }
 0x194   : > { %v1140_v45 = vsub.f32 %v1108_v3, %v1124_v59  ;;  %v1380_v43 = vadd.f32 %v1364_v24, %v1348_v8  ;;  %v1531_v47 = vmul.f32 0.5, %v1257_v51  ;;  %v1516_v23 = vmul.f32 %v3762_v34, %v1404_v20  ;;  %v3764_v61 = vpop.eup %3763 }
 0x195   : > { %v1212_v54 = vadd.f32 %v1196_v12, %v1180_v50  ;;  %v1172_v14 = vmul.f32 %v1092_v39, %v1092_v39  ;;  %v773_v21 = vpop.permute.xlu1 %772  ;;  %v1310_v26 = vsel %vm1309_vm4, %v5095_v1, %v1308_v36  ;;  %v1555_v3 = vmul.f32 0.5, %v1523_v37 }
 0x196   : > { %v5154_v29 = vadd.f32 %v1547_v56, %v1531_v47  ;;  %v1313_v17 = vsel %vm1311_vm5, %v1312_v44, %v1310_v26  ;;  %v1204_v62 = vmul.f32 %v1140_v45, %v1140_v45  ;;  %v1412_v19 = vadd.f32 %v1396_v9, %v1380_v43 }
 0x197   : > { %v1188_v24 = vadd.f32 %v1172_v14, %v1156_v38  ;;  %v1539_v52 = vmul.f32 0.5, %v1313_v17  ;;  %3765 = vrsqrt.f32 %v1212_v54  ;;  %v1453_v16 = vadd.f32 %v5107_v42, %v5100_v11 }
 0x198   : > { %1599 = vmax.xlane.f32.xlu1 %v5154_v29  ;;  %v1524_v56 = vmul.f32 %v3764_v61, %v1412_v19  ;;  %v5170_v38 = vsub.f32 %v3849_v10, %v6020_v4  ;;  %v1109_v44 = vmul.f32 %v4896_v22, %v6021_v15  ;;  %vm1260_vm6 = vcmp.eq.f32.partialorder %v1212_v54, inf }
 0x199   : > { %v1220_v49 = vadd.f32 %v1204_v62, %v1188_v24  ;;  %v5159_v30 = vpop.permute.xlu1 %823  ;;  %v5161_v1 = vadd.f32 %v1555_v3, %v1539_v52  ;;  %v1485_v28 = vadd.f32 %v1469_v58, %v1453_v16  ;;  %vm1262_vm7 = vcmp.eq.f32.partialorder %v1212_v54, 0.0  ;;  %v6023_v58 = vld [vmem:[#allocation33_spill] sm:$0xff] }
 0x19a   : > { %v877_v11 = vmul.f32 %v5159_v30, %v5089_v0  ;;  %v1069_v37 = vmul.f32 %v5159_v30, %v5070_v60  ;;  %v1263_v20 = vand.u32 2147483648, %v1212_v54  ;;  %v1365_v34 = vmul.f32 %v4896_v22, %v6022_v40 }
 0x19b   : > { %1615 = vmax.xlane.f32.xlu0 %v5161_v1  ;;  %3767 = vrsqrt.f32 %v1220_v49  ;;  %v5183_v50 = vsub.f32 %v3849_v10, %v773_v21  ;;  %v1548_v51 = vmul.f32 0.5, %v1516_v23  ;;  %vm1316_vm8 = vcmp.eq.f32.partialorder %v1220_v49, inf }
 0x19c   : > { %3769 = vrsqrt.f32 %v1485_v28  ;;  %vm1318_vm9 = vcmp.eq.f32.partialorder %v1220_v49, 0.0  ;;  %v1319_v26 = vand.u32 2147483648, %v1220_v49  ;;  %v1556_v4 = vmul.f32 0.5, %v1524_v56 }
 0x19d   : > { %3771 = vrsqrt.f32 %v6019_v55  ;;  %vm1895_vm2 = vcmask 7168   ;;  %vm2201_vm3 = vcmask 523264  }
 0x19e   : > { %v913_v7 = vpop.permute.xlu1 %912 }
 0x19f   : > { %v957_v53 = vmul.f32 %v913_v7, %v5111_v18  ;;  %v1101_v57 = vmul.f32 %v913_v7, %v5070_v60  ;;  %v1357_v47 = vmul.f32 %v913_v7, %v5089_v0  ;;  %v1157_v7 = vmul.f32 %v4910_v25, %v4910_v25 }
 0x1a0   : > { %v1389_v25 = vmul.f32 %v5159_v30, %v5111_v18  ;;  %v6027_v30 = vld [vmem:[#allocation67_spill] sm:$0xff] }
 0x1a1   : > { %v3766_v2 = vpop.eup %3765  ;;  %v973_v5 = vsub.f32 %v877_v11, %v957_v53  ;;  %v1478_v11 = vmul.f32 %v5183_v50, %v5183_v50 }
 0x1a2   : > { %v1259_v42 = vmul.f32 %v3766_v2, %v1212_v54 }
 0x1a3   : > { %v1009_v41 = vpop.permute.xlu1 %1008  ;;  %v1149_v9 = vmul.f32 %v973_v5, %v973_v5 }
 0x1a4   : > { %v1053_v32 = vmul.f32 %v1009_v41, %v5111_v18  ;;  %v1117_v12 = vmul.f32 %v1009_v41, %v5089_v0  ;;  %v1261_v59 = vsel %vm1260_vm6, %v1212_v54, %v1259_v42  ;;  %v1341_v17 = vmul.f32 %v1009_v41, %v5070_v60 }
 0x1a5   : > { %v3768_v8 = vpop.eup %3767  ;;  %v1264_v39 = vsel %vm1262_vm7, %v1263_v20, %v1261_v59  ;;  %v6025_v20 = vld [vmem:[#allocation34_spill] sm:$0xff] }
 0x1a6   : > { %v1085_v36 = vsub.f32 %v1053_v32, %v1069_v37  ;;  %v1133_v45 = vsub.f32 %v1101_v57, %v1117_v12  ;;  %v1532_v43 = vmul.f32 0.5, %v1264_v39  ;;  %v1315_v14 = vmul.f32 %v3768_v8, %v1220_v49  ;;  %v3770_v62 = vpop.eup %3769  ;;  %v6024_v57 = vld [vmem:[#allocation57_spill] sm:$0xff]  ;;  %v949_v8 = vpop.permute.xlu0 %948 }
 0x1a7   : > { %v1041_v61 = vpop.permute.xlu1 %1040  ;;  %v3772_v28 = vpop.eup %3771  ;;  %v1373_v55 = vadd.f32 %v1357_v47, %v1341_v17  ;;  %v6029_v47 = vld [vmem:[#allocation53_spill] sm:$0xff]  ;;  %v6031_v17 = vld [vmem:[#allocation52_spill] sm:$0xff] }
 0x1a8   : > { %v1165_v54 = vmul.f32 %v1085_v36, %v1085_v36  ;;  %v1061_v22 = vmul.f32 %v1041_v61, %v5988_v48  ;;  %v1125_v21 = vmul.f32 %v1041_v61, %v6022_v40  ;;  %v1349_v23 = vmul.f32 %v1041_v61, %v6021_v15  ;;  %v6026_v40 = vld [vmem:[#allocation68_spill] sm:$0xff] }
 0x1a9   : > { %v5190_v3 = vadd.f32 %v1548_v51, %v1532_v43  ;;  %v1317_v24 = vsel %vm1316_vm8, %v1220_v49, %v1315_v14  ;;  %v1197_v0 = vmul.f32 %v1133_v45, %v1133_v45  ;;  %v1470_v15 = vmul.f32 %v5170_v38, %v5170_v38  ;;  %v6028_v45 = vld [vmem:[#allocation36_spill] sm:$0xff] }
 0x1aa   : > { %v1181_v52 = vadd.f32 %v1165_v54, %v1149_v9  ;;  %v1093_v19 = vsub.f32 %v1061_v22, %v6023_v58  ;;  %v1320_v16 = vsel %vm1318_vm9, %v1319_v26, %v1317_v24  ;;  %v1141_v60 = vsub.f32 %v1109_v44, %v1125_v21  ;;  %v6030_v9 = vld [vmem:[#allocation35_spill] sm:$0xff] }
 0x1ab   : > { %v1381_v53 = vadd.f32 %v1365_v34, %v1349_v23  ;;  %1601 = vmax.xlane.f32.xlu1 %v5190_v3  ;;  %v1540_v48 = vmul.f32 0.5, %v1320_v16  ;;  %v1486_v41 = vadd.f32 %v1470_v15, %v6024_v57  ;;  %v1405_v56 = vadd.f32 %v1389_v25, %v1373_v55  ;;  %v6032_v23 = vld [vmem:[#allocation54_spill] sm:$0xff] }
 0x1ac   : > { %v5196_v2 = vadd.f32 %v1197_v0, %v1181_v52  ;;  %v1173_v10 = vmul.f32 %v1093_v19, %v1093_v19  ;;  %v5198_v49 = vpop.permute.xlu1 %868  ;;  %v1205_v42 = vmul.f32 %v1141_v60, %v1141_v60  ;;  %v1494_v18 = vadd.f32 %v1478_v11, %v6026_v40 }
 0x1ad   : > { %v5206_v37 = vadd.f32 %v1556_v4, %v1540_v48  ;;  %v1413_v5 = vadd.f32 %v6025_v20, %v1381_v53  ;;  %v886_v34 = vmul.f32 %v5198_v49, %v6027_v30  ;;  %v966_v51 = vmul.f32 %v949_v8, %v5183_v50 }
 0x1ae   : > { %v1189_v44 = vadd.f32 %v1173_v10, %v1157_v7  ;;  %3773 = vrsqrt.f32 %v5196_v2  ;;  %v1517_v36 = vmul.f32 %v3770_v62, %v1405_v56  ;;  %v1390_v43 = vmul.f32 %v6028_v45, %v5170_v38 }
 0x1af   : > { %1617 = vmax.xlane.f32.xlu0 %v5206_v37  ;;  %v1525_v59 = vmul.f32 %v3772_v28, %v1413_v5  ;;  %v1110_v61 = vmul.f32 %v949_v8, %v6029_v47  ;;  %v1366_v14 = vmul.f32 %v949_v8, %v6027_v30  ;;  %v982_v26 = vsub.f32 %v886_v34, %v966_v51  ;;  %v6033_v28 = vld [vmem:[#allocation37_spill] sm:$0xff] }
 0x1b0   : > { %v5211_v32 = vadd.f32 %v1205_v42, %v1189_v44  ;;  %v1078_v19 = vmul.f32 %v5198_v49, %v6029_v47  ;;  %vm1267_vm10 = vcmp.eq.f32.partialorder %v5196_v2, inf  ;;  %vm1269_vm11 = vcmp.eq.f32.partialorder %v5196_v2, 0.0 }
 0x1b1   : > { %v917_v12 = vpop.permute.xlu1 %916  ;;  %v1549_v16 = vmul.f32 0.5, %v1517_v36  ;;  %v1270_v10 = vand.u32 2147483648, %v5196_v2 }
 0x1b2   : > { %3775 = vrsqrt.f32 %v5211_v32  ;;  %v958_v39 = vmul.f32 %v917_v12, %v5170_v38  ;;  %v1102_v54 = vmul.f32 %v917_v12, %v6030_v9  ;;  %v1358_v22 = vmul.f32 %v917_v12, %v6031_v17 }
 0x1b3   : > { %3777 = vrsqrt.f32 %v1486_v41  ;;  %vm1323_vm12 = vcmp.eq.f32.partialorder %v5211_v32, inf  ;;  %v1326_v4 = vand.u32 2147483648, %v5211_v32  ;;  %vm1325_vm13 = vcmp.eq.f32.partialorder %v5211_v32, 0.0 }
 0x1b4   : > { %3779 = vrsqrt.f32 %v1494_v18  ;;  %v974_v24 = vsub.f32 %v6032_v23, %v958_v39 }
 0x1b6   : > { %v1013_v21 = vpop.permute.xlu1 %1012  ;;  %v1150_v15 = vmul.f32 %v974_v24, %v974_v24 }
 0x1b7   : > { %v1054_v52 = vmul.f32 %v1013_v21, %v5170_v38  ;;  %v1118_v62 = vmul.f32 %v1013_v21, %v6031_v17  ;;  %v1342_v0 = vmul.f32 %v1013_v21, %v6030_v9  ;;  %v1158_v38 = vmul.f32 %v982_v26, %v982_v26 }
 0x1b8   : > { %v3774_v58 = vpop.eup %3773  ;;  %v1398_v26 = vmul.f32 %v5198_v49, %v5183_v50 }
 0x1b9   : > { %v1086_v7 = vsub.f32 %v1054_v52, %v6033_v28  ;;  %v1134_v60 = vsub.f32 %v1102_v54, %v1118_v62  ;;  %v1374_v53 = vadd.f32 %v1358_v22, %v1342_v0  ;;  %v1266_v48 = vmul.f32 %v3774_v58, %v5196_v2 }
 0x1ba   : > { %v1045_v55 = vpop.permute.xlu1 %1044  ;;  %v1557_v54 = vmul.f32 0.5, %v1525_v59 }
 0x1bb   : > { %v1166_v11 = vmul.f32 %v1086_v7, %v1086_v7  ;;  %v1406_v25 = vadd.f32 %v1390_v43, %v1374_v53  ;;  %v1062_v44 = vmul.f32 %v1045_v55, %v5183_v50  ;;  %v1198_v57 = vmul.f32 %v1134_v60, %v1134_v60 }
 0x1bc   : > { %v3776_v42 = vpop.eup %3775  ;;  %v1126_v41 = vmul.f32 %v1045_v55, %v6027_v30  ;;  %v1350_v20 = vmul.f32 %v1045_v55, %v6029_v47  ;;  %v1268_v5 = vsel %vm1267_vm10, %v5196_v2, %v1266_v48  ;;  %v2024_v55 = vld [vmem:[%s4138_s27] sm:$0xff] }
 0x1bd   : > { %v3778_v56 = vpop.eup %3777  ;;  %v1182_v12 = vadd.f32 %v1166_v11, %v1150_v15  ;;  %v1094_v8 = vsub.f32 %v1062_v44, %v1078_v19  ;;  %v1271_v40 = vsel %vm1269_vm11, %v1270_v10, %v1268_v5  ;;  %v1322_v18 = vmul.f32 %v3776_v42, %v5211_v32  ;;  %v2025_v10 = vld [vmem:[%s4138_s27 + $0x8] sm:$0xff]  ;;  %v2026_v15 = vld [vmem:[%s4138_s27 + $0x10] sm:$0xff]  ;;  %v2027_v11 = vld [vmem:[%s4138_s27 + $0x18] sm:$0xff] }
 0x1be   : > { %v1142_v34 = vsub.f32 %v1110_v61, %v1126_v41  ;;  %v1382_v39 = vadd.f32 %v1366_v14, %v1350_v20  ;;  %v1533_v51 = vmul.f32 0.5, %v1271_v40  ;;  %v1518_v36 = vmul.f32 %v3778_v56, %v1406_v25  ;;  %v3780_v47 = vpop.eup %3779  ;;  %v5270_v44 = vld [vmem:[#allocation2 + $0x40] sm:$0xff]  ;;  %v2029_v20 = vld [vmem:[%s4138_s27 + $0x28] sm:$0xff]  ;;  %v2030_v5 = vld [vmem:[%s4138_s27 + $0x30] sm:$0xff] }
 0x1bf   : > { %v1214_v45 = vadd.f32 %v1198_v57, %v1182_v12  ;;  %v1174_v30 = vmul.f32 %v1094_v8, %v1094_v8  ;;  %v1324_v43 = vsel %vm1323_vm12, %v5211_v32, %v1322_v18  ;;  %v3472_v25 = vpack.c.bf16 %v2027_v11, %v2026_v15  ;;  %v5272_v42 = vld [vmem:[#allocation2] sm:$0xff]  ;;  %v2031_v8 = vld [vmem:[%s4138_s27 + $0x38] sm:$0xff] }
 0x1c0   : > { %v5254_v2 = vadd.f32 %v1549_v16, %v1533_v51  ;;  %v1327_v9 = vsel %vm1325_vm13, %v1326_v4, %v1324_v43  ;;  %v1206_v14 = vmul.f32 %v1142_v34, %v1142_v34  ;;  %v1414_v22 = vadd.f32 %v1398_v26, %v1382_v39  ;;  %v2028_v41 = vld [vmem:[%s4138_s27 + $0x20] sm:$0xff]  ;;  %v5289_v51 = vld [vmem:[#allocation2 + $0x8] sm:$0xff]  ;;  %v5345_v15 = vld [vmem:[#allocation2 + $0x58] sm:$0xff] }
 0x1c1   : > { %v1190_v61 = vadd.f32 %v1174_v30, %v1158_v38  ;;  %v1541_v17 = vmul.f32 0.5, %v1327_v9  ;;  %3781 = vrsqrt.f32 %v1214_v45  ;;  %vm1274_vm14 = vcmp.eq.f32.partialorder %v1214_v45, inf  ;;  %v5299_v43 = vld [vmem:[#allocation2 + $0x48] sm:$0xff]  ;;  %v2032_v26 = vld [vmem:[%s4138_s27 + $0x40] sm:$0xff] }
 0x1c2   : > { %1603 = vmax.xlane.f32.xlu1 %v5254_v2  ;;  %v1526_v24 = vmul.f32 %v3780_v47, %v1414_v22  ;;  %v1277_v49 = vand.u32 2147483648, %v1214_v45  ;;  %vm1276_vm15 = vcmp.eq.f32.partialorder %v1214_v45, 0.0  ;;  %v1550_v58 = vmul.f32 0.5, %v1518_v36  ;;  %v2033_v9 = vld [vmem:[%s4138_s27 + $0x48] sm:$0xff]  ;;  %v2034_v22 = vld [vmem:[%s4138_s27 + $0x50] sm:$0xff] }
 0x1c3   : > { %v1222_v21 = vadd.f32 %v1206_v14, %v1190_v61  ;;  %v5257_v23 = vadd.f32 %v1557_v54, %v1541_v17  ;;  %v3468_v4 = vpack.c.bf16 %v2025_v10, %v2024_v55  ;;  %v3476_v12 = vpack.c.bf16 %v2029_v20, %v2028_v41  ;;  %v5342_v55 = vld [vmem:[#allocation2 + $0x18] sm:$0xff]  ;;  %v1579_v20 = vld [vmem:[#allocation2 + $0x20] sm:$0xff] }
 0x1c4   : > { %v1558_v48 = vmul.f32 0.5, %v1526_v24  ;;  %v3480_v18 = vpack.c.bf16 %v2031_v8, %v2030_v5  ;;  %v3484_v61 = vpack.c.bf16 %v2033_v9, %v2032_v26  ;;  %v5357_v8 = vld [vmem:[#allocation2 + $0x60] sm:$0xff]  ;;  %v1580_v26 = vld [vmem:[#allocation2 + $0x28] sm:$0xff] }
 0x1c5   : > { %1619 = vmax.xlane.f32.xlu0 %v5257_v23  ;;  %3783 = vrsqrt.f32 %v1222_v21  ;;  %vm1330_vm0 = vcmp.eq.f32.partialorder %v1222_v21, inf  ;;  %v1333_v16 = vand.u32 2147483648, %v1222_v21  ;;  %vm1332_vm1 = vcmp.eq.f32.partialorder %v1222_v21, 0.0  ;;  %3469 = vmatprep.subr.bf16.mxu0 %v3468_v4 }
 0x1c6   : > { %3580 = vmatprep.subr.bf16.mxu1 %v3468_v4  ;;  %3471 = vmatpush3.bf16.msra.mxu0 %v3468_v4 }
 0x1c7   : > { %3588 = vmatpush3.bf16.msra.mxu1 %v3468_v4  ;;  %3473 = vmatprep.subr.bf16.mxu0 %v3472_v25 }
 0x1c8   : > { %3581 = vmatprep.subr.bf16.mxu1 %v3472_v25 }
 0x1ca   : > { %3475 = vmatpush3.bf16.msra.mxu0 %v3472_v25 }
 0x1cb   : > { %v3782_v32 = vpop.eup %3781  ;;  %3589 = vmatpush3.bf16.msra.mxu1 %v3472_v25  ;;  %3477 = vmatprep.subr.bf16.mxu0 %v3476_v12 }
 0x1cc   : > { %v1273_v50 = vmul.f32 %v3782_v32, %v1214_v45  ;;  %3582 = vmatprep.subr.bf16.mxu1 %v3476_v12  ;;  %v5318_v32 = vld [vmem:[#allocation2 + $0x10] sm:$0xff] }
 0x1ce   : > { %v1275_v52 = vsel %vm1274_vm14, %v1214_v45, %v1273_v50  ;;  %3479 = vmatpush3.bf16.msra.mxu0 %v3476_v12 }
 0x1cf   : > { %v3784_v59 = vpop.eup %3783  ;;  %v1278_v62 = vsel %vm1276_vm15, %v1277_v49, %v1275_v52  ;;  %3481 = vmatprep.subr.bf16.mxu0 %v3480_v18  ;;  %3590 = vmatpush3.bf16.msra.mxu1 %v3476_v12  ;;  %v2036_v49 = vld [vmem:[%s4138_s27 + $0x60] sm:$0xff]  ;;  %v2037_v52 = vld [vmem:[%s4138_s27 + $0x68] sm:$0xff] }
 0x1d0   : > { %v1534_v0 = vmul.f32 0.5, %v1278_v62  ;;  %v1329_v19 = vmul.f32 %v3784_v59, %v1222_v21  ;;  %3583 = vmatprep.subr.bf16.mxu1 %v3480_v18  ;;  %v2038_v59 = vld [vmem:[%s4138_s27 + $0x70] sm:$0xff] }
 0x1d2   : > { %v5260_v28 = vadd.f32 %v1550_v58, %v1534_v0  ;;  %v1331_v7 = vsel %vm1330_vm0, %v1222_v21, %v1329_v19  ;;  %3483 = vmatpush3.bf16.msra.mxu0 %v3480_v18  ;;  %v2035_v21 = vld [vmem:[%s4138_s27 + $0x58] sm:$0xff]  ;;  %v3492_v0 = vpack.c.bf16 %v2037_v52, %v2036_v49 }
 0x1d3   : > { %v1334_v60 = vsel %vm1332_vm1, %v1333_v16, %v1331_v7  ;;  %3591 = vmatpush3.bf16.msra.mxu1 %v3480_v18  ;;  %3485 = vmatprep.subr.bf16.mxu0 %v3484_v61  ;;  %v3488_v24 = vpack.c.bf16 %v2035_v21, %v2034_v22  ;;  %v2039_v58 = vld [vmem:[%s4138_s27 + $0x78] sm:$0xff]  ;;  %v5332_v7 = vld [vmem:[#allocation2 + $0x50] sm:$0xff] }
 0x1d4   : > { %1605 = vmax.xlane.f32.xlu1 %v5260_v28  ;;  %v1542_v53 = vmul.f32 0.5, %v1334_v60  ;;  %3584 = vmatprep.subr.bf16.mxu1 %v3484_v61  ;;  %v3496_v19 = vpack.c.bf16 %v2039_v58, %v2038_v59  ;;  %v5374_v59 = vld [vmem:[#allocation2 + $0x70] sm:$0xff] }
 0x1d6   : > { %v5263_v38 = vadd.f32 %v1558_v48, %v1542_v53  ;;  %3487 = vmatpush3.bf16.msra.mxu0 %v3484_v61 }
 0x1d7   : > { %3592 = vmatpush3.bf16.msra.mxu1 %v3484_v61  ;;  %3489 = vmatprep.subr.bf16.mxu0 %v3488_v24  ;;  %v5364_v61 = vld [vmem:[#allocation2 + $0x68] sm:$0xff] }
 0x1d8   : > { %1621 = vmax.xlane.f32.xlu0 %v5263_v38  ;;  %3585 = vmatprep.subr.bf16.mxu1 %v3488_v24 }
 0x1da   : > { %3491 = vmatpush3.bf16.msra.mxu0 %v3488_v24 }
 0x1db   : > { %3593 = vmatpush3.bf16.msra.mxu1 %v3488_v24  ;;  %3493 = vmatprep.subr.bf16.mxu0 %v3492_v0 }
 0x1dc   : > { %3586 = vmatprep.subr.bf16.mxu1 %v3492_v0 }
 0x1de   : > { %3495 = vmatpush3.bf16.msra.mxu0 %v3492_v0 }
 0x1df   : > { %3497 = vmatprep.subr.bf16.mxu0 %v3496_v19  ;;  %3594 = vmatpush3.bf16.msra.mxu1 %v3492_v0 }
 0x1e0   : > { %3587 = vmatprep.subr.bf16.mxu1 %v3496_v19 }
 0x1e2   : > { %3499 = vmatpush3.bf16.msra.mxu0 %v3496_v19 }
 0x1e3   : > { %3595 = vmatpush3.bf16.msra.mxu1 %v3496_v19 }
 0x1ec   : > { %v1608_v57 = vpop.xlane.xlu1 %1607 }
 0x1ed   : > { %v5278_v56 = vmax.f32 %v5270_v44, %v1608_v57  ;;  %v1592_v40 = vpop.xlane.xlu0 %1591 }
 0x1ee   : > { %v5282_v34 = vmax.f32 %v5272_v42, %v1592_v40 }
 0x1ef   : > { %v1647_v39 = vsub.f32 %v5270_v44, %v5278_v56  ;;  %2226 = vst.msk [vmem:[#allocation2 + $0x40] sm:$0xff] %vm1895_vm2, %v5278_v56  ;;  %1729 = vperm.xlu0 %3720, %v5278_v56  }
 0x1f0   : > { %v1639_v36 = vsub.f32 %v5272_v42, %v5282_v34  ;;  %2218 = vst.msk [vmem:[#allocation2] sm:$0xff] %vm1895_vm2, %v5282_v34  ;;  %1689 = vperm.xlu1 %3719, %v5282_v34  }
 0x1f1   : > { %v1594_v45 = vpop.xlane.xlu0 %1593  ;;  %v1671_v42 = vmul.f32 1.442695, %v1647_v39 }
 0x1f2   : > { %v5297_v30 = vmax.f32 %v5289_v51, %v1594_v45 }
 0x1f4   : > { %v1640_v47 = vsub.f32 %v5289_v51, %v5297_v30  ;;  %2219 = vst.msk [vmem:[#allocation2 + $0x8] sm:$0xff] %vm1895_vm2, %v5297_v30  ;;  %1694 = vperm.xlu1 %3719, %v5297_v30   ;;  %v5394_v51 = vld [vmem:[#allocation2 + $0x78] sm:$0xff] }
 0x1f5   : > { %v1610_v54 = vpop.xlane.xlu0 %1609 }
 0x1f6   : > { %v5309_v14 = vmax.f32 %v5299_v43, %v1610_v54 }
 0x1f8   : > { %v1648_v17 = vsub.f32 %v5299_v43, %v5309_v14  ;;  %2227 = vst.msk [vmem:[#allocation2 + $0x48] sm:$0xff] %vm1895_vm2, %v5309_v14  ;;  %1734 = vperm.xlu1 %3719, %v5309_v14  }
 0x1fd   : > { %v1596_v50 = vpop.xlane.xlu1 %1595 }
 0x1fe   : > { %v5324_v62 = vmax.f32 %v5318_v32, %v1596_v50  ;;  %v1581_v50 = vld [vmem:[#allocation2 + $0x30] sm:$0xff] }
 0x200   : > { %v1641_v16 = vsub.f32 %v5318_v32, %v5324_v62  ;;  %2220 = vst.msk [vmem:[#allocation2 + $0x10] sm:$0xff] %vm1895_vm2, %v5324_v62  ;;  %1699 = vperm.xlu1 %3719, %v5324_v62  }
 0x202   : > { %v1612_v60 = vpop.xlane.xlu0 %1611 }
 0x203   : > { %v5335_v53 = vmax.f32 %v5332_v7, %v1612_v60  ;;  %v1657_v60 = vmul.f32 1.442695, %v1640_v47 }
 0x205   : > { %v1649_v48 = vsub.f32 %v5332_v7, %v5335_v53  ;;  %2228 = vst.msk [vmem:[#allocation2 + $0x50] sm:$0xff] %vm1895_vm2, %v5335_v53  ;;  %1739 = vperm.xlu1 %3719, %v5335_v53   ;;  %3785 = vpow2.f32 %v1657_v60 }
 0x207   : > { %v1675_v62 = vmul.f32 1.442695, %v1649_v48 }
 0x20e   : > { %v1598_v10 = vpop.xlane.xlu1 %1597 }
 0x20f   : > { %v1626_v4 = vmax.f32 %v5342_v55, %v1598_v10  ;;  %v1655_v10 = vmul.f32 1.442695, %v1639_v36  ;;  %v5403_v32 = vpop.eup %3785 }
 0x211   : > { %v1642_v11 = vsub.f32 %v5342_v55, %v1626_v4  ;;  %2221 = vst.msk [vmem:[#allocation2 + $0x18] sm:$0xff] %vm1895_vm2, %v1626_v4  ;;  %1704 = vperm.xlu1 %3719, %v1626_v4   ;;  %3787 = vpow2.f32 %v1655_v10 }
 0x212   : > { %v1614_v25 = vpop.xlane.xlu0 %1613 }
 0x213   : > { %v5350_v57 = vmax.f32 %v5345_v15, %v1614_v25  ;;  %v1661_v34 = vmul.f32 1.442695, %v1642_v11 }
 0x215   : > { %v1650_v41 = vsub.f32 %v5345_v15, %v5350_v57  ;;  %2229 = vst.msk [vmem:[#allocation2 + $0x58] sm:$0xff] %vm1895_vm2, %v5350_v57  ;;  %1744 = vperm.xlu1 %3719, %v5350_v57  }
 0x225   : > { %v1600_v5 = vpop.xlane.xlu1 %1599 }
 0x226   : > { %v1627_v12 = vmax.f32 %v1579_v20, %v1600_v5  ;;  %v1582_v5 = vld [vmem:[#allocation2 + $0x38] sm:$0xff] }
 0x228   : > { %2222 = vst.msk [vmem:[#allocation2 + $0x20] sm:$0xff] %vm1895_vm2, %v1627_v12  ;;  %1709 = vperm.xlu1 %3719, %v1627_v12   ;;  %v1616_v40 = vpop.xlane.xlu0 %1615  ;;  %v1643_v55 = vsub.f32 %v1579_v20, %v1627_v12 }
 0x229   : > { %v1635_v18 = vmax.f32 %v5357_v8, %v1616_v40 }
 0x22a   : > { %v1663_v4 = vmul.f32 1.442695, %v1643_v55 }
 0x22b   : > { %v1651_v45 = vsub.f32 %v5357_v8, %v1635_v18  ;;  %2230 = vst.msk [vmem:[#allocation2 + $0x60] sm:$0xff] %vm1895_vm2, %v1635_v18  ;;  %v1659_v8 = vmul.f32 1.442695, %v1641_v16  ;;  %v5414_v16 = vpop.eup %3787 }
 0x22c   : > { %1749 = vperm.xlu1 %3719, %v1635_v18   ;;  %3789 = vpow2.f32 %v1663_v4 }
 0x22d   : > { %3791 = vpow2.f32 %v1659_v8  ;;  %v1679_v7 = vmul.f32 1.442695, %v1651_v45 }
 0x236   : > { %v5416_v11 = vpop.eup %3789 }
 0x237   : > { %v5420_v48 = vpop.eup %3791 }
 0x238   : > { %v1602_v9 = vpop.xlane.xlu1 %1601 }
 0x239   : > { %v1628_v54 = vmax.f32 %v1580_v26, %v1602_v9 }
 0x23b   : > { %2223 = vst.msk [vmem:[#allocation2 + $0x28] sm:$0xff] %vm1895_vm2, %v1628_v54  ;;  %1714 = vperm.xlu0 %3720, %v1628_v54   ;;  %v1644_v36 = vsub.f32 %v1580_v26, %v1628_v54  ;;  %v1673_v54 = vmul.f32 1.442695, %v1648_v17 }
 0x23c   : > { %v1618_v22 = vpop.xlane.xlu0 %1617 }
 0x23d   : > { %v5367_v21 = vmax.f32 %v5364_v61, %v1618_v22  ;;  %v1665_v56 = vmul.f32 1.442695, %v1644_v36 }
 0x23f   : > { %v1652_v24 = vsub.f32 %v5364_v61, %v5367_v21  ;;  %2231 = vst.msk [vmem:[#allocation2 + $0x68] sm:$0xff] %vm1895_vm2, %v5367_v21  ;;  %1754 = vperm.xlu1 %3719, %v5367_v21  }
 0x24f   : > { %v1604_v49 = vpop.xlane.xlu1 %1603 }
 0x250   : > { %v1629_v52 = vmax.f32 %v1581_v50, %v1604_v49 }
 0x252   : > { %2224 = vst.msk [vmem:[#allocation2 + $0x30] sm:$0xff] %vm1895_vm2, %v1629_v52  ;;  %1719 = vperm.xlu0 %3720, %v1629_v52   ;;  %v1620_v0 = vpop.xlane.xlu0 %1619  ;;  %v1645_v25 = vsub.f32 %v1581_v50, %v1629_v52 }
 0x253   : > { %v5378_v58 = vmax.f32 %v5374_v59, %v1620_v0 }
 0x254   : > { %v1667_v40 = vmul.f32 1.442695, %v1645_v25 }
 0x255   : > { %v1653_v19 = vsub.f32 %v5374_v59, %v5378_v58  ;;  %2232 = vst.msk [vmem:[#allocation2 + $0x70] sm:$0xff] %vm1895_vm2, %v5378_v58  ;;  %1759 = vperm.xlu1 %3719, %v5378_v58   ;;  %v1815_v58 = vld [vmem:[#allocation3] sm:$0xff] }
 0x256   : > { %3793 = vpow2.f32 %v1667_v40 }
 0x257   : > { %3795 = vpow2.f32 %v1671_v42 }
 0x258   : > { %3797 = vpow2.f32 %v1661_v34 }
 0x259   : > { %3799 = vpow2.f32 %v1675_v62 }
 0x25a   : > { %3801 = vpow2.f32 %v1665_v56 }
 0x25b   : > { %3803 = vpow2.f32 %v1679_v7 }
 0x260   : > { %v5422_v12 = vpop.eup %3793 }
 0x261   : > { %v1606_v18 = vpop.xlane.xlu1 %1605  ;;  %v5431_v49 = vpop.eup %3795 }
 0x262   : > { %v1630_v9 = vmax.f32 %v1582_v5, %v1606_v18  ;;  %v5433_v52 = vpop.eup %3797 }
 0x263   : > { %v5441_v14 = vpop.eup %3799 }
 0x264   : > { %2225 = vst.msk [vmem:[#allocation2 + $0x38] sm:$0xff] %vm1895_vm2, %v1630_v9  ;;  %1724 = vperm.xlu0 %3720, %v1630_v9   ;;  %v1646_v39 = vsub.f32 %v1582_v5, %v1630_v9  ;;  %v5443_v17 = vpop.eup %3801 }
 0x265   : > { %v1622_v30 = vpop.xlane.xlu0 %1621  ;;  %v5448_v57 = vpop.eup %3803 }
 0x266   : > { %v5401_v47 = vmax.f32 %v5394_v51, %v1622_v30  ;;  %v1669_v53 = vmul.f32 1.442695, %v1646_v39 }
 0x268   : > { %v1654_v44 = vsub.f32 %v5394_v51, %v5401_v47  ;;  %2233 = vst.msk [vmem:[#allocation2 + $0x78] sm:$0xff] %vm1895_vm2, %v5401_v47  ;;  %1935 = vperm.xlu0 %3720, %v5403_v32   ;;  %1764 = vperm.xlu1 %3719, %v5401_v47   ;;  %3805 = vpow2.f32 %v1669_v53 }
 0x26c   : > { %1950 = vperm.xlu0 %3720, %v5416_v11   ;;  %1930 = vperm.xlu1 %3719, %v5414_v16  }
 0x26e   : > { %v1730_v20 = vpop.permute.xlu0 %1729 }
 0x26f   : > { %v1775_v26 = vsub.f32 %v4870_v46, %v1730_v20  ;;  %v1690_v22 = vpop.permute.xlu1 %1689  ;;  %v1677_v46 = vmul.f32 1.442695, %v1650_v41 }
 0x270   : > { %1960 = vperm.xlu0 %3720, %v5422_v12   ;;  %1940 = vperm.xlu1 %3719, %v5420_v48   ;;  %v1767_v45 = vsub.f32 %v4930_v27, %v1690_v22 }
 0x271   : > { %v1799_v50 = vmul.f32 1.442695, %v1775_v26 }
 0x272   : > { %v1783_v0 = vmul.f32 1.442695, %v1767_v45  ;;  %v5450_v41 = vpop.eup %3805 }
 0x273   : > { %3807 = vpow2.f32 %v1799_v50  ;;  %v1695_v43 = vpop.permute.xlu1 %1694 }
 0x274   : > { %3809 = vpow2.f32 %v1673_v54  ;;  %1970 = vperm.xlu0 %3720, %v5431_v49   ;;  %1945 = vperm.xlu1 %3719, %v5433_v52   ;;  %v1768_v27 = vsub.f32 %v4948_v33, %v1695_v43 }
 0x275   : > { %3811 = vpow2.f32 %v1783_v0 }
 0x276   : > { %v1785_v60 = vmul.f32 1.442695, %v1768_v27  ;;  %3813 = vpow2.f32 %v1677_v46 }
 0x277   : > { %v1735_v55 = vpop.permute.xlu1 %1734 }
 0x278   : > { %1980 = vperm.xlu0 %3720, %v5441_v14   ;;  %1955 = vperm.xlu1 %3719, %v5443_v17   ;;  %3815 = vpow2.f32 %v1785_v60  ;;  %v1776_v15 = vsub.f32 %v4967_v13, %v1735_v55 }
 0x27a   : > { %v1801_v10 = vmul.f32 1.442695, %v1776_v15 }
 0x27c   : > { %1990 = vperm.xlu0 %3720, %v5448_v57   ;;  %1965 = vperm.xlu1 %3719, %v5450_v41   ;;  %3817 = vpow2.f32 %v1801_v10 }
 0x27d   : > { %v5454_v33 = vpop.eup %3807 }
 0x27e   : > { %v5456_v4 = vpop.eup %3809  ;;  %3304 = vmatprep.mubr.f32.mxu1 %v5454_v33 }
 0x27f   : > { %v3812_v25 = vpop.eup %3811  ;;  %v1700_v5 = vpop.permute.xlu1 %1699 }
 0x280   : > { %3292 = vmatprep.mubr.f32.mxu0 %v3812_v25  ;;  %v1769_v13 = vsub.f32 %v4990_v31, %v1700_v5  ;;  %1975 = vperm.xlu1 %3719, %v5456_v4   ;;  %v5461_v8 = vpop.eup %3813 }
 0x282   : > { %v1787_v40 = vmul.f32 1.442695, %v1769_v13  ;;  %v3816_v18 = vpop.eup %3815 }
 0x283   : > { %3293 = vmatmul.mubr.f32.vlgmr.msra.gmra.mrb[0].mxu0 %v3816_v18 }
 0x284   : > { %3819 = vpow2.f32 %v1787_v40  ;;  %v1740_v9 = vpop.permute.xlu1 %1739  ;;  %1985 = vperm.xlu1 %3719, %v5461_v8  }
 0x285   : > { %v1777_v42 = vsub.f32 %v5017_v63, %v1740_v9 }
 0x286   : > { %v5465_v34 = vpop.eup %3817 }
 0x287   : > { %v1803_v36 = vmul.f32 1.442695, %v1777_v42  ;;  %3305 = vmatmul.mubr.f32.vlgmr.msra.gmra.mrb[0].mxu1 %v5465_v34 }
 0x289   : > { %3821 = vpow2.f32 %v1803_v36 }
 0x28e   : > { %v3820_v31 = vpop.eup %3819 }
 0x28f   : > { %3295 = vmatprep.mubr.f32.mxu0 %v3820_v31 }
 0x290   : > { %v1705_v30 = vpop.permute.xlu1 %1704 }
 0x291   : > { %v1770_v62 = vsub.f32 %v5061_v6, %v1705_v30 }
 0x293   : > { %v3822_v56 = vpop.eup %3821  ;;  %v1789_v39 = vmul.f32 1.442695, %v1770_v62 }
 0x294   : > { %3307 = vmatprep.mubr.f32.mxu1 %v3822_v56  ;;  %v1745_v7 = vpop.permute.xlu1 %1744 }
 0x295   : > { %3823 = vpow2.f32 %v1789_v39  ;;  %v1778_v53 = vsub.f32 %v5083_v35, %v1745_v7  ;;  %v1681_v39 = vmul.f32 1.442695, %v1652_v24  ;;  %v1683_v24 = vmul.f32 1.442695, %v1653_v19 }
 0x297   : > { %v1805_v20 = vmul.f32 1.442695, %v1778_v53 }
 0x299   : > { %3825 = vpow2.f32 %v1805_v20 }
 0x29b   : > { %1847 = vadd.xlane.f32.xlu0 %v3812_v25 }
 0x29f   : > { %v3824_v63 = vpop.eup %3823  ;;  %1851 = vadd.xlane.f32.xlu0 %v3820_v31 }
 0x2a0   : > { %3296 = vmatmul.mubr.f32.gmra.mrb[2].mxu0 %v3824_v63 }
 0x2a3   : > { %v5470_v26 = vpop.eup %3825  ;;  %1853 = vadd.xlane.f32.xlu0 %v3824_v63 }
 0x2a4   : > { %3308 = vmatmul.mubr.f32.gmra.mrb[2].mxu1 %v5470_v26 }
 0x2a7   : > { %v1710_v54 = vpop.permute.xlu1 %1709 }
 0x2a8   : > { %v1771_v6 = vsub.f32 %v5154_v29, %v1710_v54  ;;  %1849 = vadd.xlane.f32.xlu1 %v3816_v18 }
 0x2aa   : > { %v1791_v22 = vmul.f32 1.442695, %v1771_v6  ;;  %v1817_v6 = vld [vmem:[#allocation3 + $0x10] sm:$0xff] }
 0x2ab   : > { %v1750_v45 = vpop.permute.xlu1 %1749 }
 0x2ac   : > { %3827 = vpow2.f32 %v1791_v22  ;;  %v1779_v35 = vsub.f32 %v5161_v1, %v1750_v45 }
 0x2ae   : > { %v1807_v50 = vmul.f32 1.442695, %v1779_v35  ;;  %v1833_v35 = vmul.f32 %v5420_v48, %v1817_v6  ;;  %v1819_v48 = vld [vmem:[#allocation3 + $0x20] sm:$0xff]  ;;  %v1914_v6 = vld [vmem:[#allocation4 + $0x10] sm:$0xff] }
 0x2b0   : > { %3829 = vpow2.f32 %v1807_v50 }
 0x2b6   : > { %v3828_v0 = vpop.eup %3827 }
 0x2b7   : > { %3298 = vmatprep.mubr.f32.mxu0 %v3828_v0  ;;  %1855 = vadd.xlane.f32.xlu1 %v3828_v0  ;;  %v1818_v0 = vld [vmem:[#allocation3 + $0x18] sm:$0xff] }
 0x2ba   : > { %v3830_v46 = vpop.eup %3829  ;;  %v1715_v43 = vpop.permute.xlu0 %1714 }
 0x2bb   : > { %v1772_v27 = vsub.f32 %v5190_v3, %v1715_v43  ;;  %3310 = vmatprep.mubr.f32.mxu1 %v3830_v46  ;;  %v1834_v43 = vmul.f32 %v5433_v52, %v1818_v0  ;;  %v1913_v52 = vld [vmem:[#allocation4 + $0x8] sm:$0xff]  ;;  %v1923_v0 = vld [vmem:[#allocation4 + $0x58] sm:$0xff] }
 0x2bd   : > { %v1793_v60 = vmul.f32 1.442695, %v1772_v27 }
 0x2be   : > { %v1755_v55 = vpop.permute.xlu1 %1754 }
 0x2bf   : > { %3831 = vpow2.f32 %v1793_v60  ;;  %v1780_v29 = vsub.f32 %v5206_v37, %v1755_v55 }
 0x2c1   : > { %v1809_v15 = vmul.f32 1.442695, %v1780_v29  ;;  %v1816_v29 = vld [vmem:[#allocation3 + $0x8] sm:$0xff] }
 0x2c3   : > { %3833 = vpow2.f32 %v1809_v15 }
 0x2c9   : > { %v3832_v10 = vpop.eup %3831 }
 0x2ca   : > { %1857 = vadd.xlane.f32.xlu0 %v3832_v10  ;;  %3299 = vmatmul.mubr.f32.gmra.mrb[4].mxu0 %v3832_v10 }
 0x2cd   : > { %v3834_v1 = vpop.eup %3833 }
 0x2ce   : > { %3311 = vmatmul.mubr.f32.gmra.mrb[4].mxu1 %v3834_v1 }
 0x2d1   : > { %v1720_v25 = vpop.permute.xlu0 %1719 }
 0x2d2   : > { %v1773_v5 = vsub.f32 %v5254_v2, %v1720_v25 }
 0x2d4   : > { %v1795_v13 = vmul.f32 1.442695, %v1773_v5  ;;  %v1760_v40 = vpop.permute.xlu1 %1759 }
 0x2d5   : > { %v1781_v3 = vsub.f32 %v5257_v23, %v1760_v40  ;;  %v1912_v40 = vld [vmem:[#allocation4] sm:$0xff] }
 0x2d6   : > { %3835 = vpow2.f32 %v1795_v13  ;;  %v1820_v13 = vld [vmem:[#allocation3 + $0x28] sm:$0xff] }
 0x2d7   : > { %v1811_v18 = vmul.f32 1.442695, %v1781_v3 }
 0x2d9   : > { %3837 = vpow2.f32 %v1811_v18  ;;  %v1836_v18 = vmul.f32 %v5443_v17, %v1820_v13 }
 0x2e0   : > { %v3836_v9 = vpop.eup %3835 }
 0x2e1   : > { %1859 = vadd.xlane.f32.xlu1 %v3836_v9  ;;  %3301 = vmatprep.mubr.f32.mxu0 %v3836_v9 }
 0x2e3   : > { %v3838_v37 = vpop.eup %3837  ;;  %v1725_v42 = vpop.permute.xlu0 %1724 }
 0x2e4   : > { %v1774_v36 = vsub.f32 %v5260_v28, %v1725_v42  ;;  %3313 = vmatprep.mubr.f32.mxu1 %v3838_v37 }
 0x2e5   : > { %1863 = vadd.xlane.f32.xlu1 %v5454_v33  ;;  %v1685_v33 = vmul.f32 1.442695, %v1654_v44 }
 0x2e6   : > { %v1797_v31 = vmul.f32 1.442695, %v1774_v36  ;;  %v1920_v36 = vld [vmem:[#allocation4 + $0x40] sm:$0xff] }
 0x2e7   : > { %v1765_v30 = vpop.permute.xlu1 %1764  ;;  %v1936_v21 = vpop.permute.xlu0 %1935 }
 0x2e8   : > { %3839 = vpow2.f32 %v1797_v31  ;;  %v1782_v2 = vsub.f32 %v5263_v38, %v1765_v30  ;;  %v2009_v3 = vmul.f32 %v1936_v21, %v1913_v52  ;;  %v1821_v21 = vld [vmem:[#allocation3 + $0x30] sm:$0xff] }
 0x2e9   : > { %1867 = vadd.xlane.f32.xlu1 %v3822_v56 }
 0x2ea   : > { %v1813_v23 = vmul.f32 1.442695, %v1782_v2 }
 0x2eb   : > { %v5499_v51 = vpop.permute.xlu0 %1950  ;;  %v1931_v47 = vpop.permute.xlu1 %1930 }
 0x2ec   : > { %3841 = vpow2.f32 %v1813_v23  ;;  %v2008_v9 = vmul.f32 %v1931_v47, %v1912_v40  ;;  %v1822_v40 = vld [vmem:[#allocation3 + $0x38] sm:$0xff] }
 0x2ed   : > { %1871 = vadd.xlane.f32.xlu1 %v3830_v46  ;;  %3843 = vpow2.f32 %v1681_v39 }
 0x2ee   : > { %3845 = vpow2.f32 %v1685_v33 }
 0x2ef   : > { %3847 = vpow2.f32 %v1683_v24  ;;  %v5501_v44 = vpop.permute.xlu0 %1960  ;;  %v1837_v24 = vmul.f32 %v5422_v12, %v1821_v21  ;;  %v1917_v21 = vld [vmem:[#allocation4 + $0x28] sm:$0xff] }
 0x2f1   : > { %1875 = vadd.xlane.f32.xlu1 %v3838_v37  ;;  %v1921_v37 = vld [vmem:[#allocation4 + $0x48] sm:$0xff] }
 0x2f2   : > { %v3840_v62 = vpop.eup %3839 }
 0x2f3   : > { %1861 = vadd.xlane.f32.xlu0 %v3840_v62  ;;  %3302 = vmatmul.mubr.f32.gmra.mrb[6].mxu0 %v3840_v62  ;;  %v1971_v7 = vpop.permute.xlu0 %1970 }
 0x2f4   : > { %v2016_v62 = vmul.f32 %v1971_v7, %v1920_v36 }
 0x2f6   : > { %v3842_v28 = vpop.eup %3841 }
 0x2f7   : > { %3314 = vmatmul.mubr.f32.gmra.mrb[6].mxu1 %v3842_v28  ;;  %1865 = vadd.xlane.f32.xlu0 %v5465_v34  ;;  %v5490_v38 = vpop.eup %3843  ;;  %v5503_v34 = vpop.permute.xlu1 %1940 }
 0x2f8   : > { %v5493_v61 = vpop.eup %3845  ;;  %v5510_v20 = vpop.permute.xlu0 %1980 }
 0x2f9   : > { %v5505_v56 = vpop.eup %3847 }
 0x2fb   : > { %1869 = vadd.xlane.f32.xlu0 %v5470_v26  ;;  %v5507_v53 = vpop.permute.xlu1 %1945  ;;  %v1831_v26 = vmul.f32 %v5414_v16, %v1815_v58  ;;  %v1832_v16 = vmul.f32 %v5403_v32, %v1816_v29  ;;  %v1823_v58 = vld [vmem:[#allocation3 + $0x40] sm:$0xff] }
 0x2fc   : > { %v5514_v59 = vpop.permute.xlu0 %1990  ;;  %v1839_v7 = vmul.f32 %v5431_v49, %v1823_v58 }
 0x2ff   : > { %1873 = vadd.xlane.f32.xlu0 %v3834_v1  ;;  %v5512_v63 = vpop.permute.xlu1 %1955  ;;  %v1835_v1 = vmul.f32 %v5416_v11, %v1819_v48 }
 0x302   : > { %1995 = vperm.xlu1 %3719, %v5490_v38  }
 0x303   : > { %1877 = vadd.xlane.f32.xlu0 %v3842_v28  ;;  %v5516_v19 = vpop.permute.xlu1 %1965 }
 0x306   : > { %2005 = vperm.xlu1 %3719, %v5493_v61  }
 0x307   : > { %v1976_v45 = vpop.permute.xlu1 %1975 }
 0x308   : > { %v2017_v23 = vmul.f32 %v1976_v45, %v1921_v37 }
 0x30b   : > { %v1986_v60 = vpop.permute.xlu1 %1985 }
 0x319   : > { %2000 = vperm.xlu0 %3720, %v5505_v56  }
 0x328   : > { %v1848_v54 = vpop.xlane.xlu0 %1847 }
 0x329   : > { %v1879_v22 = vadd.f32 %v1848_v54, %v1831_v26  ;;  %v1915_v26 = vld [vmem:[#allocation4 + $0x18] sm:$0xff] }
 0x32b   : > { %1896 = vst.msk [vmem:[#allocation3] sm:$0xff] %vm1895_vm2, %v1879_v22  ;;  %v2011_v22 = vmul.f32 %v5507_v53, %v1915_v26  ;;  %v1827_v53 = vld [vmem:[#allocation3 + $0x60] sm:$0xff]  ;;  %v1925_v26 = vld [vmem:[#allocation4 + $0x68] sm:$0xff] }
 0x32c   : > { %v1852_v50 = vpop.xlane.xlu0 %1851  ;;  %v1843_v52 = vmul.f32 %v5448_v57, %v1827_v53 }
 0x32d   : > { %v1881_v46 = vadd.f32 %v1852_v50, %v1833_v35  ;;  %v1825_v35 = vld [vmem:[#allocation3 + $0x50] sm:$0xff]  ;;  %v2010_v50 = vmul.f32 %v5503_v34, %v1914_v6 }
 0x32f   : > { %1898 = vst.msk [vmem:[#allocation3 + $0x10] sm:$0xff] %vm1895_vm2, %v1881_v46 }
 0x330   : > { %v1854_v27 = vpop.xlane.xlu0 %1853 }
 0x331   : > { %v1882_v55 = vadd.f32 %v1854_v27, %v1834_v43  ;;  %v1922_v27 = vld [vmem:[#allocation4 + $0x50] sm:$0xff] }
 0x333   : > { %1899 = vst.msk [vmem:[#allocation3 + $0x18] sm:$0xff] %vm1895_vm2, %v1882_v55 }
 0x335   : > { %v1850_v15 = vpop.xlane.xlu1 %1849 }
 0x336   : > { %v1880_v10 = vadd.f32 %v1850_v15, %v1832_v16  ;;  %v1841_v16 = vmul.f32 %v5441_v14, %v1825_v35  ;;  %v2019_v15 = vmul.f32 %v1986_v60, %v1923_v0  ;;  %v1829_v60 = vld [vmem:[#allocation3 + $0x70] sm:$0xff] }
 0x338   : > { %1897 = vst.msk [vmem:[#allocation3 + $0x8] sm:$0xff] %vm1895_vm2, %v1880_v10  ;;  %v2018_v10 = vmul.f32 %v5510_v20, %v1922_v27  ;;  %v1845_v20 = vmul.f32 %v5505_v56, %v1829_v60 }
 0x33f   : > { %v2239_v60 = vld [vmem:[#allocation3 + $0x8] sm:$0xff] (!%p3114_p2) }
 0x344   : > { %v1856_v25 = vpop.xlane.xlu1 %1855 }
 0x345   : > { %v1883_v5 = vadd.f32 %v1856_v25, %v1835_v1 }
 0x347   : > { %1900 = vst.msk [vmem:[#allocation3 + $0x20] sm:$0xff] %vm1895_vm2, %v1883_v5 }
 0x356   : > { %v3294_v32 = vpop.f32.mrb[0].mxu0 }
 0x357   : > { %v1858_v42 = vpop.xlane.xlu0 %1857  ;;  %v2186_v31 = vadd.f32 %v3294_v32, %v2009_v3  ;;  %v2106_v30 = vpop.f32.mrb[1].mxu0  ;;  %v1824_v32 = vld [vmem:[#allocation3 + $0x48] sm:$0xff] }
 0x358   : > { %v1884_v2 = vadd.f32 %v1858_v42, %v1836_v18  ;;  %v2185_v11 = vadd.f32 %v2106_v30, %v2008_v9  ;;  %v1838_v9 = vmul.f32 %v5450_v41, %v1822_v40  ;;  %v1840_v42 = vmul.f32 %v5456_v4, %v1824_v32  ;;  %v2242_v40 = vld [vmem:[#allocation3 + $0x20] sm:$0xff] (!%p3114_p2) }
 0x359   : > { %2203 = vst.msk [vmem:[#allocation4 + $0x8] sm:$0xff] %vm2201_vm3, %v2186_v31  ;;  %v1826_v31 = vld [vmem:[#allocation3 + $0x58] sm:$0xff] }
 0x35a   : > { %1901 = vst.msk [vmem:[#allocation3 + $0x28] sm:$0xff] %vm1895_vm2, %v1884_v2  ;;  %v3306_v39 = vpop.f32.mrb[0].mxu1  ;;  %v1842_v56 = vmul.f32 %v5461_v8, %v1826_v31  ;;  %v1916_v8 = vld [vmem:[#allocation4 + $0x20] sm:$0xff] }
 0x35b   : > { %2202 = vst.msk [vmem:[#allocation4] sm:$0xff] %vm2201_vm3, %v2185_v11  ;;  %v2194_v17 = vadd.f32 %v3306_v39, %v2017_v23  ;;  %v2146_v28 = vpop.f32.mrb[1].mxu1  ;;  %v1828_v11 = vld [vmem:[#allocation3 + $0x68] sm:$0xff]  ;;  %v1830_v39 = vld [vmem:[#allocation3 + $0x78] sm:$0xff] }
 0x35c   : > { %v2193_v33 = vadd.f32 %v2146_v28, %v2016_v62  ;;  %v1844_v41 = vmul.f32 %v5490_v38, %v1828_v11  ;;  %v1846_v4 = vmul.f32 %v5493_v61, %v1830_v39 }
 0x35d   : > { %2211 = vst.msk [vmem:[#allocation4 + $0x48] sm:$0xff] %vm2201_vm3, %v2194_v17 }
 0x35e   : > { %2210 = vst.msk [vmem:[#allocation4 + $0x40] sm:$0xff] %vm2201_vm3, %v2193_v33 }
 0x36e   : > { %v1860_v47 = vpop.xlane.xlu1 %1859 }
 0x36f   : > { %v1885_v54 = vadd.f32 %v1860_v47, %v1837_v24  ;;  %v2013_v24 = vmul.f32 %v5512_v63, %v1917_v21  ;;  %v2012_v47 = vmul.f32 %v5499_v51, %v1916_v8  ;;  %v1919_v51 = vld [vmem:[#allocation4 + $0x38] sm:$0xff] }
 0x371   : > { %1902 = vst.msk [vmem:[#allocation3 + $0x30] sm:$0xff] %vm1895_vm2, %v1885_v54 }
 0x372   : > { %v1864_v45 = vpop.xlane.xlu1 %1863 }
 0x373   : > { %v1887_v46 = vadd.f32 %v1864_v45, %v1839_v7  ;;  %v3297_v43 = vpop.f32.mrb[2].mxu0  ;;  %v1924_v7 = vld [vmem:[#allocation4 + $0x60] sm:$0xff] }
 0x374   : > { %v2188_v12 = vadd.f32 %v3297_v43, %v2011_v22  ;;  %v2116_v55 = vpop.f32.mrb[3].mxu0  ;;  %v2020_v45 = vmul.f32 %v5514_v59, %v1924_v7  ;;  %v2015_v43 = vmul.f32 %v5516_v19, %v1919_v51  ;;  %v2607_v51 = vld [vmem:[%s5847_s6 + $0x8] sm:$0xff] (!%p3114_p2) }
 0x375   : > { %1904 = vst.msk [vmem:[#allocation3 + $0x40] sm:$0xff] %vm1895_vm2, %v1887_v46  ;;  %v2187_v29 = vadd.f32 %v2116_v55, %v2010_v50  ;;  %v1918_v46 = vld [vmem:[#allocation4 + $0x30] sm:$0xff] }
 0x376   : > { %2205 = vst.msk [vmem:[#allocation4 + $0x18] sm:$0xff] %vm2201_vm3, %v2188_v12  ;;  %v1868_v49 = vpop.xlane.xlu1 %1867  ;;  %v2014_v27 = vmul.f32 %v5501_v44, %v1918_v46  ;;  %v1927_v12 = vld [vmem:[#allocation4 + $0x78] sm:$0xff]  ;;  %v2240_v44 = vld [vmem:[#allocation3 + $0x10] sm:$0xff] (!%p3114_p2) }
 0x377   : > { %2204 = vst.msk [vmem:[#allocation4 + $0x10] sm:$0xff] %vm2201_vm3, %v2187_v29  ;;  %v1889_v34 = vadd.f32 %v1868_v49, %v1841_v16  ;;  %v3309_v48 = vpop.f32.mrb[2].mxu1  ;;  %v1926_v16 = vld [vmem:[#allocation4 + $0x70] sm:$0xff]  ;;  %3852 = vrcp.f32 (!%p3114_p2), %v2240_v44  ;;  %v2619_v44 = vld [vmem:[%s5847_s6 + $0x68] sm:$0xff] (!%p3114_p2) }
 0x378   : > { %v2196_v1 = vadd.f32 %v3309_v48, %v2019_v15  ;;  %v2156_v25 = vpop.f32.mrb[3].mxu1  ;;  %v2244_v31 = vld [vmem:[#allocation3 + $0x30] sm:$0xff] (!%p3114_p2) }
 0x379   : > { %1906 = vst.msk [vmem:[#allocation3 + $0x50] sm:$0xff] %vm1895_vm2, %v1889_v34  ;;  %v2195_v5 = vadd.f32 %v2156_v25, %v2018_v10  ;;  %v2608_v46 = vld [vmem:[%s5847_s6 + $0x10] sm:$0xff] (!%p3114_p2) }
 0x37a   : > { %2213 = vst.msk [vmem:[#allocation4 + $0x58] sm:$0xff] %vm2201_vm3, %v2196_v1  ;;  %v1872_v14 = vpop.xlane.xlu1 %1871 }
 0x37b   : > { %2212 = vst.msk [vmem:[#allocation4 + $0x50] sm:$0xff] %vm2201_vm3, %v2195_v5  ;;  %v1891_v13 = vadd.f32 %v1872_v14, %v1843_v52  ;;  %v2238_v5 = vld [vmem:[#allocation3] sm:$0xff] (!%p3114_p2)  ;;  %v2241_v52 = vld [vmem:[#allocation3 + $0x18] sm:$0xff] (!%p3114_p2)  ;;  %v3985_v14 = vmov (!%p3114_p2), 0  }
 0x37c   : > { %3851 = vset.pattern.permute.xlu1 (!%p3114_p2), %v3985_v14  ;;  %3850 = vset.pattern.permute.xlu0 (!%p3114_p2), %v3985_v14  ;;  %3854 = vrcp.f32 (!%p3114_p2), %v2238_v5  ;;  %v2246_v39 = vld [vmem:[#allocation3 + $0x40] sm:$0xff] (!%p3114_p2) }
 0x37d   : > { %1908 = vst.msk [vmem:[#allocation3 + $0x60] sm:$0xff] %vm1895_vm2, %v1891_v13  ;;  %3856 = vrcp.f32 (!%p3114_p2), %v2241_v52  ;;  %v2243_v13 = vld [vmem:[#allocation3 + $0x28] sm:$0xff] (!%p3114_p2)  ;;  %v2270_v52 = vld [vmem:[#allocation4] sm:$0xff] (!%p3114_p2) }
 0x37e   : > { %v1876_v3 = vpop.xlane.xlu1 %1875  ;;  %3858 = vrcp.f32 (!%p3114_p2), %v2239_v60 }
 0x37f   : > { %v1893_v18 = vadd.f32 %v1876_v3, %v1845_v20  ;;  %v2382_v20 = vld [vmem:[%s5845_s4] sm:$0xff] (!%p3114_p2)  ;;  %v2383_v3 = vld [vmem:[%s5845_s4 + $0x8] sm:$0xff] (!%p3114_p2)  ;;  %3860 = vrcp.f32 (!%p3114_p2), %v2243_v13  ;;  %v2272_v13 = vld [vmem:[#allocation4 + $0x10] sm:$0xff] (!%p3114_p2) }
 0x380   : > { %v1862_v37 = vpop.xlane.xlu0 %1861  ;;  %3862 = vrcp.f32 (!%p3114_p2), %v2242_v40  ;;  %v2248_v21 = vld [vmem:[#allocation3 + $0x50] sm:$0xff] (!%p3114_p2) }
 0x381   : > { %1910 = vst.msk [vmem:[#allocation3 + $0x70] sm:$0xff] %vm1895_vm2, %v1893_v18  ;;  %v1886_v57 = vadd.f32 %v1862_v37, %v1838_v9  ;;  %v3500_v18 = vpack.c.bf16 (!%p3114_p2), %v2383_v3, %v2382_v20  ;;  %v2384_v9 = vld [vmem:[%s5845_s4 + $0x10] sm:$0xff] (!%p3114_p2)  ;;  %v2385_v37 = vld [vmem:[%s5845_s4 + $0x18] sm:$0xff] (!%p3114_p2)  ;;  %v2271_v20 = vld [vmem:[#allocation4 + $0x8] sm:$0xff] (!%p3114_p2) }
 0x382   : > { %v1996_v38 = vpop.permute.xlu1 %1995  ;;  %v3504_v32 = vpack.c.bf16 (!%p3114_p2), %v2385_v37, %v2384_v9 }
 0x383   : > { %1903 = vst.msk [vmem:[#allocation3 + $0x38] sm:$0xff] %vm1895_vm2, %v1886_v57  ;;  %v2021_v61 = vmul.f32 %v1996_v38, %v1925_v26  ;;  %v2386_v57 = vld [vmem:[%s5845_s4 + $0x20] sm:$0xff] (!%p3114_p2)  ;;  %3501 = vmatprep.subr.bf16.mxu0 (!%p3114_p2), %v3500_v18 }
 0x384   : > { %v1866_v36 = vpop.xlane.xlu0 %1865  ;;  %3503 = vmatpush3.bf16.msra.mxu0 (!%p3114_p2), %v3500_v18 }
 0x385   : > { %v1888_v30 = vadd.f32 %v1866_v36, %v1840_v42  ;;  %v2387_v42 = vld [vmem:[%s5845_s4 + $0x28] sm:$0xff] (!%p3114_p2)  ;;  %3505 = vmatprep.subr.bf16.mxu0 (!%p3114_p2), %v3504_v32 }
 0x386   : > { %v2006_v55 = vpop.permute.xlu1 %2005 }
 0x387   : > { %1905 = vst.msk [vmem:[#allocation3 + $0x48] sm:$0xff] %vm1895_vm2, %v1888_v30  ;;  %v2023_v10 = vmul.f32 %v2006_v55, %v1927_v12  ;;  %v3508_v30 = vpack.c.bf16 (!%p3114_p2), %v2387_v42, %v2386_v57  ;;  %v2610_v55 = vld [vmem:[%s5847_s6 + $0x20] sm:$0xff] (!%p3114_p2) }
 0x388   : > { %v1870_v2 = vpop.xlane.xlu0 %1869  ;;  %3507 = vmatpush3.bf16.msra.mxu0 (!%p3114_p2), %v3504_v32  ;;  %v2273_v32 = vld [vmem:[#allocation4 + $0x18] sm:$0xff] (!%p3114_p2) }
 0x389   : > { %v1890_v23 = vadd.f32 %v1870_v2, %v1842_v56  ;;  %v3853_v56 = vpop.eup (!%p3114_p2), %3852  ;;  %3509 = vmatprep.subr.bf16.mxu0 (!%p3114_p2), %v3508_v30 }
 0x38a   : > { %v2245_v36 = vld [vmem:[#allocation3 + $0x38] sm:$0xff] (!%p3114_p2)  ;;  %v3855_v2 = vpop.eup (!%p3114_p2), %3854  ;;  %2298 = vperm.xlu1 (!%p3114_p2), %3851, %v3853_v56  }
 0x38b   : > { %1907 = vst.msk [vmem:[#allocation3 + $0x58] sm:$0xff] %vm1895_vm2, %v1890_v23  ;;  %3864 = vrcp.f32 (!%p3114_p2), %v2245_v36  ;;  %v2388_v23 = vld [vmem:[%s5845_s4 + $0x30] sm:$0xff] (!%p3114_p2)  ;;  %2288 = vperm.xlu0 (!%p3114_p2), %3850, %v3855_v2  }
 0x38c   : > { %v1874_v62 = vpop.xlane.xlu0 %1873  ;;  %3866 = vrcp.f32 (!%p3114_p2), %v2244_v31  ;;  %3511 = vmatpush3.bf16.msra.mxu0 (!%p3114_p2), %v3508_v30 }
 0x38d   : > { %v1892_v17 = vadd.f32 %v1874_v62, %v1844_v41  ;;  %v2389_v41 = vld [vmem:[%s5845_s4 + $0x38] sm:$0xff] (!%p3114_p2)  ;;  %v3857_v62 = vpop.eup (!%p3114_p2), %3856 }
 0x38e   : > { %v2247_v11 = vld [vmem:[#allocation3 + $0x48] sm:$0xff] (!%p3114_p2)  ;;  %2303 = vperm.xlu1 (!%p3114_p2), %3851, %v3857_v62  }
 0x38f   : > { %1909 = vst.msk [vmem:[#allocation3 + $0x68] sm:$0xff] %vm1895_vm2, %v1892_v17  ;;  %v3859_v17 = vpop.eup (!%p3114_p2), %3858  ;;  %3868 = vrcp.f32 (!%p3114_p2), %v2247_v11 }
 0x390   : > { %v1878_v28 = vpop.xlane.xlu0 %1877  ;;  %3870 = vrcp.f32 (!%p3114_p2), %v2246_v39  ;;  %2293 = vperm.xlu0 (!%p3114_p2), %3850, %v3859_v17   ;;  %v2278_v17 = vld [vmem:[#allocation4 + $0x40] sm:$0xff] (!%p3114_p2) }
 0x391   : > { %v1894_v33 = vadd.f32 %v1878_v28, %v1846_v4  ;;  %v3512_v4 = vpack.c.bf16 (!%p3114_p2), %v2389_v41, %v2388_v23 }
 0x392   : > { %v2249_v28 = vld [vmem:[#allocation3 + $0x58] sm:$0xff] (!%p3114_p2) }
 0x393   : > { %1911 = vst.msk [vmem:[#allocation3 + $0x78] sm:$0xff] %vm1895_vm2, %v1894_v33  ;;  %v3861_v33 = vpop.eup (!%p3114_p2), %3860  ;;  %3513 = vmatprep.subr.bf16.mxu0 (!%p3114_p2), %v3512_v4  ;;  %3872 = vrcp.f32 (!%p3114_p2), %v2249_v28 }
 0x394   : > { %v3863_v8 = vpop.eup (!%p3114_p2), %3862  ;;  %2313 = vperm.xlu1 (!%p3114_p2), %3851, %v3861_v33   ;;  %3874 = vrcp.f32 (!%p3114_p2), %v2248_v21  ;;  %3515 = vmatpush3.bf16.msra.mxu0 (!%p3114_p2), %v3512_v4 }
 0x395   : > { %2308 = vperm.xlu0 (!%p3114_p2), %3850, %v3863_v8   ;;  %v2279_v8 = vld [vmem:[#allocation4 + $0x48] sm:$0xff] (!%p3114_p2) }
 0x398   : > { %v2001_v15 = vpop.permute.xlu0 %2000 }
 0x399   : > { %v2022_v34 = vmul.f32 %v2001_v15, %v1926_v16  ;;  %v2612_v15 = vld [vmem:[%s5847_s6 + $0x30] sm:$0xff] (!%p3114_p2) }
 0x39a   : > { %v2253_v38 = vld [vmem:[#allocation3 + $0x78] sm:$0xff] (!%p3114_p2) }
 0x39d   : > { %v3300_v58 = vpop.f32.mrb[4].mxu0 }
 0x39e   : > { %v2190_v54 = vadd.f32 %v3300_v58, %v2013_v24  ;;  %v2126_v6 = vpop.f32.mrb[5].mxu0  ;;  %v2251_v24 = vld [vmem:[#allocation3 + $0x68] sm:$0xff] (!%p3114_p2)  ;;  %v2250_v58 = vld [vmem:[#allocation3 + $0x60] sm:$0xff] (!%p3114_p2) }
 0x39f   : > { %v2189_v22 = vadd.f32 %v2126_v6, %v2012_v47  ;;  %v3865_v47 = vpop.eup (!%p3114_p2), %3864  ;;  %3876 = vrcp.f32 (!%p3114_p2), %v2251_v24  ;;  %v2252_v6 = vld [vmem:[#allocation3 + $0x70] sm:$0xff] (!%p3114_p2) }
 0x3a0   : > { %2207 = vst.msk [vmem:[#allocation4 + $0x28] sm:$0xff] %vm2201_vm3, %v2190_v54  ;;  %v3867_v26 = vpop.eup (!%p3114_p2), %3866  ;;  %2323 = vperm.xlu1 (!%p3114_p2), %3851, %v3865_v47   ;;  %3878 = vrcp.f32 (!%p3114_p2), %v2250_v58  ;;  %v2280_v24 = vld [vmem:[#allocation4 + $0x50] sm:$0xff] (!%p3114_p2) }
 0x3a1   : > { %2206 = vst.msk [vmem:[#allocation4 + $0x20] sm:$0xff] %vm2201_vm3, %v2189_v22  ;;  %v3312_v35 = vpop.f32.mrb[4].mxu1  ;;  %v3869_v54 = vpop.eup (!%p3114_p2), %3868  ;;  %2318 = vperm.xlu0 (!%p3114_p2), %3850, %v3867_v26   ;;  %3880 = vrcp.f32 (!%p3114_p2), %v2253_v38 }
 0x3a2   : > { %v2198_v50 = vadd.f32 %v3312_v35, %v2021_v61  ;;  %v2166_v0 = vpop.f32.mrb[5].mxu1  ;;  %v3871_v7 = vpop.eup (!%p3114_p2), %3870  ;;  %3882 = vrcp.f32 (!%p3114_p2), %v2252_v6 }
 0x3a3   : > { %v2197_v63 = vadd.f32 %v2166_v0, %v2020_v45  ;;  %v3873_v22 = vpop.eup (!%p3114_p2), %3872 }
 0x3a4   : > { %2215 = vst.msk [vmem:[#allocation4 + $0x68] sm:$0xff] %vm2201_vm3, %v2198_v50  ;;  %2333 = vperm.xlu1 (!%p3114_p2), %3851, %v3869_v54   ;;  %v3875_v61 = vpop.eup (!%p3114_p2), %3874  ;;  %v2281_v54 = vld [vmem:[#allocation4 + $0x58] sm:$0xff] (!%p3114_p2) }
 0x3a5   : > { %2214 = vst.msk [vmem:[#allocation4 + $0x60] sm:$0xff] %vm2201_vm3, %v2197_v63  ;;  %2328 = vperm.xlu0 (!%p3114_p2), %3850, %v3871_v7   ;;  %v2606_v63 = vld [vmem:[%s5847_s6] sm:$0xff] (!%p3114_p2) }
 0x3a7   : > { %v2275_v56 = vld [vmem:[#allocation4 + $0x28] sm:$0xff] (!%p3114_p2) }
 0x3a8   : > { %2343 = vperm.xlu1 (!%p3114_p2), %3851, %v3873_v22   ;;  %v2274_v57 = vld [vmem:[#allocation4 + $0x20] sm:$0xff] (!%p3114_p2) }
 0x3a9   : > { %v3877_v45 = vpop.eup (!%p3114_p2), %3876  ;;  %2338 = vperm.xlu0 (!%p3114_p2), %3850, %v3875_v61  }
 0x3aa   : > { %v3879_v35 = vpop.eup (!%p3114_p2), %3878 }
 0x3ab   : > { %v3881_v50 = vpop.eup (!%p3114_p2), %3880 }
 0x3ac   : > { %2353 = vperm.xlu1 (!%p3114_p2), %3851, %v3877_v45   ;;  %v3883_v0 = vpop.eup (!%p3114_p2), %3882  ;;  %v2282_v6 = vld [vmem:[#allocation4 + $0x60] sm:$0xff] (!%p3114_p2) }
 0x3ad   : > { %2348 = vperm.xlu0 (!%p3114_p2), %3850, %v3879_v35   ;;  %v2283_v35 = vld [vmem:[#allocation4 + $0x68] sm:$0xff] (!%p3114_p2) }
 0x3b0   : > { %2363 = vperm.xlu1 (!%p3114_p2), %3851, %v3881_v50  }
 0x3b1   : > { %2358 = vperm.xlu0 (!%p3114_p2), %3850, %v3883_v0  }
 0x3c6   : > { %v3303_v29 = vpop.f32.mrb[6].mxu0 }
 0x3c7   : > { %v2192_v59 = vadd.f32 %v3303_v29, %v2015_v43  ;;  %v2136_v49 = vpop.f32.mrb[7].mxu0  ;;  %v3516_v43 = vpack.c.bf16 (!%p3114_p2), %v2607_v51, %v2606_v63  ;;  %v2611_v29 = vld [vmem:[%s5847_s6 + $0x28] sm:$0xff] (!%p3114_p2) }
 0x3c8   : > { %v2191_v53 = vadd.f32 %v2136_v49, %v2014_v27  ;;  %2237 = sbr.rel (%p3114_p2) target bundleno = 1728 (0x6c0), region = 68  ;;  %v2609_v27 = vld [vmem:[%s5847_s6 + $0x18] sm:$0xff] (!%p3114_p2)  ;;  %v3524_v16 = vpack.c.bf16 (!%p3114_p2), %v2611_v29, %v2610_v55 }
 0x3c9   : > { %2209 = vst.msk [vmem:[#allocation4 + $0x38] sm:$0xff] %vm2201_vm3, %v2192_v59  ;;  %v3520_v12 = vpack.c.bf16 (!%p3114_p2), %v2609_v27, %v2608_v46  ;;  %3517 = vmatprep.subr.bf16.mxu1 (!%p3114_p2), %v3516_v43  ;;  %v2613_v59 = vld [vmem:[%s5847_s6 + $0x38] sm:$0xff] (!%p3114_p2) }
 0x3ca   : > { %2208 = vst.msk [vmem:[#allocation4 + $0x30] sm:$0xff] %vm2201_vm3, %v2191_v53  ;;  %v3315_v48 = vpop.f32.mrb[6].mxu1  ;;  %3519 = vmatpush3.bf16.msra.mxu1 (!%p3114_p2), %v3516_v43  ;;  %v3528_v49 = vpack.c.bf16 (!%p3114_p2), %v2613_v59, %v2612_v15  ;;  %v2614_v53 = vld [vmem:[%s5847_s6 + $0x40] sm:$0xff] (!%p3114_p2)  ;;  %v2621_v55 = vld [vmem:[%s5847_s6 + $0x78] sm:$0xff] (!%p3114_p2)  ;;  %v2791_v15 = vld [vmem:[%s5849_s8 + $0x8] sm:$0xff] (!%p3114_p2) }
 0x3cb   : > { %v2200_v1 = vadd.f32 %v3315_v48, %v2023_v10  ;;  %v2176_v25 = vpop.f32.mrb[7].mxu1  ;;  %3521 = vmatprep.subr.bf16.mxu1 (!%p3114_p2), %v3520_v12  ;;  %v2615_v10 = vld [vmem:[%s5847_s6 + $0x48] sm:$0xff] (!%p3114_p2)  ;;  %v2616_v48 = vld [vmem:[%s5847_s6 + $0x50] sm:$0xff] (!%p3114_p2) }
 0x3cc   : > { %v2199_v19 = vadd.f32 %v2176_v25, %v2022_v34  ;;  %v3532_v34 = vpack.c.bf16 (!%p3114_p2), %v2615_v10, %v2614_v53  ;;  %v2792_v59 = vld [vmem:[%s5849_s8 + $0x10] sm:$0xff] (!%p3114_p2)  ;;  %v2793_v53 = vld [vmem:[%s5849_s8 + $0x18] sm:$0xff] (!%p3114_p2) }
 0x3cd   : > { %2217 = vst.msk [vmem:[#allocation4 + $0x78] sm:$0xff] %vm2201_vm3, %v2200_v1  ;;  %v2617_v1 = vld [vmem:[%s5847_s6 + $0x58] sm:$0xff] (!%p3114_p2)  ;;  %v3552_v10 = vpack.c.bf16 (!%p3114_p2), %v2793_v53, %v2792_v59 }
 0x3ce   : > { %2216 = vst.msk [vmem:[#allocation4 + $0x70] sm:$0xff] %vm2201_vm3, %v2199_v19  ;;  %3523 = vmatpush3.bf16.msra.mxu1 (!%p3114_p2), %v3520_v12  ;;  %v3536_v25 = vpack.c.bf16 (!%p3114_p2), %v2617_v1, %v2616_v48  ;;  %v2618_v19 = vld [vmem:[%s5847_s6 + $0x60] sm:$0xff] (!%p3114_p2)  ;;  %v2620_v12 = vld [vmem:[%s5847_s6 + $0x70] sm:$0xff] (!%p3114_p2)  ;;  %v2795_v48 = vld [vmem:[%s5849_s8 + $0x28] sm:$0xff] (!%p3114_p2) }
 0x3cf   : > { %3525 = vmatprep.subr.bf16.mxu1 %v3524_v16  ;;  %v3540_v5 = vpack.c.bf16 %v2619_v44, %v2618_v19  ;;  %v3544_v29 = vpack.c.bf16 %v2621_v55, %v2620_v12  ;;  %v2797_v19 = vld [vmem:[%s5849_s8 + $0x38] sm:$0xff] }
 0x3d0   : > { %v2277_v39 = vld [vmem:[#allocation4 + $0x38] sm:$0xff] }
 0x3d1   : > { %v2276_v2 = vld [vmem:[#allocation4 + $0x30] sm:$0xff] }
 0x3d2   : > { %3527 = vmatpush3.bf16.msra.mxu1 %v3524_v16  ;;  %v2790_v16 = vld [vmem:[%s5849_s8] sm:$0xff] }
 0x3d3   : > { %3529 = vmatprep.subr.bf16.mxu1 %v3528_v49 }
 0x3d4   : > { %v2285_v46 = vld [vmem:[#allocation4 + $0x78] sm:$0xff] }
 0x3d5   : > { %v2284_v50 = vld [vmem:[#allocation4 + $0x70] sm:$0xff] }
 0x3d6   : > { %3531 = vmatpush3.bf16.msra.mxu1 %v3528_v49  ;;  %v3548_v49 = vpack.c.bf16 %v2791_v15, %v2790_v16 }
 0x3d7   : > { %3533 = vmatprep.subr.bf16.mxu1 %v3532_v34 }
 0x3d8   : > { %3549 = vmatprep.subr.bf16.mxu0 %v3548_v49 }
 0x3da   : > { %3535 = vmatpush3.bf16.msra.mxu1 %v3532_v34  ;;  %v2794_v34 = vld [vmem:[%s5849_s8 + $0x20] sm:$0xff] }
 0x3db   : > { %3537 = vmatprep.subr.bf16.mxu1 %v3536_v25  ;;  %v3556_v1 = vpack.c.bf16 %v2795_v48, %v2794_v34  ;;  %v2804_v34 = vld [vmem:[%s5849_s8 + $0x70] sm:$0xff]  ;;  %v2805_v48 = vld [vmem:[%s5849_s8 + $0x78] sm:$0xff] }
 0x3de   : > { %3539 = vmatpush3.bf16.msra.mxu1 %v3536_v25  ;;  %v2796_v25 = vld [vmem:[%s5849_s8 + $0x30] sm:$0xff] }
 0x3df   : > { %3541 = vmatprep.subr.bf16.mxu1 %v3540_v5  ;;  %v5687_v44 = vpack.c.bf16 %v2797_v19, %v2796_v25  ;;  %v3132_v25 = vld [vmem:[%s5848_s7] ss:$0 sm:$0xff] }
 0x3e2   : > { %3543 = vmatpush3.bf16.msra.mxu1 %v3540_v5  ;;  %v2798_v5 = vld [vmem:[%s5849_s8 + $0x40] sm:$0xff] }
 0x3e3   : > { %3545 = vmatprep.subr.bf16.mxu1 %v3544_v29 }
 0x3e6   : > { %3547 = vmatpush3.bf16.msra.mxu1 %v3544_v29 }
 0x3e7   : > { %3596 = vmatprep.subr.bf16.mxu1 %v3548_v49 }
 0x409   : > { %v2299_v14 = vpop.permute.xlu1 %2298 }
 0x40a   : > { %v2289_v60 = vpop.permute.xlu0 %2288  ;;  %v2368_v18 = vmul.f32 %v2299_v14, %v2272_v13  ;;  %v2801_v13 = vld [vmem:[%s5849_s8 + $0x58] sm:$0xff] }
 0x40b   : > { %v2366_v40 = vmul.f32 %v2289_v60, %v2270_v52  ;;  %v2799_v52 = vld [vmem:[%s5849_s8 + $0x48] sm:$0xff]  ;;  %v2800_v60 = vld [vmem:[%s5849_s8 + $0x50] sm:$0xff] }
 0x40c   : > { %v5696_v14 = vpack.c.bf16 %v2799_v52, %v2798_v5 }
 0x40d   : > { %3332 = vmatprep.mubr.msk.f32.mxu0 %vm2201_vm3, %v2366_v40  ;;  %v2304_v3 = vpop.permute.xlu1 %2303  ;;  %v5706_v40 = vpack.c.bf16 %v2801_v13, %v2800_v60 }
 0x40e   : > { %v2369_v31 = vmul.f32 %v2304_v3, %v2273_v32  ;;  %v2803_v3 = vld [vmem:[%s5849_s8 + $0x68] sm:$0xff] }
 0x40f   : > { %v2294_v9 = vpop.permute.xlu0 %2293 }
 0x410   : > { %v2367_v37 = vmul.f32 %v2294_v9, %v2271_v20  ;;  %v2802_v20 = vld [vmem:[%s5849_s8 + $0x60] sm:$0xff] }
 0x411   : > { %v5724_v9 = vld [vmem:[%s5846_s5] ss:$0 sm:$0xff] }
 0x412   : > { %3333 = vmatmul.mubr.msk.f32.vlgmr.msra.gmra.mrb[0].mxu0 %vm2201_vm3, %v2367_v37 }
 0x413   : > { %v2314_v42 = vpop.permute.xlu1 %2313  ;;  %3335 = vmatprep.mubr.msk.f32.mxu0 %vm2201_vm3, %v2368_v18  ;;  %3551 = vmatpush3.bf16.msra.mxu0 %v3548_v49  ;;  %v5716_v18 = vpack.c.bf16 %v2803_v3, %v2802_v20 }
 0x414   : > { %v2309_v36 = vpop.permute.xlu0 %2308  ;;  %v2371_v41 = vmul.f32 %v2314_v42, %v2275_v56  ;;  %3553 = vmatprep.subr.bf16.mxu0 %v3552_v10 }
 0x415   : > { %v2370_v30 = vmul.f32 %v2309_v36, %v2274_v57 }
 0x416   : > { %3336 = vmatmul.mubr.msk.f32.gmra.mrb[2].mxu0 %vm2201_vm3, %v2369_v31 }
 0x417   : > { %3338 = vmatprep.mubr.msk.f32.mxu0 %vm2201_vm3, %v2370_v30  ;;  %3555 = vmatpush3.bf16.msra.mxu0 %v3552_v10 }
 0x418   : > { %3557 = vmatprep.subr.bf16.mxu0 %v3556_v1 }
 0x41a   : > { %3339 = vmatmul.mubr.msk.f32.gmra.mrb[4].mxu0 %vm2201_vm3, %v2371_v41 }
 0x41b   : > { %3559 = vmatpush3.bf16.msra.mxu0 %v3556_v1 }
 0x41c   : > { %3561 = vmatprep.subr.bf16.mxu0 %v5687_v44 }
 0x41f   : > { %v2324_v11 = vpop.permute.xlu1 %2323  ;;  %3563 = vmatpush3.bf16.msra.mxu0 %v5687_v44 }
 0x420   : > { %v2319_v23 = vpop.permute.xlu0 %2318  ;;  %v2373_v33 = vmul.f32 %v2324_v11, %v2277_v39  ;;  %3565 = vmatprep.subr.bf16.mxu0 %v5696_v14 }
 0x421   : > { %v2372_v62 = vmul.f32 %v2319_v23, %v2276_v2 }
 0x423   : > { %v2334_v4 = vpop.permute.xlu1 %2333  ;;  %3341 = vmatprep.mubr.msk.f32.mxu0 %vm2201_vm3, %v2372_v62  ;;  %3567 = vmatpush3.bf16.msra.mxu0 %v5696_v14 }
 0x424   : > { %v2329_v28 = vpop.permute.xlu0 %2328  ;;  %3342 = vmatmul.mubr.msk.f32.gmra.mrb[6].mxu0 %vm2201_vm3, %v2373_v33  ;;  %v2375_v26 = vmul.f32 %v2334_v4, %v2279_v8  ;;  %3569 = vmatprep.subr.bf16.mxu0 %v5706_v40 }
 0x425   : > { %v2374_v21 = vmul.f32 %v2329_v28, %v2278_v17 }
 0x427   : > { %v2344_v47 = vpop.permute.xlu1 %2343  ;;  %3344 = vmatprep.mubr.msk.f32.mxu0 %vm2201_vm3, %v2374_v21  ;;  %3571 = vmatpush3.bf16.msra.mxu0 %v5706_v40 }
 0x428   : > { %v2339_v58 = vpop.permute.xlu0 %2338  ;;  %3345 = vmatmul.mubr.msk.f32.gmra.mrb[8].mxu0 %vm2201_vm3, %v2375_v26  ;;  %v2377_v61 = vmul.f32 %v2344_v47, %v2281_v54  ;;  %3573 = vmatprep.subr.bf16.mxu0 %v5716_v18 }
 0x429   : > { %v2376_v38 = vmul.f32 %v2339_v58, %v2280_v24 }
 0x42b   : > { %v2354_v7 = vpop.permute.xlu1 %2353  ;;  %3347 = vmatprep.mubr.msk.f32.mxu0 %vm2201_vm3, %v2376_v38  ;;  %3575 = vmatpush3.bf16.msra.mxu0 %v5716_v18 }
 0x42c   : > { %v2349_v22 = vpop.permute.xlu0 %2348  ;;  %3348 = vmatmul.mubr.msk.f32.gmra.mrb[10].mxu0 %vm2201_vm3, %v2377_v61  ;;  %v2379_v63 = vmul.f32 %v2354_v7, %v2283_v35 }
 0x42d   : > { %v2378_v45 = vmul.f32 %v2349_v22, %v2282_v6 }
 0x42f   : > { %3350 = vmatprep.mubr.msk.f32.mxu0 %vm2201_vm3, %v2378_v45  ;;  %v2364_v43 = vpop.permute.xlu1 %2363 }
 0x430   : > { %v2359_v0 = vpop.permute.xlu0 %2358  ;;  %3351 = vmatmul.mubr.msk.f32.gmra.mrb[12].mxu0 %vm2201_vm3, %v2379_v63  ;;  %v2381_v27 = vmul.f32 %v2364_v43, %v2285_v46 }
 0x431   : > { %v2380_v51 = vmul.f32 %v2359_v0, %v2284_v50 }
 0x433   : > { %3353 = vmatprep.mubr.msk.f32.mxu0 %vm2201_vm3, %v2380_v51 }
 0x434   : > { %3354 = vmatmul.mubr.msk.f32.gmra.mrb[14].mxu0 %vm2201_vm3, %v2381_v27 }
 0x4e5   : > { %v3334_v37 = vpop.f32.mrb[0].mxu0 }
 0x4e6   : > { %v2517_v32 = vadd.f32 %v3334_v37, %v5724_v9  ;;  %v2511_v57 = vpop.f32.mrb[1].mxu0 }
 0x4e7   : > { %v2512_v42 = vadd.f32 %v5724_v9, %v2511_v57 }
 0x4e8   : > { %v2591_v30 = vmax.f32 %v2517_v32, 0.0 }
 0x4e9   : > { %v3337_v36 = vpop.f32.mrb[2].mxu0  ;;  %v2590_v31 = vmax.f32 %v2512_v42, 0.0 }
 0x4ea   : > { %v2527_v56 = vadd.f32 %v3337_v36, %v5724_v9  ;;  %v2521_v2 = vpop.f32.mrb[3].mxu0 }
 0x4eb   : > { %v2522_v11 = vadd.f32 %v5724_v9, %v2521_v2  ;;  %3388 = vmatprep.mubr.f32.mxu1 %v2590_v31 }
 0x4ec   : > { %3389 = vmatmul.mubr.f32.vlgmr.msra.gmra.mrb[0].mxu1 %v2591_v30  ;;  %v2593_v62 = vmax.f32 %v2527_v56, 0.0 }
 0x4ed   : > { %v2592_v23 = vmax.f32 %v2522_v11, 0.0  ;;  %v3340_v41 = vpop.f32.mrb[4].mxu0  ;;  %3604 = vmatpush3.bf16.msra.mxu1 %v3548_v49 }
 0x4ee   : > { %v2537_v39 = vadd.f32 %v3340_v41, %v5724_v9  ;;  %v2531_v17 = vpop.f32.mrb[5].mxu0  ;;  %3597 = vmatprep.subr.bf16.mxu1 %v3552_v10 }
 0x4ef   : > { %v2532_v4 = vadd.f32 %v5724_v9, %v2531_v17  ;;  %3391 = vmatprep.mubr.f32.mxu1 %v2592_v23 }
 0x4f0   : > { %3392 = vmatmul.mubr.f32.gmra.mrb[2].mxu1 %v2593_v62  ;;  %v2595_v21 = vmax.f32 %v2537_v39, 0.0 }
 0x4f1   : > { %v2594_v28 = vmax.f32 %v2532_v4, 0.0  ;;  %3605 = vmatpush3.bf16.msra.mxu1 %v3552_v10 }
 0x4f2   : > { %3598 = vmatprep.subr.bf16.mxu1 %v3556_v1 }
 0x4f3   : > { %3394 = vmatprep.mubr.f32.mxu1 %v2594_v28 }
 0x4f4   : > { %3395 = vmatmul.mubr.f32.gmra.mrb[4].mxu1 %v2595_v21 }
 0x4f5   : > { %3606 = vmatpush3.bf16.msra.mxu1 %v3556_v1  ;;  %v3576_v1 = vpack.c.bf16 %v2805_v48, %v2804_v34 }
 0x4f6   : > { %3599 = vmatprep.subr.bf16.mxu1 %v5687_v44 }
 0x4f7   : > { %v3343_v33 = vpop.f32.mrb[6].mxu0  ;;  %3577 = vmatprep.subr.bf16.mxu0 %v3576_v1 }
 0x4f8   : > { %v2547_v8 = vadd.f32 %v3343_v33, %v5724_v9  ;;  %v2541_v24 = vpop.f32.mrb[7].mxu0  ;;  %3579 = vmatpush3.bf16.msra.mxu0 %v3576_v1 }
 0x4f9   : > { %v2542_v47 = vadd.f32 %v5724_v9, %v2541_v24  ;;  %3607 = vmatpush3.bf16.msra.mxu1 %v5687_v44 }
 0x4fa   : > { %v2597_v38 = vmax.f32 %v2547_v8, 0.0  ;;  %3600 = vmatprep.subr.bf16.mxu1 %v5696_v14 }
 0x4fb   : > { %v2596_v58 = vmax.f32 %v2542_v47, 0.0  ;;  %v3346_v26 = vpop.f32.mrb[8].mxu0 }
 0x4fc   : > { %v2557_v54 = vadd.f32 %v3346_v26, %v5724_v9  ;;  %v2551_v6 = vpop.f32.mrb[9].mxu0 }
 0x4fd   : > { %v2552_v7 = vadd.f32 %v5724_v9, %v2551_v6  ;;  %3397 = vmatprep.mubr.f32.mxu1 %v2596_v58  ;;  %3608 = vmatpush3.bf16.msra.mxu1 %v5696_v14 }
 0x4fe   : > { %3398 = vmatmul.mubr.f32.gmra.mrb[6].mxu1 %v2597_v38  ;;  %v2599_v45 = vmax.f32 %v2557_v54, 0.0  ;;  %3601 = vmatprep.subr.bf16.mxu1 %v5706_v40 }
 0x4ff   : > { %v2598_v22 = vmax.f32 %v2552_v7, 0.0  ;;  %v3349_v61 = vpop.f32.mrb[10].mxu0 }
 0x500   : > { %v2567_v35 = vadd.f32 %v3349_v61, %v5724_v9  ;;  %v2561_v50 = vpop.f32.mrb[11].mxu0 }
 0x501   : > { %v2562_v0 = vadd.f32 %v5724_v9, %v2561_v50  ;;  %3400 = vmatprep.mubr.f32.mxu1 %v2598_v22  ;;  %3609 = vmatpush3.bf16.msra.mxu1 %v5706_v40 }
 0x502   : > { %3401 = vmatmul.mubr.f32.gmra.mrb[8].mxu1 %v2599_v45  ;;  %v2601_v46 = vmax.f32 %v2567_v35, 0.0  ;;  %3602 = vmatprep.subr.bf16.mxu1 %v5716_v18 }
 0x503   : > { %v2600_v63 = vmax.f32 %v2562_v0, 0.0  ;;  %v3352_v51 = vpop.f32.mrb[12].mxu0 }
 0x504   : > { %v2577_v43 = vadd.f32 %v3352_v51, %v5724_v9  ;;  %v2571_v27 = vpop.f32.mrb[13].mxu0 }
 0x505   : > { %v2572_v12 = vadd.f32 %v5724_v9, %v2571_v27  ;;  %3403 = vmatprep.mubr.f32.mxu1 %v2600_v63  ;;  %3610 = vmatpush3.bf16.msra.mxu1 %v5716_v18 }
 0x506   : > { %3404 = vmatmul.mubr.f32.gmra.mrb[10].mxu1 %v2601_v46  ;;  %v2603_v16 = vmax.f32 %v2577_v43, 0.0  ;;  %3603 = vmatprep.subr.bf16.mxu1 %v3576_v1  ;;  %v3133_v46 = vld [vmem:[%s5850_s9] ss:$0 sm:$0xff] }
 0x507   : > { %v2602_v55 = vmax.f32 %v2572_v12, 0.0  ;;  %v3355_v29 = vpop.f32.mrb[14].mxu0 }
 0x508   : > { %v2587_v15 = vadd.f32 %v3355_v29, %v5724_v9  ;;  %v2581_v59 = vpop.f32.mrb[15].mxu0 }
 0x509   : > { %v2582_v49 = vadd.f32 %v5724_v9, %v2581_v59  ;;  %3406 = vmatprep.mubr.f32.mxu1 %v2602_v55  ;;  %3611 = vmatpush3.bf16.msra.mxu1 %v3576_v1 }
 0x50a   : > { %3407 = vmatmul.mubr.f32.gmra.mrb[12].mxu1 %v2603_v16  ;;  %v2605_v10 = vmax.f32 %v2587_v15, 0.0 }
 0x50b   : > { %v2604_v53 = vmax.f32 %v2582_v49, 0.0 }
 0x50d   : > { %3409 = vmatprep.mubr.f32.mxu1 %v2604_v53 }
 0x50e   : > { %3410 = vmatmul.mubr.f32.gmra.mrb[14].mxu1 %v2605_v10 }
 0x5bf   : > { %v3390_v19 = vpop.f32.mrb[0].mxu1 }
 0x5c0   : > { %v2701_v44 = vadd.f32 %v3390_v19, %v3132_v25  ;;  %v2695_v5 = vpop.f32.mrb[1].mxu1 }
 0x5c1   : > { %v2696_v52 = vadd.f32 %v3132_v25, %v2695_v5 }
 0x5c2   : > { %v2775_v13 = vmax.f32 %v2701_v44, 0.0 }
 0x5c3   : > { %v2774_v14 = vmax.f32 %v2696_v52, 0.0  ;;  %v3393_v60 = vpop.f32.mrb[2].mxu1 }
 0x5c4   : > { %v2711_v40 = vadd.f32 %v3393_v60, %v3132_v25  ;;  %v2705_v20 = vpop.f32.mrb[3].mxu1 }
 0x5c5   : > { %v2706_v3 = vadd.f32 %v3132_v25, %v2705_v20  ;;  %3444 = vmatprep.mubr.f32.mxu0 %v2774_v14 }
 0x5c6   : > { %3445 = vmatmul.mubr.f32.vlgmr.msra.gmra.mrb[16].mxu0 %v2775_v13  ;;  %v2777_v37 = vmax.f32 %v2711_v40, 0.0 }
 0x5c7   : > { %v2776_v18 = vmax.f32 %v2706_v3, 0.0  ;;  %v3396_v9 = vpop.f32.mrb[4].mxu1 }
 0x5c8   : > { %v2721_v32 = vadd.f32 %v3396_v9, %v3132_v25  ;;  %v2715_v57 = vpop.f32.mrb[5].mxu1 }
 0x5c9   : > { %v2716_v42 = vadd.f32 %v3132_v25, %v2715_v57  ;;  %3447 = vmatprep.mubr.f32.mxu0 %v2776_v18 }
 0x5ca   : > { %3448 = vmatmul.mubr.f32.gmra.mrb[18].mxu0 %v2777_v37  ;;  %v2779_v30 = vmax.f32 %v2721_v32, 0.0 }
 0x5cb   : > { %v2778_v36 = vmax.f32 %v2716_v42, 0.0 }
 0x5cd   : > { %3450 = vmatprep.mubr.f32.mxu0 %v2778_v36 }
 0x5ce   : > { %3451 = vmatmul.mubr.f32.gmra.mrb[20].mxu0 %v2779_v30 }
 0x5d1   : > { %v3399_v31 = vpop.f32.mrb[6].mxu1 }
 0x5d2   : > { %v2731_v56 = vadd.f32 %v3399_v31, %v3132_v25  ;;  %v2725_v2 = vpop.f32.mrb[7].mxu1 }
 0x5d3   : > { %v2726_v11 = vadd.f32 %v3132_v25, %v2725_v2 }
 0x5d4   : > { %v2781_v62 = vmax.f32 %v2731_v56, 0.0 }
 0x5d5   : > { %v2780_v23 = vmax.f32 %v2726_v11, 0.0  ;;  %v3402_v41 = vpop.f32.mrb[8].mxu1 }
 0x5d6   : > { %v2741_v39 = vadd.f32 %v3402_v41, %v3132_v25  ;;  %v2735_v17 = vpop.f32.mrb[9].mxu1 }
 0x5d7   : > { %v2736_v4 = vadd.f32 %v3132_v25, %v2735_v17  ;;  %3453 = vmatprep.mubr.f32.mxu0 %v2780_v23 }
 0x5d8   : > { %3454 = vmatmul.mubr.f32.gmra.mrb[22].mxu0 %v2781_v62  ;;  %v2783_v21 = vmax.f32 %v2741_v39, 0.0 }
 0x5d9   : > { %v2782_v28 = vmax.f32 %v2736_v4, 0.0  ;;  %v3405_v33 = vpop.f32.mrb[10].mxu1 }
 0x5da   : > { %v2751_v8 = vadd.f32 %v3405_v33, %v3132_v25  ;;  %v2745_v24 = vpop.f32.mrb[11].mxu1 }
 0x5db   : > { %v2746_v47 = vadd.f32 %v3132_v25, %v2745_v24  ;;  %3456 = vmatprep.mubr.f32.mxu0 %v2782_v28 }
 0x5dc   : > { %3457 = vmatmul.mubr.f32.gmra.mrb[24].mxu0 %v2783_v21  ;;  %v2785_v38 = vmax.f32 %v2751_v8, 0.0 }
 0x5dd   : > { %v2784_v58 = vmax.f32 %v2746_v47, 0.0  ;;  %v3408_v26 = vpop.f32.mrb[12].mxu1 }
 0x5de   : > { %v2761_v54 = vadd.f32 %v3408_v26, %v3132_v25  ;;  %v2755_v6 = vpop.f32.mrb[13].mxu1 }
 0x5df   : > { %v2756_v7 = vadd.f32 %v3132_v25, %v2755_v6  ;;  %3459 = vmatprep.mubr.f32.mxu0 %v2784_v58 }
 0x5e0   : > { %3460 = vmatmul.mubr.f32.gmra.mrb[26].mxu0 %v2785_v38  ;;  %v2787_v45 = vmax.f32 %v2761_v54, 0.0 }
 0x5e1   : > { %v2786_v22 = vmax.f32 %v2756_v7, 0.0  ;;  %v3411_v61 = vpop.f32.mrb[14].mxu1 }
 0x5e2   : > { %v2771_v35 = vadd.f32 %v3411_v61, %v3132_v25  ;;  %v2765_v50 = vpop.f32.mrb[15].mxu1 }
 0x5e3   : > { %v2766_v0 = vadd.f32 %v3132_v25, %v2765_v50  ;;  %3462 = vmatprep.mubr.f32.mxu1 %v2786_v22 }
 0x5e4   : > { %3463 = vmatmul.mubr.f32.vlgmr.msra.gmra.mrb[16].mxu1 %v2787_v45  ;;  %v2789_v51 = vmax.f32 %v2771_v35, 0.0 }
 0x5e5   : > { %v2788_v63 = vmax.f32 %v2766_v0, 0.0 }
 0x5e7   : > { %3465 = vmatprep.mubr.f32.mxu1 %v2788_v63 }
 0x5e8   : > { %3466 = vmatmul.mubr.f32.gmra.mrb[18].mxu1 %v2789_v51 }
 0x699   : > { %v3446_v43 = vpop.f32.mrb[16].mxu0 }
 0x69a   : > { %v2885_v27 = vadd.f32 %v3446_v43, %v3133_v46  ;;  %v2879_v12 = vpop.f32.mrb[17].mxu0 }
 0x69b   : > { %v2880_v55 = vadd.f32 %v3133_v46, %v2879_v12 }
 0x69c   : > { %2959 = vst [vmem:[%s4140_s28 + $0x8] sm:$0xff] %v2885_v27 }
 0x69d   : > { %2958 = vst [vmem:[%s4140_s28] sm:$0xff] %v2880_v55  ;;  %v3449_v29 = vpop.f32.mrb[18].mxu0 }
 0x69e   : > { %v2895_v16 = vadd.f32 %v3449_v29, %v3133_v46  ;;  %v2889_v15 = vpop.f32.mrb[19].mxu0 }
 0x69f   : > { %v2890_v59 = vadd.f32 %v3133_v46, %v2889_v15 }
 0x6a0   : > { %2961 = vst [vmem:[%s4140_s28 + $0x18] sm:$0xff] %v2895_v16 }
 0x6a1   : > { %2960 = vst [vmem:[%s4140_s28 + $0x10] sm:$0xff] %v2890_v59  ;;  %v3452_v49 = vpop.f32.mrb[20].mxu0 }
 0x6a2   : > { %v2905_v53 = vadd.f32 %v3452_v49, %v3133_v46  ;;  %v2899_v10 = vpop.f32.mrb[21].mxu0 }
 0x6a3   : > { %v2900_v34 = vadd.f32 %v3133_v46, %v2899_v10 }
 0x6a4   : > { %2963 = vst [vmem:[%s4140_s28 + $0x28] sm:$0xff] %v2905_v53 }
 0x6a5   : > { %2962 = vst [vmem:[%s4140_s28 + $0x20] sm:$0xff] %v2900_v34 }
 0x6ab   : > { %v3455_v48 = vpop.f32.mrb[22].mxu0 }
 0x6ac   : > { %v2915_v1 = vadd.f32 %v3455_v48, %v3133_v46  ;;  %v2909_v25 = vpop.f32.mrb[23].mxu0 }
 0x6ad   : > { %v2910_v19 = vadd.f32 %v3133_v46, %v2909_v25 }
 0x6ae   : > { %2965 = vst [vmem:[%s4140_s28 + $0x38] sm:$0xff] %v2915_v1 }
 0x6af   : > { %2964 = vst [vmem:[%s4140_s28 + $0x30] sm:$0xff] %v2910_v19  ;;  %v3458_v44 = vpop.f32.mrb[24].mxu0 }
 0x6b0   : > { %v2925_v5 = vadd.f32 %v3458_v44, %v3133_v46  ;;  %v2919_v52 = vpop.f32.mrb[25].mxu0 }
 0x6b1   : > { %v2920_v14 = vadd.f32 %v3133_v46, %v2919_v52 }
 0x6b2   : > { %2967 = vst [vmem:[%s4140_s28 + $0x48] sm:$0xff] %v2925_v5 }
 0x6b3   : > { %2966 = vst [vmem:[%s4140_s28 + $0x40] sm:$0xff] %v2920_v14  ;;  %v3461_v60 = vpop.f32.mrb[26].mxu0 }
 0x6b4   : > { %v2935_v13 = vadd.f32 %v3461_v60, %v3133_v46  ;;  %v2929_v40 = vpop.f32.mrb[27].mxu0 }
 0x6b5   : > { %v2930_v20 = vadd.f32 %v3133_v46, %v2929_v40 }
 0x6b6   : > { %2969 = vst [vmem:[%s4140_s28 + $0x58] sm:$0xff] %v2935_v13 }
 0x6b7   : > { %2968 = vst [vmem:[%s4140_s28 + $0x50] sm:$0xff] %v2930_v20  ;;  %v3464_v3 = vpop.f32.mrb[16].mxu1 }
 0x6b8   : > { %v2945_v18 = vadd.f32 %v3464_v3, %v3133_v46  ;;  %v2939_v9 = vpop.f32.mrb[17].mxu1 }
 0x6b9   : > { %v2940_v37 = vadd.f32 %v3133_v46, %v2939_v9 }
 0x6ba   : > { %2971 = vst [vmem:[%s4140_s28 + $0x68] sm:$0xff] %v2945_v18 }
 0x6bb   : > { %2970 = vst [vmem:[%s4140_s28 + $0x60] sm:$0xff] %v2940_v37  ;;  %v3467_v32 = vpop.f32.mrb[18].mxu1 }
 0x6bc   : > { %v2955_v57 = vadd.f32 %v3467_v32, %v3133_v46  ;;  %v2949_v42 = vpop.f32.mrb[19].mxu1 }
 0x6bd   : > { %v2950_v36 = vadd.f32 %v3133_v46, %v2949_v42 }
 0x6be   : > { %2973 = vst [vmem:[%s4140_s28 + $0x78] sm:$0xff] %v2955_v57 }
 0x6bf   : > { %2972 = vst [vmem:[%s4140_s28 + $0x70] sm:$0xff] %v2950_v36 }
 0x6c0 PF: > { %s3139_s13 = sshll.u32 %s3966_s17, 11  ;;  %s6034_s18 = sld [smem:[#allocation69_spill]] }
 0x6c1   : > { %s2988_s20 = sshll.u32 %s4140_s28, 4  ;;  %s6036_s24 = sand.u32 1, %s3954_s14   ;;  %s5785_s20 = int_to_ptr.vmem [resolvable:$true] %s2988_s20 }
 0x6c2   : > { %s5789_s26 = scalar_lea.sflag [#allocation6], %s6036_s24  ;;  %s3884_s29 = scalar_lea.vmem %s5785_s20, 2048 }
 0x6c3   : > { %p3885_p4 = scmp.ne.s32.totalorder %s5785_s20, %s3884_s29  ;;  %s3986_s17 = smov [#allocation5]  }
 0x6c4   : > { %s3888_s30 = sshll.u32 %s3986_s17, 4  ;;  %s3889_s30 = int_to_ptr.vmem [resolvable:$false] %s3888_s30 }
 0x6c5   : > { %p3886_p5 = pnand %p3885_p4, %p4093_p3  ;;  %s3890_s12 = scalar_lea.vmem %s3889_s30, 4096 }
 0x6c6   : > { %s6035_s23 = smov %s6034_s18  ;;  %s5782_s19 = scalar_lea.hbm %s6034_s18, %s3139_s13 }
 0x6c7   : > { %p3887_p6 = pneg %p3886_p5  ;;  %p3891_p7 = scmp.lt.s32.totalorder %s5785_s20, %s3889_s30 }
 0x6c8   : > { %p3892_p8 = scmp.lt.s32.totalorder %s3890_s12, %s3884_s29 }
 0x6ca   : > { %p3893_p10 = por %p3892_p8, %p3891_p7 }
 0x6cc   : > { %p3894_p11 = pnand %p3893_p10, %p3887_p6 }
 0x6ce   : > { %3897 = shalt.err (!%p3894_p11)
}
 0x6cf   : > { %s3898_s28 = scalar_lea.hbm %s5782_s19, 2048  ;;  %s3902_s11 = scalar_lea.hbm %s6035_s23, 4096 }
 0x6d0   : > { %p3899_p12 = scmp.ne.s32.totalorder %s5782_s19, %s3898_s28  ;;  %p3903_p1 = scmp.lt.u32.totalorder %s5782_s19, %s6035_s23 }
 0x6d1   : > { %p3904_p2 = scmp.lt.u32.totalorder %s3902_s11, %s3898_s28  ;;  %p3906_p5 = scmp.lt.u32.totalorder %s3898_s28, %s5782_s19 }
 0x6d2   : > { %p3900_p13 = pnand %p3899_p12, %p4093_p3 }
 0x6d3   : > { %p3905_p4 = por %p3904_p2, %p3903_p1 }
 0x6d4   : > { %p3901_p0 = pneg %p3900_p13 }
 0x6d5   : > { %p3907_p6 = por %p3906_p5, %p3905_p4 }
 0x6d7   : > { %p3908_p7 = pnand %p3907_p6, %p3901_p0 }
 0x6d9   : > { %3911 = shalt.err (!%p3908_p7)
}
 0x6da   : > { %s3987_s13 = smov 128   ;;  %s3988_s15 = smov 8  }
 0x6db   : > { %3612 = dma.vmem_to_hbm [thread:$0]  (%p4093_p3), %s5785_s20, 2048, %s5782_s19, %s5789_s26, %s3987_s13, %s3987_s13, %s3988_s15  }
 0x6dc PF: > { %s6037_s16 = sld [smem:[#allocation12_spill]]  ;;  %s6038_s18 = sld [smem:[#allocation8_spill]] }
 0x6e2   : > { %p3618_p8 = scmp.ge.s32.totalorder %s6037_s16, 2  ;;  %s3003_s29 = sand.u32 1, %s6038_s18  }
 0x6e3   : > { %s3004_s17 = scalar_lea.sflag [#allocation6], %s3003_s29 }
 0x6e4   : > { %p3615_p10 = pnand %p3618_p8, %p4103_p9 }
 0x6e6   : > { %3945 = dma.done.wait (!%p3615_p10), %s3004_s17, 2048  }
 0x6e7   : > { %3947 = vsyncadd (!%p3615_p10), %s3004_s17, 4294965248  ;;  %s23_s20 = sadd.s32 1, %s6037_s16   ;;  %s6040_s30 = sld [smem:[#allocation9_spill]] }
 0x6e8   : > { %p20_p11 = scmp.ge.s32.totalorder %s23_s20, 6   ;;  %s6041_s15 = sld [smem:[#allocation16_spill]] }
 0x6e9   : > { %s6042_s16 = sld [smem:[#allocation10_spill]]  ;;  %s6043_s17 = sld [smem:[#allocation11_spill]] }
 0x6ea   : > { %s6044_s18 = sld [smem:[#allocation13_spill]]  ;;  %s6045_s19 = sld [smem:[#allocation14_spill]] }
 0x6eb   : > { %s6046_s13 = smov %s3954_s14  ;;  %22 = sbr.rel (!%p20_p11) target bundleno = 7 (0x7), region = 112 }
 0x6ed   : > { %s6047_s14 = smov %s6040_s30 }
 0x6f2   :  { %3009 = vsyncpa [#allocation6], 1 }
 0x6f3   :  { %3011 = vsyncpa [#allocation6 + $0x1], 1 }

</bundles_post_ra>
